<compile_context>
chip_gen: v7x
topology: tpu7x:2x2x1
jax: 0.10.0
libtpu: 0.0.40
codegen_flags: <defaults>
</compile_context>

<pallas_src>
import functools

import jax
import jax.numpy as jnp
from jax.experimental import pallas as pl
from jax.experimental.pallas import tpu as pltpu

_EPS = 1e-5
# All tiles below are at most a few MB (double-buffered); 32 MiB is safe on
# every generation (v7x has 64 MiB physical per TensorCore).
_VMEM_LIMIT = 32 * 1024 * 1024


def _pick_tile(dim, prefs):
    """Largest preferred tile that divides `dim`; falls back to full extent
    (block dim == array dim is always legal, just less efficient for tiny dims)."""
    for t in prefs:
        if dim % t == 0:
            return t
    return dim


# ---------------------------------------------------------------------------
# Fused  Linear -> BatchNorm1d(batch stats) -> ReLU  kernel.
# X: (B, Din) bf16, W tile: (Din, TN) bf16, bias/gamma/beta tiles: (1, TN) f32.
# BN reduces over rows (batch), so per-feature stats are tile-local under
# column tiling and the fused single-pass formula stays exact.
# ---------------------------------------------------------------------------
def _fc_kernel(x_ref, w_ref, b_ref, g_ref, be_ref, o_ref):
    z = jnp.dot(x_ref[...], w_ref[...], preferred_element_type=jnp.float32)
    z = z + b_ref[...]
    inv_b = 1.0 / z.shape[0]
    mean = jnp.sum(z, axis=0, keepdims=True) * inv_b
    d = z - mean
    var = jnp.sum(d * d, axis=0, keepdims=True) * inv_b   # biased, like PyTorch train
    z = g_ref[...] * d * jax.lax.rsqrt(var + _EPS) + be_ref[...]
    z = jnp.maximum(z, 0.0)                                # ReLU
    o_ref[...] = z.astype(o_ref.dtype)


def fc_bn_relu(x, w, b, gamma, beta):
    B, Din = x.shape
    Dout = w.shape[1]
    TN = _pick_tile(Dout, (512, 256, 128))
    b2 = b.reshape(1, Dout)
    g2 = gamma.reshape(1, Dout)
    be2 = beta.reshape(1, Dout)

    return pl.pallas_call(
        _fc_kernel,
        grid=(Dout // TN,),
        in_specs=[
            pl.BlockSpec((B, Din), lambda j: (0, 0)),    # activation: tiny, full
            pl.BlockSpec((Din, TN), lambda j: (0, j)),   # weight: streamed column tiles
            pl.BlockSpec((1, TN), lambda j: (0, j)),
            pl.BlockSpec((1, TN), lambda j: (0, j)),
            pl.BlockSpec((1, TN), lambda j: (0, j)),
        ],
        out_specs=pl.BlockSpec((B, TN), lambda j: (0, j)),
        out_shape=jax.ShapeDtypeStruct((B, Dout), jnp.bfloat16),
        compiler_params=pltpu.CompilerParams(
            dimension_semantics=("parallel",),
            vmem_limit_bytes=_VMEM_LIMIT),
    )(x.astype(jnp.bfloat16), w, b2, g2, be2)


# ---------------------------------------------------------------------------
# ConvTranspose2d(k=4, s=2, p=1) — sub-pixel decomposition.
# Output phase (ry, rx):  out[n, c, 2i+ry, 2j+rx] =
#     sum_{cin, dy, dx in {0,1}} xpad[n, cin, i+ry+dy, j+rx+dx] *
#                                w_flip[cin, c, 2*dy+ry, 2*dx+rx]      + bias[c]
# Each phase is a (Cout, Cin*4) @ (Cin*4, N*H*W) matmul (lane-dense columns).
# ---------------------------------------------------------------------------
def _subpixel_patches(x):
    # x: (N, Cin, H, W) -> (4, Cin*4, N*H*W), built directly in bf16.
    # TODO(synk): generate these shifted-window patch rows inside the matmul
    # kernel (halo loads from the padded activation) so the 4x patch stack
    # never touches HBM.
    N, Cin, H, W = x.shape
    x = x.astype(jnp.bfloat16)
    xp = jnp.pad(x, ((0, 0), (0, 0), (1, 1), (1, 1)))
    phases = []
    for ry in (0, 1):
        for rx in (0, 1):
            taps = []
            for dy in (0, 1):
                for dx in (0, 1):
                    taps.append(xp[:, :, ry + dy: ry + dy + H, rx + dx: rx + dx + W])
            p = jnp.stack(taps, axis=2)                      # (N, Cin, 4, H, W)
            p = p.reshape(N, Cin * 4, H * W)
            p = p.transpose(1, 0, 2).reshape(Cin * 4, N * H * W)
            phases.append(p)
    return jnp.stack(phases, axis=0)                         # (4, Cin*4, N*H*W)


def _subpixel_weights(w):
    # w: (Cin, Cout, 4, 4) PyTorch ConvTranspose2d layout -> (4, Cout, Cin*4) bf16
    Cin, Cout = w.shape[0], w.shape[1]
    w_flip = w[:, :, ::-1, ::-1]
    mats = []
    for ry in (0, 1):
        for rx in (0, 1):
            sub = w_flip[:, :, ry::2, rx::2]                 # taps (dy, dx)
            mats.append(sub.transpose(1, 0, 2, 3).reshape(Cout, Cin * 4))
    return jnp.stack(mats, axis=0).astype(jnp.bfloat16)      # (4, Cout, Cin*4)


def _deconv_matmul_kernel(w_ref, p_ref, b_ref, o_ref, *, act):
    # w: (1, Cout, K) bf16, p: (1, K, TCOL) bf16, b: (Cout, 1) f32
    # TODO(synk): better MXU row-fill on v6e/v7x (unified 9-tap GEMM / VPU
    # tap-sum for the Cout=1 layer); these layers are HBM-bound so deferred.
    z = jnp.dot(w_ref[0], p_ref[0], preferred_element_type=jnp.float32)
    z = z + b_ref[...]
    if act == "tanh":
        z = jnp.tanh(z)
    o_ref[...] = z[None].astype(o_ref.dtype)


def _deconv_matmul(p_stack, w_stack, bias, *, act, out_dtype):
    # p_stack: (4, K, M) bf16, w_stack: (4, Cout, K) bf16 -> (4, Cout, M)
    _, K, M = p_stack.shape
    Cout = w_stack.shape[1]
    TCOL = _pick_tile(M, (2048, 1024, 512, 256, 128))
    b2 = bias.reshape(Cout, 1)

    return pl.pallas_call(
        functools.partial(_deconv_matmul_kernel, act=act),
        grid=(4, M // TCOL),                                 # (phase, column tiles)
        in_specs=[
            pl.BlockSpec((1, Cout, K), lambda ph, c: (ph, 0, 0)),
            pl.BlockSpec((1, K, TCOL), lambda ph, c: (ph, 0, c)),
            pl.BlockSpec((Cout, 1), lambda ph, c: (0, 0)),
        ],
        out_specs=pl.BlockSpec((1, Cout, TCOL), lambda ph, c: (ph, 0, c)),
        out_shape=jax.ShapeDtypeStruct((4, Cout, M), out_dtype),
        compiler_params=pltpu.CompilerParams(
            dimension_semantics=("parallel", "parallel"),
            vmem_limit_bytes=_VMEM_LIMIT),
    )(w_stack, p_stack, b2)


# ---------------------------------------------------------------------------
# BatchNorm2d(batch stats) + ReLU, reading the phase-major conv output
# (4, Cout, M) directly (no transpose pass).  Two tiled passes:
#   pass 1: accumulating reduce over (phase, column-tiles) -> per-channel
#           scale/shift (VMEM scratch accumulators, init/finalize via pl.when)
#   pass 2: parallel normalize + ReLU over the same tiling.
# ---------------------------------------------------------------------------
def _bn2d_reduce_kernel(x_ref, g_ref, b_ref, scale_ref, shift_ref,
                        sum_sc, sq_sc, *, inv_n):
    @pl.when((pl.program_id(0) == 0) & (pl.program_id(1) == 0))
    def _():
        sum_sc[...] = jnp.zeros_like(sum_sc)
        sq_sc[...] = jnp.zeros_like(sq_sc)

    x = x_ref[0].astype(jnp.float32)                         # (C, TL)
    sum_sc[...] += jnp.sum(x, axis=1, keepdims=True)
    sq_sc[...] += jnp.sum(x * x, axis=1, keepdims=True)

    @pl.when((pl.program_id(0) == pl.num_programs(0) - 1)
             & (pl.program_id(1) == pl.num_programs(1) - 1))
    def _():
        mean = sum_sc[...] * inv_n
        var = sq_sc[...] * inv_n - mean * mean               # biased, like PyTorch train
        scale = g_ref[...] * jax.lax.rsqrt(var + _EPS)
        scale_ref[...] = scale
        shift_ref[...] = b_ref[...] - mean * scale


def _bn2d_norm_kernel(x_ref, scale_ref, shift_ref, o_ref):
    y = x_ref[0].astype(jnp.float32) * scale_ref[...] + shift_ref[...]
    y = jnp.maximum(y, 0.0)                                  # ReLU
    o_ref[...] = y[None].astype(o_ref.dtype)


def bn2d_relu(conv, gamma, beta, *, out_dtype=jnp.bfloat16):
    _, C, M = conv.shape
    TL = _pick_tile(M, (2048, 1024, 512, 256, 128))
    g2 = gamma.reshape(C, 1)
    b2 = beta.reshape(C, 1)
    inv_n = 1.0 / (4 * M)                                    # N * (2H) * (2W)

    scale, shift = pl.pallas_call(
        functools.partial(_bn2d_reduce_kernel, inv_n=inv_n),
        grid=(4, M // TL),
        in_specs=[
            pl.BlockSpec((1, C, TL), lambda ph, c: (ph, 0, c)),
            pl.BlockSpec((C, 1), lambda ph, c: (0, 0)),
            pl.BlockSpec((C, 1), lambda ph, c: (0, 0)),
        ],
        out_specs=(pl.BlockSpec((C, 1), lambda ph, c: (0, 0)),
                   pl.BlockSpec((C, 1), lambda ph, c: (0, 0))),
        out_shape=(jax.ShapeDtypeStruct((C, 1), jnp.float32),
                   jax.ShapeDtypeStruct((C, 1), jnp.float32)),
        scratch_shapes=[pltpu.VMEM((C, 1), jnp.float32),
                        pltpu.VMEM((C, 1), jnp.float32)],
        compiler_params=pltpu.CompilerParams(
            dimension_semantics=("arbitrary", "arbitrary"),
            vmem_limit_bytes=_VMEM_LIMIT),
    )(conv, g2, b2)

    return pl.pallas_call(
        _bn2d_norm_kernel,
        grid=(4, M // TL),
        in_specs=[
            pl.BlockSpec((1, C, TL), lambda ph, c: (ph, 0, c)),
            pl.BlockSpec((C, 1), lambda ph, c: (0, 0)),
            pl.BlockSpec((C, 1), lambda ph, c: (0, 0)),
        ],
        out_specs=pl.BlockSpec((1, C, TL), lambda ph, c: (ph, 0, c)),
        out_shape=jax.ShapeDtypeStruct((4, C, M), out_dtype),
        compiler_params=pltpu.CompilerParams(
            dimension_semantics=("parallel", "parallel"),
            vmem_limit_bytes=_VMEM_LIMIT),
    )(conv, scale, shift)


def _assemble_nchw(o, N, H, W):
    # o: (4, C, N*H*W) with phase = 2*ry + rx  ->  (N, C, 2H, 2W)
    # TODO(synk): read the next layer's shifted windows directly from this
    # phase-major layout inside the matmul kernel so this transpose only runs
    # for the final layer.
    C = o.shape[1]
    o = o.reshape(2, 2, C, N, H, W)
    o = o.transpose(3, 2, 4, 0, 5, 1)                        # (N, C, H, ry, W, rx)
    return o.reshape(N, C, 2 * H, 2 * W)


def deconv_layer(x, w_stack, b, gamma, beta, *, last):
    N, _, H, W = x.shape
    p_stack = _subpixel_patches(x)                           # (4, Cin*4, N*H*W) bf16
    if last:
        # Final layer: ConvTranspose + bias + tanh fused, f32 output, no BN.
        o = _deconv_matmul(p_stack, w_stack, b, act="tanh", out_dtype=jnp.float32)
    else:
        conv = _deconv_matmul(p_stack, w_stack, b, act=None, out_dtype=jnp.bfloat16)
        o = bn2d_relu(conv, gamma, beta, out_dtype=jnp.bfloat16)
    return _assemble_nchw(o, N, H, W)                        # NCHW


# ---------------------------------------------------------------------------
# Parameter init (deterministic, mimics N(0,0.02) weights / N(1,0.02) BN gains).
# Matmul weights stored in bf16 (FC) / pre-packed bf16 sub-pixel stacks (deconv).
# ---------------------------------------------------------------------------
def init_params(key, z_dim, output_channel, input_size, len_discrete, len_cont):
    s8 = input_size // 8
    keys = iter(jax.random.split(key, 12))
    fc_dims = [(z_dim + len_discrete + len_cont, 1024),
               (1024, 1024),
               (1024, 128 * s8 * s8)]
    fc = []
    for din, dout in fc_dims:
        w = (0.02 * jax.random.normal(next(keys), (din, dout), jnp.float32)
             ).astype(jnp.bfloat16)
        b = jnp.zeros((dout,), jnp.float32)
        g = 1.0 + 0.02 * jax.random.normal(next(keys), (dout,), jnp.float32)
        be = jnp.zeros((dout,), jnp.float32)
        fc.append((w, b, g, be))
    dc_dims = [(128, 64), (64, 32), (32, output_channel)]
    dc = []
    for cin, cout in dc_dims:
        w = 0.02 * jax.random.normal(next(keys), (cin, cout, 4, 4), jnp.float32)
        w_stack = _subpixel_weights(w)                       # (4, cout, cin*4) bf16
        b = jnp.zeros((cout,), jnp.float32)
        g = 1.0 + 0.02 * jax.random.normal(next(keys), (cout,), jnp.float32)
        be = jnp.zeros((cout,), jnp.float32)
        dc.append((w_stack, b, g, be))
    return {"fc": fc, "deconv": dc}


@functools.partial(jax.jit, static_argnames=("s8",))
def generator_mwm_forward(params, z, dist_code, cont_code, *, s8):
    x = jnp.concatenate([z, dist_code, cont_code], axis=1)
    for (w, b, g, be) in params["fc"]:                       # Linear+BN1d+ReLU x3
        x = fc_bn_relu(x, w, b, g, be)
    n = x.shape[0]
    x = x.reshape(n, 128, s8, s8)                            # NCHW, like .view()
    n_dc = len(params["deconv"])
    for li, (w_stack, b, g, be) in enumerate(params["deconv"]):
        x = deconv_layer(x, w_stack, b, g, be, last=(li == n_dc - 1))
    return x


if __name__ == "__main__":
    # Small shapes consistent with the module (input_size must be divisible by 8).
    B, Z_DIM, INPUT_SIZE = 2, 16, 16
    LEN_DISC, LEN_CONT, OUT_CH = 4, 2, 1

    key = jax.random.PRNGKey(0)
    kp, kz, kd, kc = jax.random.split(key, 4)

    params = init_params(kp, Z_DIM, OUT_CH, INPUT_SIZE, LEN_DISC, LEN_CONT)
    z = jax.random.normal(kz, (B, Z_DIM), jnp.float32)
    dist_code = jax.nn.one_hot(
        jax.random.randint(kd, (B,), 0, LEN_DISC), LEN_DISC, dtype=jnp.float32)
    cont_code = jax.random.uniform(kc, (B, LEN_CONT), jnp.float32, -1.0, 1.0)

    out = generator_mwm_forward(params, z, dist_code, cont_code, s8=INPUT_SIZE // 8)
    out = jax.block_until_ready(out)

    assert out.shape == (B, OUT_CH, INPUT_SIZE, INPUT_SIZE), out.shape
    assert bool(jnp.all(jnp.isfinite(out)))
    assert bool(jnp.all(jnp.abs(out) <= 1.0))                # tanh range
    print("KERNEL_OK")
</pallas_src>

<mosaic_0001>
module attributes {stable_mosaic.version = 11 : i64} {
  func.func @_fc_kernel(%arg0: i32, %arg1: memref<2x1024xbf16, #tpu.memory_space<vmem>>, %arg2: memref<1024x512xbf16, #tpu.memory_space<vmem>>, %arg3: memref<1x512xf32, #tpu.memory_space<vmem>>, %arg4: memref<1x512xf32, #tpu.memory_space<vmem>>, %arg5: memref<1x512xf32, #tpu.memory_space<vmem>>, %arg6: memref<2x512xbf16, #tpu.memory_space<vmem>>) attributes {dimension_semantics = [#tpu.dimension_semantics<parallel>], iteration_bounds = array<i64: 1>, scalar_prefetch = 0 : i64, scratch_operands = 0 : i64, tpu.core_type = #tpu.core_type<tc>, window_params = [{pipeline_mode = #tpu.pipeline_mode<synchronous>, transform_indices = @transform_0, window_bounds = array<i64: 2, 1024>}, {transform_indices = @transform_1, window_bounds = array<i64: 1024, 512>}, {transform_indices = @transform_2, window_bounds = array<i64: 1, 512>}, {transform_indices = @transform_3, window_bounds = array<i64: 1, 512>}, {transform_indices = @transform_4, window_bounds = array<i64: 1, 512>}, {transform_indices = @transform_5, window_bounds = array<i64: 2, 512>}]} {
    %c0 = arith.constant 0 : index
    %c0_0 = arith.constant 0 : index
    %0 = vector.load %arg1[%c0, %c0_0] : memref<2x1024xbf16, #tpu.memory_space<vmem>>, vector<2x1024xbf16>
    %c0_1 = arith.constant 0 : index
    %c0_2 = arith.constant 0 : index
    %1 = vector.load %arg2[%c0_1, %c0_2] : memref<1024x512xbf16, #tpu.memory_space<vmem>>, vector<1024x512xbf16>
    %cst = arith.constant dense<0.000000e+00> : vector<2x512xf32>
    %2 = tpu.matmul %0, %1, %cst {dimension_numbers = #tpu.dot_dimension_numbers<[1], [0], [0], [1], [0, 0, 1, 1], [], []>} : vector<2x1024xbf16>, vector<1024x512xbf16>, vector<2x512xf32> -> vector<2x512xf32>
    %c0_3 = arith.constant 0 : index
    %c0_4 = arith.constant 0 : index
    %3 = vector.load %arg3[%c0_3, %c0_4] : memref<1x512xf32, #tpu.memory_space<vmem>>, vector<1x512xf32>
    %4 = vector.broadcast %3 : vector<1x512xf32> to vector<2x512xf32>
    %5 = arith.addf %2, %4 : vector<2x512xf32>
    %cst_5 = arith.constant dense<0.000000e+00> : vector<512xf32>
    %6 = vector.multi_reduction <add>, %5, %cst_5 [0] : vector<2x512xf32> to vector<512xf32>
    %7 = vector.shape_cast %6 : vector<512xf32> to vector<1x512xf32>
    %cst_6 = arith.constant 5.000000e-01 : f32
    %8 = vector.broadcast %cst_6 : f32 to vector<1x512xf32>
    %9 = arith.mulf %7, %8 : vector<1x512xf32>
    %10 = vector.broadcast %9 : vector<1x512xf32> to vector<2x512xf32>
    %11 = arith.subf %5, %10 : vector<2x512xf32>
    %12 = arith.mulf %11, %11 : vector<2x512xf32>
    %cst_7 = arith.constant dense<0.000000e+00> : vector<512xf32>
    %13 = vector.multi_reduction <add>, %12, %cst_7 [0] : vector<2x512xf32> to vector<512xf32>
    %14 = vector.shape_cast %13 : vector<512xf32> to vector<1x512xf32>
    %cst_8 = arith.constant 5.000000e-01 : f32
    %15 = vector.broadcast %cst_8 : f32 to vector<1x512xf32>
    %16 = arith.mulf %14, %15 : vector<1x512xf32>
    %c0_9 = arith.constant 0 : index
    %c0_10 = arith.constant 0 : index
    %17 = vector.load %arg4[%c0_9, %c0_10] : memref<1x512xf32, #tpu.memory_space<vmem>>, vector<1x512xf32>
    %18 = vector.broadcast %17 : vector<1x512xf32> to vector<2x512xf32>
    %19 = arith.mulf %18, %11 : vector<2x512xf32>
    %cst_11 = arith.constant 9.99999974E-6 : f32
    %20 = vector.broadcast %cst_11 : f32 to vector<1x512xf32>
    %21 = arith.addf %16, %20 : vector<1x512xf32>
    %22 = math.rsqrt %21 : vector<1x512xf32>
    %23 = vector.broadcast %22 : vector<1x512xf32> to vector<2x512xf32>
    %24 = arith.mulf %19, %23 : vector<2x512xf32>
    %c0_12 = arith.constant 0 : index
    %c0_13 = arith.constant 0 : index
    %25 = vector.load %arg5[%c0_12, %c0_13] : memref<1x512xf32, #tpu.memory_space<vmem>>, vector<1x512xf32>
    %26 = vector.broadcast %25 : vector<1x512xf32> to vector<2x512xf32>
    %27 = arith.addf %24, %26 : vector<2x512xf32>
    %cst_14 = arith.constant 0.000000e+00 : f32
    %28 = vector.broadcast %cst_14 : f32 to vector<2x512xf32>
    %29 = arith.maximumf %27, %28 : vector<2x512xf32>
    %30 = arith.truncf %29 : vector<2x512xf32> to vector<2x512xbf16>
    %c0_15 = arith.constant 0 : index
    %c0_16 = arith.constant 0 : index
    %31 = vector.load %arg6[%c0_15, %c0_16] : memref<2x512xbf16, #tpu.memory_space<vmem>>, vector<2x512xbf16>
    tpu.vector_store %arg6[%c0_15, %c0_16], %30 {strides = array<i32>} : memref<2x512xbf16, #tpu.memory_space<vmem>>, vector<2x512xbf16>,
    return
  }
  func.func @transform_0(%arg0: i32) -> (i32, i32) {
    %c0_i32 = arith.constant 0 : i32
    %c0_i32_0 = arith.constant 0 : i32
    %c0_i32_1 = arith.constant 0 : i32
    return %c0_i32, %c0_i32_0 : i32, i32
  }
  func.func @transform_1(%arg0: i32) -> (i32, i32) {
    %c0_i32 = arith.constant 0 : i32
    %c0_i32_0 = arith.constant 0 : i32
    return %c0_i32, %arg0 : i32, i32
  }
  func.func @transform_2(%arg0: i32) -> (i32, i32) {
    %c0_i32 = arith.constant 0 : i32
    %c0_i32_0 = arith.constant 0 : i32
    return %c0_i32, %arg0 : i32, i32
  }
  func.func @transform_3(%arg0: i32) -> (i32, i32) {
    %c0_i32 = arith.constant 0 : i32
    %c0_i32_0 = arith.constant 0 : i32
    return %c0_i32, %arg0 : i32, i32
  }
  func.func @transform_4(%arg0: i32) -> (i32, i32) {
    %c0_i32 = arith.constant 0 : i32
    %c0_i32_0 = arith.constant 0 : i32
    return %c0_i32, %arg0 : i32, i32
  }
  func.func @transform_5(%arg0: i32) -> (i32, i32) {
    %c0_i32 = arith.constant 0 : i32
    %c0_i32_0 = arith.constant 0 : i32
    return %c0_i32, %arg0 : i32, i32
  }
}

module attributes {stable_mosaic.version = 11 : i64} {
  func.func @_fc_kernel(%arg0: i32, %arg1: memref<2x22xbf16, #tpu.memory_space<vmem>>, %arg2: memref<22x512xbf16, #tpu.memory_space<vmem>>, %arg3: memref<1x512xf32, #tpu.memory_space<vmem>>, %arg4: memref<1x512xf32, #tpu.memory_space<vmem>>, %arg5: memref<1x512xf32, #tpu.memory_space<vmem>>, %arg6: memref<2x512xbf16, #tpu.memory_space<vmem>>) attributes {dimension_semantics = [#tpu.dimension_semantics<parallel>], iteration_bounds = array<i64: 2>, scalar_prefetch = 0 : i64, scratch_operands = 0 : i64, tpu.core_type = #tpu.core_type<tc>, window_params = [{pipeline_mode = #tpu.pipeline_mode<synchronous>, transform_indices = @transform_0, window_bounds = array<i64: 2, 22>}, {transform_indices = @transform_1, window_bounds = array<i64: 22, 512>}, {transform_indices = @transform_2, window_bounds = array<i64: 1, 512>}, {transform_indices = @transform_3, window_bounds = array<i64: 1, 512>}, {transform_indices = @transform_4, window_bounds = array<i64: 1, 512>}, {transform_indices = @transform_5, window_bounds = array<i64: 2, 512>}]} {
    %c0 = arith.constant 0 : index
    %c0_0 = arith.constant 0 : index
    %0 = vector.load %arg1[%c0, %c0_0] : memref<2x22xbf16, #tpu.memory_space<vmem>>, vector<2x22xbf16>
    %c0_1 = arith.constant 0 : index
    %c0_2 = arith.constant 0 : index
    %1 = vector.load %arg2[%c0_1, %c0_2] : memref<22x512xbf16, #tpu.memory_space<vmem>>, vector<22x512xbf16>
    %cst = arith.constant dense<0.000000e+00> : vector<2x512xf32>
    %2 = tpu.matmul %0, %1, %cst {dimension_numbers = #tpu.dot_dimension_numbers<[1], [0], [0], [1], [0, 0, 1, 1], [], []>} : vector<2x22xbf16>, vector<22x512xbf16>, vector<2x512xf32> -> vector<2x512xf32>
    %c0_3 = arith.constant 0 : index
    %c0_4 = arith.constant 0 : index
    %3 = vector.load %arg3[%c0_3, %c0_4] : memref<1x512xf32, #tpu.memory_space<vmem>>, vector<1x512xf32>
    %4 = vector.broadcast %3 : vector<1x512xf32> to vector<2x512xf32>
    %5 = arith.addf %2, %4 : vector<2x512xf32>
    %cst_5 = arith.constant dense<0.000000e+00> : vector<512xf32>
    %6 = vector.multi_reduction <add>, %5, %cst_5 [0] : vector<2x512xf32> to vector<512xf32>
    %7 = vector.shape_cast %6 : vector<512xf32> to vector<1x512xf32>
    %cst_6 = arith.constant 5.000000e-01 : f32
    %8 = vector.broadcast %cst_6 : f32 to vector<1x512xf32>
    %9 = arith.mulf %7, %8 : vector<1x512xf32>
    %10 = vector.broadcast %9 : vector<1x512xf32> to vector<2x512xf32>
    %11 = arith.subf %5, %10 : vector<2x512xf32>
    %12 = arith.mulf %11, %11 : vector<2x512xf32>
    %cst_7 = arith.constant dense<0.000000e+00> : vector<512xf32>
    %13 = vector.multi_reduction <add>, %12, %cst_7 [0] : vector<2x512xf32> to vector<512xf32>
    %14 = vector.shape_cast %13 : vector<512xf32> to vector<1x512xf32>
    %cst_8 = arith.constant 5.000000e-01 : f32
    %15 = vector.broadcast %cst_8 : f32 to vector<1x512xf32>
    %16 = arith.mulf %14, %15 : vector<1x512xf32>
    %c0_9 = arith.constant 0 : index
    %c0_10 = arith.constant 0 : index
    %17 = vector.load %arg4[%c0_9, %c0_10] : memref<1x512xf32, #tpu.memory_space<vmem>>, vector<1x512xf32>
    %18 = vector.broadcast %17 : vector<1x512xf32> to vector<2x512xf32>
    %19 = arith.mulf %18, %11 : vector<2x512xf32>
    %cst_11 = arith.constant 9.99999974E-6 : f32
    %20 = vector.broadcast %cst_11 : f32 to vector<1x512xf32>
    %21 = arith.addf %16, %20 : vector<1x512xf32>
    %22 = math.rsqrt %21 : vector<1x512xf32>
    %23 = vector.broadcast %22 : vector<1x512xf32> to vector<2x512xf32>
    %24 = arith.mulf %19, %23 : vector<2x512xf32>
    %c0_12 = arith.constant 0 : index
    %c0_13 = arith.constant 0 : index
    %25 = vector.load %arg5[%c0_12, %c0_13] : memref<1x512xf32, #tpu.memory_space<vmem>>, vector<1x512xf32>
    %26 = vector.broadcast %25 : vector<1x512xf32> to vector<2x512xf32>
    %27 = arith.addf %24, %26 : vector<2x512xf32>
    %cst_14 = arith.constant 0.000000e+00 : f32
    %28 = vector.broadcast %cst_14 : f32 to vector<2x512xf32>
    %29 = arith.maximumf %27, %28 : vector<2x512xf32>
    %30 = arith.truncf %29 : vector<2x512xf32> to vector<2x512xbf16>
    %c0_15 = arith.constant 0 : index
    %c0_16 = arith.constant 0 : index
    %31 = vector.load %arg6[%c0_15, %c0_16] : memref<2x512xbf16, #tpu.memory_space<vmem>>, vector<2x512xbf16>
    tpu.vector_store %arg6[%c0_15, %c0_16], %30 {strides = array<i32>} : memref<2x512xbf16, #tpu.memory_space<vmem>>, vector<2x512xbf16>,
    return
  }
  func.func @transform_0(%arg0: i32) -> (i32, i32) {
    %c0_i32 = arith.constant 0 : i32
    %c0_i32_0 = arith.constant 0 : i32
    %c0_i32_1 = arith.constant 0 : i32
    return %c0_i32, %c0_i32_0 : i32, i32
  }
  func.func @transform_1(%arg0: i32) -> (i32, i32) {
    %c0_i32 = arith.constant 0 : i32
    %c0_i32_0 = arith.constant 0 : i32
    return %c0_i32, %arg0 : i32, i32
  }
  func.func @transform_2(%arg0: i32) -> (i32, i32) {
    %c0_i32 = arith.constant 0 : i32
    %c0_i32_0 = arith.constant 0 : i32
    return %c0_i32, %arg0 : i32, i32
  }
  func.func @transform_3(%arg0: i32) -> (i32, i32) {
    %c0_i32 = arith.constant 0 : i32
    %c0_i32_0 = arith.constant 0 : i32
    return %c0_i32, %arg0 : i32, i32
  }
  func.func @transform_4(%arg0: i32) -> (i32, i32) {
    %c0_i32 = arith.constant 0 : i32
    %c0_i32_0 = arith.constant 0 : i32
    return %c0_i32, %arg0 : i32, i32
  }
  func.func @transform_5(%arg0: i32) -> (i32, i32) {
    %c0_i32 = arith.constant 0 : i32
    %c0_i32_0 = arith.constant 0 : i32
    return %c0_i32, %arg0 : i32, i32
  }
}

module attributes {stable_mosaic.version = 11 : i64} {
  func.func @_fc_kernel(%arg0: i32, %arg1: memref<2x1024xbf16, #tpu.memory_space<vmem>>, %arg2: memref<1024x512xbf16, #tpu.memory_space<vmem>>, %arg3: memref<1x512xf32, #tpu.memory_space<vmem>>, %arg4: memref<1x512xf32, #tpu.memory_space<vmem>>, %arg5: memref<1x512xf32, #tpu.memory_space<vmem>>, %arg6: memref<2x512xbf16, #tpu.memory_space<vmem>>) attributes {dimension_semantics = [#tpu.dimension_semantics<parallel>], iteration_bounds = array<i64: 2>, scalar_prefetch = 0 : i64, scratch_operands = 0 : i64, tpu.core_type = #tpu.core_type<tc>, window_params = [{pipeline_mode = #tpu.pipeline_mode<synchronous>, transform_indices = @transform_0, window_bounds = array<i64: 2, 1024>}, {transform_indices = @transform_1, window_bounds = array<i64: 1024, 512>}, {transform_indices = @transform_2, window_bounds = array<i64: 1, 512>}, {transform_indices = @transform_3, window_bounds = array<i64: 1, 512>}, {transform_indices = @transform_4, window_bounds = array<i64: 1, 512>}, {transform_indices = @transform_5, window_bounds = array<i64: 2, 512>}]} {
    %c0 = arith.constant 0 : index
    %c0_0 = arith.constant 0 : index
    %0 = vector.load %arg1[%c0, %c0_0] : memref<2x1024xbf16, #tpu.memory_space<vmem>>, vector<2x1024xbf16>
    %c0_1 = arith.constant 0 : index
    %c0_2 = arith.constant 0 : index
    %1 = vector.load %arg2[%c0_1, %c0_2] : memref<1024x512xbf16, #tpu.memory_space<vmem>>, vector<1024x512xbf16>
    %cst = arith.constant dense<0.000000e+00> : vector<2x512xf32>
    %2 = tpu.matmul %0, %1, %cst {dimension_numbers = #tpu.dot_dimension_numbers<[1], [0], [0], [1], [0, 0, 1, 1], [], []>} : vector<2x1024xbf16>, vector<1024x512xbf16>, vector<2x512xf32> -> vector<2x512xf32>
    %c0_3 = arith.constant 0 : index
    %c0_4 = arith.constant 0 : index
    %3 = vector.load %arg3[%c0_3, %c0_4] : memref<1x512xf32, #tpu.memory_space<vmem>>, vector<1x512xf32>
    %4 = vector.broadcast %3 : vector<1x512xf32> to vector<2x512xf32>
    %5 = arith.addf %2, %4 : vector<2x512xf32>
    %cst_5 = arith.constant dense<0.000000e+00> : vector<512xf32>
    %6 = vector.multi_reduction <add>, %5, %cst_5 [0] : vector<2x512xf32> to vector<512xf32>
    %7 = vector.shape_cast %6 : vector<512xf32> to vector<1x512xf32>
    %cst_6 = arith.constant 5.000000e-01 : f32
    %8 = vector.broadcast %cst_6 : f32 to vector<1x512xf32>
    %9 = arith.mulf %7, %8 : vector<1x512xf32>
    %10 = vector.broadcast %9 : vector<1x512xf32> to vector<2x512xf32>
    %11 = arith.subf %5, %10 : vector<2x512xf32>
    %12 = arith.mulf %11, %11 : vector<2x512xf32>
    %cst_7 = arith.constant dense<0.000000e+00> : vector<512xf32>
    %13 = vector.multi_reduction <add>, %12, %cst_7 [0] : vector<2x512xf32> to vector<512xf32>
    %14 = vector.shape_cast %13 : vector<512xf32> to vector<1x512xf32>
    %cst_8 = arith.constant 5.000000e-01 : f32
    %15 = vector.broadcast %cst_8 : f32 to vector<1x512xf32>
    %16 = arith.mulf %14, %15 : vector<1x512xf32>
    %c0_9 = arith.constant 0 : index
    %c0_10 = arith.constant 0 : index
    %17 = vector.load %arg4[%c0_9, %c0_10] : memref<1x512xf32, #tpu.memory_space<vmem>>, vector<1x512xf32>
    %18 = vector.broadcast %17 : vector<1x512xf32> to vector<2x512xf32>
    %19 = arith.mulf %18, %11 : vector<2x512xf32>
    %cst_11 = arith.constant 9.99999974E-6 : f32
    %20 = vector.broadcast %cst_11 : f32 to vector<1x512xf32>
    %21 = arith.addf %16, %20 : vector<1x512xf32>
    %22 = math.rsqrt %21 : vector<1x512xf32>
    %23 = vector.broadcast %22 : vector<1x512xf32> to vector<2x512xf32>
    %24 = arith.mulf %19, %23 : vector<2x512xf32>
    %c0_12 = arith.constant 0 : index
    %c0_13 = arith.constant 0 : index
    %25 = vector.load %arg5[%c0_12, %c0_13] : memref<1x512xf32, #tpu.memory_space<vmem>>, vector<1x512xf32>
    %26 = vector.broadcast %25 : vector<1x512xf32> to vector<2x512xf32>
    %27 = arith.addf %24, %26 : vector<2x512xf32>
    %cst_14 = arith.constant 0.000000e+00 : f32
    %28 = vector.broadcast %cst_14 : f32 to vector<2x512xf32>
    %29 = arith.maximumf %27, %28 : vector<2x512xf32>
    %30 = arith.truncf %29 : vector<2x512xf32> to vector<2x512xbf16>
    %c0_15 = arith.constant 0 : index
    %c0_16 = arith.constant 0 : index
    %31 = vector.load %arg6[%c0_15, %c0_16] : memref<2x512xbf16, #tpu.memory_space<vmem>>, vector<2x512xbf16>
    tpu.vector_store %arg6[%c0_15, %c0_16], %30 {strides = array<i32>} : memref<2x512xbf16, #tpu.memory_space<vmem>>, vector<2x512xbf16>,
    return
  }
  func.func @transform_0(%arg0: i32) -> (i32, i32) {
    %c0_i32 = arith.constant 0 : i32
    %c0_i32_0 = arith.constant 0 : i32
    %c0_i32_1 = arith.constant 0 : i32
    return %c0_i32, %c0_i32_0 : i32, i32
  }
  func.func @transform_1(%arg0: i32) -> (i32, i32) {
    %c0_i32 = arith.constant 0 : i32
    %c0_i32_0 = arith.constant 0 : i32
    return %c0_i32, %arg0 : i32, i32
  }
  func.func @transform_2(%arg0: i32) -> (i32, i32) {
    %c0_i32 = arith.constant 0 : i32
    %c0_i32_0 = arith.constant 0 : i32
    return %c0_i32, %arg0 : i32, i32
  }
  func.func @transform_3(%arg0: i32) -> (i32, i32) {
    %c0_i32 = arith.constant 0 : i32
    %c0_i32_0 = arith.constant 0 : i32
    return %c0_i32, %arg0 : i32, i32
  }
  func.func @transform_4(%arg0: i32) -> (i32, i32) {
    %c0_i32 = arith.constant 0 : i32
    %c0_i32_0 = arith.constant 0 : i32
    return %c0_i32, %arg0 : i32, i32
  }
  func.func @transform_5(%arg0: i32) -> (i32, i32) {
    %c0_i32 = arith.constant 0 : i32
    %c0_i32_0 = arith.constant 0 : i32
    return %c0_i32, %arg0 : i32, i32
  }
}

module attributes {stable_mosaic.version = 11 : i64} {
  func.func @_deconv_matmul_kernel(%arg0: i32, %arg1: i32, %arg2: memref<1x64x512xbf16, #tpu.memory_space<vmem>>, %arg3: memref<1x512x8xbf16, #tpu.memory_space<vmem>>, %arg4: memref<64x1xf32, #tpu.memory_space<vmem>>, %arg5: memref<1x64x8xbf16, #tpu.memory_space<vmem>>) attributes {dimension_semantics = [#tpu.dimension_semantics<parallel>, #tpu.dimension_semantics<parallel>], iteration_bounds = array<i64: 4, 1>, scalar_prefetch = 0 : i64, scratch_operands = 0 : i64, tpu.core_type = #tpu.core_type<tc>, window_params = [{transform_indices = @transform_0, window_bounds = array<i64: 1, 64, 512>}, {transform_indices = @transform_1, window_bounds = array<i64: 1, 512, 8>}, {pipeline_mode = #tpu.pipeline_mode<synchronous>, transform_indices = @transform_2, window_bounds = array<i64: 64, 1>}, {transform_indices = @transform_3, window_bounds = array<i64: 1, 64, 8>}]} {
    %c0 = arith.constant 0 : index
    %c0_0 = arith.constant 0 : index
    %c0_1 = arith.constant 0 : index
    %0 = vector.load %arg2[%c0, %c0_0, %c0_1] : memref<1x64x512xbf16, #tpu.memory_space<vmem>>, vector<1x64x512xbf16>
    %1 = vector.shape_cast %0 : vector<1x64x512xbf16> to vector<64x512xbf16>
    %c0_2 = arith.constant 0 : index
    %c0_3 = arith.constant 0 : index
    %c0_4 = arith.constant 0 : index
    %2 = vector.load %arg3[%c0_2, %c0_3, %c0_4] : memref<1x512x8xbf16, #tpu.memory_space<vmem>>, vector<1x512x8xbf16>
    %3 = vector.shape_cast %2 : vector<1x512x8xbf16> to vector<512x8xbf16>
    %cst = arith.constant dense<0.000000e+00> : vector<64x8xf32>
    %4 = tpu.matmul %1, %3, %cst {dimension_numbers = #tpu.dot_dimension_numbers<[1], [0], [0], [1], [0, 0, 1, 1], [], []>} : vector<64x512xbf16>, vector<512x8xbf16>, vector<64x8xf32> -> vector<64x8xf32>
    %c0_5 = arith.constant 0 : index
    %c0_6 = arith.constant 0 : index
    %5 = vector.load %arg4[%c0_5, %c0_6] : memref<64x1xf32, #tpu.memory_space<vmem>>, vector<64x1xf32>
    %6 = vector.broadcast %5 : vector<64x1xf32> to vector<64x8xf32>
    %7 = arith.addf %4, %6 : vector<64x8xf32>
    %8 = vector.shape_cast %7 : vector<64x8xf32> to vector<1x64x8xf32>
    %9 = arith.truncf %8 : vector<1x64x8xf32> to vector<1x64x8xbf16>
    %c0_7 = arith.constant 0 : index
    %c0_8 = arith.constant 0 : index
    %c0_9 = arith.constant 0 : index
    %10 = vector.load %arg5[%c0_7, %c0_8, %c0_9] : memref<1x64x8xbf16, #tpu.memory_space<vmem>>, vector<1x64x8xbf16>
    tpu.vector_store %arg5[%c0_7, %c0_8, %c0_9], %9 {strides = array<i32>} : memref<1x64x8xbf16, #tpu.memory_space<vmem>>, vector<1x64x8xbf16>,
    return
  }
  func.func @transform_0(%arg0: i32, %arg1: i32) -> (i32, i32, i32) {
    %c0_i32 = arith.constant 0 : i32
    %c0_i32_0 = arith.constant 0 : i32
    %c0_i32_1 = arith.constant 0 : i32
    return %arg0, %c0_i32, %c0_i32_0 : i32, i32, i32
  }
  func.func @transform_1(%arg0: i32, %arg1: i32) -> (i32, i32, i32) {
    %c0_i32 = arith.constant 0 : i32
    %c0_i32_0 = arith.constant 0 : i32
    return %arg0, %c0_i32, %arg1 : i32, i32, i32
  }
  func.func @transform_2(%arg0: i32, %arg1: i32) -> (i32, i32) {
    %c0_i32 = arith.constant 0 : i32
    %c0_i32_0 = arith.constant 0 : i32
    %c0_i32_1 = arith.constant 0 : i32
    return %c0_i32, %c0_i32_0 : i32, i32
  }
  func.func @transform_3(%arg0: i32, %arg1: i32) -> (i32, i32, i32) {
    %c0_i32 = arith.constant 0 : i32
    %c0_i32_0 = arith.constant 0 : i32
    return %arg0, %c0_i32, %arg1 : i32, i32, i32
  }
}

module attributes {stable_mosaic.version = 11 : i64} {
  func.func @_bn2d_reduce_kernel(%arg0: i32, %arg1: i32, %arg2: memref<1x64x8xbf16, #tpu.memory_space<vmem>>, %arg3: memref<64x1xf32, #tpu.memory_space<vmem>>, %arg4: memref<64x1xf32, #tpu.memory_space<vmem>>, %arg5: memref<64x1xf32, #tpu.memory_space<vmem>>, %arg6: memref<64x1xf32, #tpu.memory_space<vmem>>, %arg7: memref<64x1xf32, #tpu.memory_space<vmem>>, %arg8: memref<64x1xf32, #tpu.memory_space<vmem>>) attributes {dimension_semantics = [#tpu.dimension_semantics<arbitrary>, #tpu.dimension_semantics<arbitrary>], iteration_bounds = array<i64: 4, 1>, scalar_prefetch = 0 : i64, scratch_operands = 2 : i64, tpu.core_type = #tpu.core_type<tc>, window_params = [{transform_indices = @transform_0, window_bounds = array<i64: 1, 64, 8>}, {pipeline_mode = #tpu.pipeline_mode<synchronous>, transform_indices = @transform_1, window_bounds = array<i64: 64, 1>}, {pipeline_mode = #tpu.pipeline_mode<synchronous>, transform_indices = @transform_2, window_bounds = array<i64: 64, 1>}, {pipeline_mode = #tpu.pipeline_mode<synchronous>, transform_indices = @transform_3, window_bounds = array<i64: 64, 1>}, {pipeline_mode = #tpu.pipeline_mode<synchronous>, transform_indices = @transform_4, window_bounds = array<i64: 64, 1>}]} {
    %c0_i32 = arith.constant 0 : i32
    %0 = arith.cmpi eq, %arg0, %c0_i32 : i32
    %c0_i32_0 = arith.constant 0 : i32
    %1 = arith.cmpi eq, %arg1, %c0_i32_0 : i32
    %2 = arith.andi %0, %1 : i1
    %3 = arith.extui %2 : i1 to i32
    %c0_i32_1 = arith.constant 0 : i32
    %4 = arith.cmpi ne, %3, %c0_i32_1 : i32
    scf.if %4 {
      %cst_15 = arith.constant 0.000000e+00 : f32
      %24 = vector.broadcast %cst_15 : f32 to vector<64x1xf32>
      %c0_16 = arith.constant 0 : index
      %c0_17 = arith.constant 0 : index
      %25 = vector.load %arg7[%c0_16, %c0_17] : memref<64x1xf32, #tpu.memory_space<vmem>>, vector<64x1xf32>
      tpu.vector_store %arg7[%c0_16, %c0_17], %24 {strides = array<i32>} : memref<64x1xf32, #tpu.memory_space<vmem>>, vector<64x1xf32>,
      %cst_18 = arith.constant 0.000000e+00 : f32
      %26 = vector.broadcast %cst_18 : f32 to vector<64x1xf32>
      %c0_19 = arith.constant 0 : index
      %c0_20 = arith.constant 0 : index
      %27 = vector.load %arg8[%c0_19, %c0_20] : memref<64x1xf32, #tpu.memory_space<vmem>>, vector<64x1xf32>
      tpu.vector_store %arg8[%c0_19, %c0_20], %26 {strides = array<i32>} : memref<64x1xf32, #tpu.memory_space<vmem>>, vector<64x1xf32>,
    } else {
    }
    %c0 = arith.constant 0 : index
    %c0_2 = arith.constant 0 : index
    %c0_3 = arith.constant 0 : index
    %5 = vector.load %arg2[%c0, %c0_2, %c0_3] : memref<1x64x8xbf16, #tpu.memory_space<vmem>>, vector<1x64x8xbf16>
    %6 = vector.shape_cast %5 : vector<1x64x8xbf16> to vector<64x8xbf16>
    %7 = arith.extf %6 : vector<64x8xbf16> to vector<64x8xf32>
    %c0_4 = arith.constant 0 : index
    %c0_5 = arith.constant 0 : index
    %8 = vector.load %arg7[%c0_4, %c0_5] : memref<64x1xf32, #tpu.memory_space<vmem>>, vector<64x1xf32>
    %cst = arith.constant dense<0.000000e+00> : vector<64xf32>
    %9 = vector.multi_reduction <add>, %7, %cst [1] : vector<64x8xf32> to vector<64xf32>
    %10 = vector.shape_cast %9 : vector<64xf32> to vector<64x1xf32>
    %11 = arith.addf %8, %10 : vector<64x1xf32>
    %c0_6 = arith.constant 0 : index
    %c0_7 = arith.constant 0 : index
    %12 = vector.load %arg7[%c0_6, %c0_7] : memref<64x1xf32, #tpu.memory_space<vmem>>, vector<64x1xf32>
    tpu.vector_store %arg7[%c0_6, %c0_7], %11 {strides = array<i32>} : memref<64x1xf32, #tpu.memory_space<vmem>>, vector<64x1xf32>,
    %c0_8 = arith.constant 0 : index
    %c0_9 = arith.constant 0 : index
    %13 = vector.load %arg8[%c0_8, %c0_9] : memref<64x1xf32, #tpu.memory_space<vmem>>, vector<64x1xf32>
    %14 = arith.mulf %7, %7 : vector<64x8xf32>
    %cst_10 = arith.constant dense<0.000000e+00> : vector<64xf32>
    %15 = vector.multi_reduction <add>, %14, %cst_10 [1] : vector<64x8xf32> to vector<64xf32>
    %16 = vector.shape_cast %15 : vector<64xf32> to vector<64x1xf32>
    %17 = arith.addf %13, %16 : vector<64x1xf32>
    %c0_11 = arith.constant 0 : index
    %c0_12 = arith.constant 0 : index
    %18 = vector.load %arg8[%c0_11, %c0_12] : memref<64x1xf32, #tpu.memory_space<vmem>>, vector<64x1xf32>
    tpu.vector_store %arg8[%c0_11, %c0_12], %17 {strides = array<i32>} : memref<64x1xf32, #tpu.memory_space<vmem>>, vector<64x1xf32>,
    %c3_i32 = arith.constant 3 : i32
    %19 = arith.cmpi eq, %arg0, %c3_i32 : i32
    %c0_i32_13 = arith.constant 0 : i32
    %20 = arith.cmpi eq, %arg1, %c0_i32_13 : i32
    %21 = arith.andi %19, %20 : i1
    %22 = arith.extui %21 : i1 to i32
    %c0_i32_14 = arith.constant 0 : i32
    %23 = arith.cmpi ne, %22, %c0_i32_14 : i32
    scf.if %23 {
      %c0_15 = arith.constant 0 : index
      %c0_16 = arith.constant 0 : index
      %24 = vector.load %arg7[%c0_15, %c0_16] : memref<64x1xf32, #tpu.memory_space<vmem>>, vector<64x1xf32>
      %cst_17 = arith.constant 3.125000e-02 : f32
      %25 = vector.broadcast %cst_17 : f32 to vector<64x1xf32>
      %26 = arith.mulf %24, %25 : vector<64x1xf32>
      %c0_18 = arith.constant 0 : index
      %c0_19 = arith.constant 0 : index
      %27 = vector.load %arg8[%c0_18, %c0_19] : memref<64x1xf32, #tpu.memory_space<vmem>>, vector<64x1xf32>
      %cst_20 = arith.constant 3.125000e-02 : f32
      %28 = vector.broadcast %cst_20 : f32 to vector<64x1xf32>
      %29 = arith.mulf %27, %28 : vector<64x1xf32>
      %30 = arith.mulf %26, %26 : vector<64x1xf32>
      %31 = arith.subf %29, %30 : vector<64x1xf32>
      %c0_21 = arith.constant 0 : index
      %c0_22 = arith.constant 0 : index
      %32 = vector.load %arg3[%c0_21, %c0_22] : memref<64x1xf32, #tpu.memory_space<vmem>>, vector<64x1xf32>
      %cst_23 = arith.constant 9.99999974E-6 : f32
      %33 = vector.broadcast %cst_23 : f32 to vector<64x1xf32>
      %34 = arith.addf %31, %33 : vector<64x1xf32>
      %35 = math.rsqrt %34 : vector<64x1xf32>
      %36 = arith.mulf %32, %35 : vector<64x1xf32>
      %c0_24 = arith.constant 0 : index
      %c0_25 = arith.constant 0 : index
      %37 = vector.load %arg5[%c0_24, %c0_25] : memref<64x1xf32, #tpu.memory_space<vmem>>, vector<64x1xf32>
      tpu.vector_store %arg5[%c0_24, %c0_25], %36 {strides = array<i32>} : memref<64x1xf32, #tpu.memory_space<vmem>>, vector<64x1xf32>,
      %c0_26 = arith.constant 0 : index
      %c0_27 = arith.constant 0 : index
      %38 = vector.load %arg4[%c0_26, %c0_27] : memref<64x1xf32, #tpu.memory_space<vmem>>, vector<64x1xf32>
      %39 = arith.mulf %26, %36 : vector<64x1xf32>
      %40 = arith.subf %38, %39 : vector<64x1xf32>
      %c0_28 = arith.constant 0 : index
      %c0_29 = arith.constant 0 : index
      %41 = vector.load %arg6[%c0_28, %c0_29] : memref<64x1xf32, #tpu.memory_space<vmem>>, vector<64x1xf32>
      tpu.vector_store %arg6[%c0_28, %c0_29], %40 {strides = array<i32>} : memref<64x1xf32, #tpu.memory_space<vmem>>, vector<64x1xf32>,
    } else {
    }
    return
  }
  func.func @transform_0(%arg0: i32, %arg1: i32) -> (i32, i32, i32) {
    %c0_i32 = arith.constant 0 : i32
    %c0_i32_0 = arith.constant 0 : i32
    return %arg0, %c0_i32, %arg1 : i32, i32, i32
  }
  func.func @transform_1(%arg0: i32, %arg1: i32) -> (i32, i32) {
    %c0_i32 = arith.constant 0 : i32
    %c0_i32_0 = arith.constant 0 : i32
    %c0_i32_1 = arith.constant 0 : i32
    return %c0_i32, %c0_i32_0 : i32, i32
  }
  func.func @transform_2(%arg0: i32, %arg1: i32) -> (i32, i32) {
    %c0_i32 = arith.constant 0 : i32
    %c0_i32_0 = arith.constant 0 : i32
    %c0_i32_1 = arith.constant 0 : i32
    return %c0_i32, %c0_i32_0 : i32, i32
  }
  func.func @transform_3(%arg0: i32, %arg1: i32) -> (i32, i32) {
    %c0_i32 = arith.constant 0 : i32
    %c0_i32_0 = arith.constant 0 : i32
    %c0_i32_1 = arith.constant 0 : i32
    return %c0_i32, %c0_i32_0 : i32, i32
  }
  func.func @transform_4(%arg0: i32, %arg1: i32) -> (i32, i32) {
    %c0_i32 = arith.constant 0 : i32
    %c0_i32_0 = arith.constant 0 : i32
    %c0_i32_1 = arith.constant 0 : i32
    return %c0_i32, %c0_i32_0 : i32, i32
  }
}

module attributes {stable_mosaic.version = 11 : i64} {
  func.func @_bn2d_norm_kernel(%arg0: i32, %arg1: i32, %arg2: memref<1x64x8xbf16, #tpu.memory_space<vmem>>, %arg3: memref<64x1xf32, #tpu.memory_space<vmem>>, %arg4: memref<64x1xf32, #tpu.memory_space<vmem>>, %arg5: memref<1x64x8xbf16, #tpu.memory_space<vmem>>) attributes {dimension_semantics = [#tpu.dimension_semantics<parallel>, #tpu.dimension_semantics<parallel>], iteration_bounds = array<i64: 4, 1>, scalar_prefetch = 0 : i64, scratch_operands = 0 : i64, tpu.core_type = #tpu.core_type<tc>, window_params = [{transform_indices = @transform_0, window_bounds = array<i64: 1, 64, 8>}, {pipeline_mode = #tpu.pipeline_mode<synchronous>, transform_indices = @transform_1, window_bounds = array<i64: 64, 1>}, {pipeline_mode = #tpu.pipeline_mode<synchronous>, transform_indices = @transform_2, window_bounds = array<i64: 64, 1>}, {transform_indices = @transform_3, window_bounds = array<i64: 1, 64, 8>}]} {
    %c0 = arith.constant 0 : index
    %c0_0 = arith.constant 0 : index
    %c0_1 = arith.constant 0 : index
    %0 = vector.load %arg2[%c0, %c0_0, %c0_1] : memref<1x64x8xbf16, #tpu.memory_space<vmem>>, vector<1x64x8xbf16>
    %1 = vector.shape_cast %0 : vector<1x64x8xbf16> to vector<64x8xbf16>
    %2 = arith.extf %1 : vector<64x8xbf16> to vector<64x8xf32>
    %c0_2 = arith.constant 0 : index
    %c0_3 = arith.constant 0 : index
    %3 = vector.load %arg3[%c0_2, %c0_3] : memref<64x1xf32, #tpu.memory_space<vmem>>, vector<64x1xf32>
    %4 = vector.broadcast %3 : vector<64x1xf32> to vector<64x8xf32>
    %5 = arith.mulf %2, %4 : vector<64x8xf32>
    %c0_4 = arith.constant 0 : index
    %c0_5 = arith.constant 0 : index
    %6 = vector.load %arg4[%c0_4, %c0_5] : memref<64x1xf32, #tpu.memory_space<vmem>>, vector<64x1xf32>
    %7 = vector.broadcast %6 : vector<64x1xf32> to vector<64x8xf32>
    %8 = arith.addf %5, %7 : vector<64x8xf32>
    %cst = arith.constant 0.000000e+00 : f32
    %9 = vector.broadcast %cst : f32 to vector<64x8xf32>
    %10 = arith.maximumf %8, %9 : vector<64x8xf32>
    %11 = vector.shape_cast %10 : vector<64x8xf32> to vector<1x64x8xf32>
    %12 = arith.truncf %11 : vector<1x64x8xf32> to vector<1x64x8xbf16>
    %c0_6 = arith.constant 0 : index
    %c0_7 = arith.constant 0 : index
    %c0_8 = arith.constant 0 : index
    %13 = vector.load %arg5[%c0_6, %c0_7, %c0_8] : memref<1x64x8xbf16, #tpu.memory_space<vmem>>, vector<1x64x8xbf16>
    tpu.vector_store %arg5[%c0_6, %c0_7, %c0_8], %12 {strides = array<i32>} : memref<1x64x8xbf16, #tpu.memory_space<vmem>>, vector<1x64x8xbf16>,
    return
  }
  func.func @transform_0(%arg0: i32, %arg1: i32) -> (i32, i32, i32) {
    %c0_i32 = arith.constant 0 : i32
    %c0_i32_0 = arith.constant 0 : i32
    return %arg0, %c0_i32, %arg1 : i32, i32, i32
  }
  func.func @transform_1(%arg0: i32, %arg1: i32) -> (i32, i32) {
    %c0_i32 = arith.constant 0 : i32
    %c0_i32_0 = arith.constant 0 : i32
    %c0_i32_1 = arith.constant 0 : i32
    return %c0_i32, %c0_i32_0 : i32, i32
  }
  func.func @transform_2(%arg0: i32, %arg1: i32) -> (i32, i32) {
    %c0_i32 = arith.constant 0 : i32
    %c0_i32_0 = arith.constant 0 : i32
    %c0_i32_1 = arith.constant 0 : i32
    return %c0_i32, %c0_i32_0 : i32, i32
  }
  func.func @transform_3(%arg0: i32, %arg1: i32) -> (i32, i32, i32) {
    %c0_i32 = arith.constant 0 : i32
    %c0_i32_0 = arith.constant 0 : i32
    return %arg0, %c0_i32, %arg1 : i32, i32, i32
  }
}

module attributes {stable_mosaic.version = 11 : i64} {
  func.func @_deconv_matmul_kernel(%arg0: i32, %arg1: i32, %arg2: memref<1x32x256xbf16, #tpu.memory_space<vmem>>, %arg3: memref<1x256x32xbf16, #tpu.memory_space<vmem>>, %arg4: memref<32x1xf32, #tpu.memory_space<vmem>>, %arg5: memref<1x32x32xbf16, #tpu.memory_space<vmem>>) attributes {dimension_semantics = [#tpu.dimension_semantics<parallel>, #tpu.dimension_semantics<parallel>], iteration_bounds = array<i64: 4, 1>, scalar_prefetch = 0 : i64, scratch_operands = 0 : i64, tpu.core_type = #tpu.core_type<tc>, window_params = [{transform_indices = @transform_0, window_bounds = array<i64: 1, 32, 256>}, {transform_indices = @transform_1, window_bounds = array<i64: 1, 256, 32>}, {pipeline_mode = #tpu.pipeline_mode<synchronous>, transform_indices = @transform_2, window_bounds = array<i64: 32, 1>}, {transform_indices = @transform_3, window_bounds = array<i64: 1, 32, 32>}]} {
    %c0 = arith.constant 0 : index
    %c0_0 = arith.constant 0 : index
    %c0_1 = arith.constant 0 : index
    %0 = vector.load %arg2[%c0, %c0_0, %c0_1] : memref<1x32x256xbf16, #tpu.memory_space<vmem>>, vector<1x32x256xbf16>
    %1 = vector.shape_cast %0 : vector<1x32x256xbf16> to vector<32x256xbf16>
    %c0_2 = arith.constant 0 : index
    %c0_3 = arith.constant 0 : index
    %c0_4 = arith.constant 0 : index
    %2 = vector.load %arg3[%c0_2, %c0_3, %c0_4] : memref<1x256x32xbf16, #tpu.memory_space<vmem>>, vector<1x256x32xbf16>
    %3 = vector.shape_cast %2 : vector<1x256x32xbf16> to vector<256x32xbf16>
    %cst = arith.constant dense<0.000000e+00> : vector<32x32xf32>
    %4 = tpu.matmul %1, %3, %cst {dimension_numbers = #tpu.dot_dimension_numbers<[1], [0], [0], [1], [0, 0, 1, 1], [], []>} : vector<32x256xbf16>, vector<256x32xbf16>, vector<32x32xf32> -> vector<32x32xf32>
    %c0_5 = arith.constant 0 : index
    %c0_6 = arith.constant 0 : index
    %5 = vector.load %arg4[%c0_5, %c0_6] : memref<32x1xf32, #tpu.memory_space<vmem>>, vector<32x1xf32>
    %6 = vector.broadcast %5 : vector<32x1xf32> to vector<32x32xf32>
    %7 = arith.addf %4, %6 : vector<32x32xf32>
    %8 = vector.shape_cast %7 : vector<32x32xf32> to vector<1x32x32xf32>
    %9 = arith.truncf %8 : vector<1x32x32xf32> to vector<1x32x32xbf16>
    %c0_7 = arith.constant 0 : index
    %c0_8 = arith.constant 0 : index
    %c0_9 = arith.constant 0 : index
    %10 = vector.load %arg5[%c0_7, %c0_8, %c0_9] : memref<1x32x32xbf16, #tpu.memory_space<vmem>>, vector<1x32x32xbf16>
    tpu.vector_store %arg5[%c0_7, %c0_8, %c0_9], %9 {strides = array<i32>} : memref<1x32x32xbf16, #tpu.memory_space<vmem>>, vector<1x32x32xbf16>,
    return
  }
  func.func @transform_0(%arg0: i32, %arg1: i32) -> (i32, i32, i32) {
    %c0_i32 = arith.constant 0 : i32
    %c0_i32_0 = arith.constant 0 : i32
    %c0_i32_1 = arith.constant 0 : i32
    return %arg0, %c0_i32, %c0_i32_0 : i32, i32, i32
  }
  func.func @transform_1(%arg0: i32, %arg1: i32) -> (i32, i32, i32) {
    %c0_i32 = arith.constant 0 : i32
    %c0_i32_0 = arith.constant 0 : i32
    return %arg0, %c0_i32, %arg1 : i32, i32, i32
  }
  func.func @transform_2(%arg0: i32, %arg1: i32) -> (i32, i32) {
    %c0_i32 = arith.constant 0 : i32
    %c0_i32_0 = arith.constant 0 : i32
    %c0_i32_1 = arith.constant 0 : i32
    return %c0_i32, %c0_i32_0 : i32, i32
  }
  func.func @transform_3(%arg0: i32, %arg1: i32) -> (i32, i32, i32) {
    %c0_i32 = arith.constant 0 : i32
    %c0_i32_0 = arith.constant 0 : i32
    return %arg0, %c0_i32, %arg1 : i32, i32, i32
  }
}

module attributes {stable_mosaic.version = 11 : i64} {
  func.func @_bn2d_reduce_kernel(%arg0: i32, %arg1: i32, %arg2: memref<1x32x32xbf16, #tpu.memory_space<vmem>>, %arg3: memref<32x1xf32, #tpu.memory_space<vmem>>, %arg4: memref<32x1xf32, #tpu.memory_space<vmem>>, %arg5: memref<32x1xf32, #tpu.memory_space<vmem>>, %arg6: memref<32x1xf32, #tpu.memory_space<vmem>>, %arg7: memref<32x1xf32, #tpu.memory_space<vmem>>, %arg8: memref<32x1xf32, #tpu.memory_space<vmem>>) attributes {dimension_semantics = [#tpu.dimension_semantics<arbitrary>, #tpu.dimension_semantics<arbitrary>], iteration_bounds = array<i64: 4, 1>, scalar_prefetch = 0 : i64, scratch_operands = 2 : i64, tpu.core_type = #tpu.core_type<tc>, window_params = [{transform_indices = @transform_0, window_bounds = array<i64: 1, 32, 32>}, {pipeline_mode = #tpu.pipeline_mode<synchronous>, transform_indices = @transform_1, window_bounds = array<i64: 32, 1>}, {pipeline_mode = #tpu.pipeline_mode<synchronous>, transform_indices = @transform_2, window_bounds = array<i64: 32, 1>}, {pipeline_mode = #tpu.pipeline_mode<synchronous>, transform_indices = @transform_3, window_bounds = array<i64: 32, 1>}, {pipeline_mode = #tpu.pipeline_mode<synchronous>, transform_indices = @transform_4, window_bounds = array<i64: 32, 1>}]} {
    %c0_i32 = arith.constant 0 : i32
    %0 = arith.cmpi eq, %arg0, %c0_i32 : i32
    %c0_i32_0 = arith.constant 0 : i32
    %1 = arith.cmpi eq, %arg1, %c0_i32_0 : i32
    %2 = arith.andi %0, %1 : i1
    %3 = arith.extui %2 : i1 to i32
    %c0_i32_1 = arith.constant 0 : i32
    %4 = arith.cmpi ne, %3, %c0_i32_1 : i32
    scf.if %4 {
      %cst_15 = arith.constant 0.000000e+00 : f32
      %24 = vector.broadcast %cst_15 : f32 to vector<32x1xf32>
      %c0_16 = arith.constant 0 : index
      %c0_17 = arith.constant 0 : index
      %25 = vector.load %arg7[%c0_16, %c0_17] : memref<32x1xf32, #tpu.memory_space<vmem>>, vector<32x1xf32>
      tpu.vector_store %arg7[%c0_16, %c0_17], %24 {strides = array<i32>} : memref<32x1xf32, #tpu.memory_space<vmem>>, vector<32x1xf32>,
      %cst_18 = arith.constant 0.000000e+00 : f32
      %26 = vector.broadcast %cst_18 : f32 to vector<32x1xf32>
      %c0_19 = arith.constant 0 : index
      %c0_20 = arith.constant 0 : index
      %27 = vector.load %arg8[%c0_19, %c0_20] : memref<32x1xf32, #tpu.memory_space<vmem>>, vector<32x1xf32>
      tpu.vector_store %arg8[%c0_19, %c0_20], %26 {strides = array<i32>} : memref<32x1xf32, #tpu.memory_space<vmem>>, vector<32x1xf32>,
    } else {
    }
    %c0 = arith.constant 0 : index
    %c0_2 = arith.constant 0 : index
    %c0_3 = arith.constant 0 : index
    %5 = vector.load %arg2[%c0, %c0_2, %c0_3] : memref<1x32x32xbf16, #tpu.memory_space<vmem>>, vector<1x32x32xbf16>
    %6 = vector.shape_cast %5 : vector<1x32x32xbf16> to vector<32x32xbf16>
    %7 = arith.extf %6 : vector<32x32xbf16> to vector<32x32xf32>
    %c0_4 = arith.constant 0 : index
    %c0_5 = arith.constant 0 : index
    %8 = vector.load %arg7[%c0_4, %c0_5] : memref<32x1xf32, #tpu.memory_space<vmem>>, vector<32x1xf32>
    %cst = arith.constant dense<0.000000e+00> : vector<32xf32>
    %9 = vector.multi_reduction <add>, %7, %cst [1] : vector<32x32xf32> to vector<32xf32>
    %10 = vector.shape_cast %9 : vector<32xf32> to vector<32x1xf32>
    %11 = arith.addf %8, %10 : vector<32x1xf32>
    %c0_6 = arith.constant 0 : index
    %c0_7 = arith.constant 0 : index
    %12 = vector.load %arg7[%c0_6, %c0_7] : memref<32x1xf32, #tpu.memory_space<vmem>>, vector<32x1xf32>
    tpu.vector_store %arg7[%c0_6, %c0_7], %11 {strides = array<i32>} : memref<32x1xf32, #tpu.memory_space<vmem>>, vector<32x1xf32>,
    %c0_8 = arith.constant 0 : index
    %c0_9 = arith.constant 0 : index
    %13 = vector.load %arg8[%c0_8, %c0_9] : memref<32x1xf32, #tpu.memory_space<vmem>>, vector<32x1xf32>
    %14 = arith.mulf %7, %7 : vector<32x32xf32>
    %cst_10 = arith.constant dense<0.000000e+00> : vector<32xf32>
    %15 = vector.multi_reduction <add>, %14, %cst_10 [1] : vector<32x32xf32> to vector<32xf32>
    %16 = vector.shape_cast %15 : vector<32xf32> to vector<32x1xf32>
    %17 = arith.addf %13, %16 : vector<32x1xf32>
    %c0_11 = arith.constant 0 : index
    %c0_12 = arith.constant 0 : index
    %18 = vector.load %arg8[%c0_11, %c0_12] : memref<32x1xf32, #tpu.memory_space<vmem>>, vector<32x1xf32>
    tpu.vector_store %arg8[%c0_11, %c0_12], %17 {strides = array<i32>} : memref<32x1xf32, #tpu.memory_space<vmem>>, vector<32x1xf32>,
    %c3_i32 = arith.constant 3 : i32
    %19 = arith.cmpi eq, %arg0, %c3_i32 : i32
    %c0_i32_13 = arith.constant 0 : i32
    %20 = arith.cmpi eq, %arg1, %c0_i32_13 : i32
    %21 = arith.andi %19, %20 : i1
    %22 = arith.extui %21 : i1 to i32
    %c0_i32_14 = arith.constant 0 : i32
    %23 = arith.cmpi ne, %22, %c0_i32_14 : i32
    scf.if %23 {
      %c0_15 = arith.constant 0 : index
      %c0_16 = arith.constant 0 : index
      %24 = vector.load %arg7[%c0_15, %c0_16] : memref<32x1xf32, #tpu.memory_space<vmem>>, vector<32x1xf32>
      %cst_17 = arith.constant 7.812500e-03 : f32
      %25 = vector.broadcast %cst_17 : f32 to vector<32x1xf32>
      %26 = arith.mulf %24, %25 : vector<32x1xf32>
      %c0_18 = arith.constant 0 : index
      %c0_19 = arith.constant 0 : index
      %27 = vector.load %arg8[%c0_18, %c0_19] : memref<32x1xf32, #tpu.memory_space<vmem>>, vector<32x1xf32>
      %cst_20 = arith.constant 7.812500e-03 : f32
      %28 = vector.broadcast %cst_20 : f32 to vector<32x1xf32>
      %29 = arith.mulf %27, %28 : vector<32x1xf32>
      %30 = arith.mulf %26, %26 : vector<32x1xf32>
      %31 = arith.subf %29, %30 : vector<32x1xf32>
      %c0_21 = arith.constant 0 : index
      %c0_22 = arith.constant 0 : index
      %32 = vector.load %arg3[%c0_21, %c0_22] : memref<32x1xf32, #tpu.memory_space<vmem>>, vector<32x1xf32>
      %cst_23 = arith.constant 9.99999974E-6 : f32
      %33 = vector.broadcast %cst_23 : f32 to vector<32x1xf32>
      %34 = arith.addf %31, %33 : vector<32x1xf32>
      %35 = math.rsqrt %34 : vector<32x1xf32>
      %36 = arith.mulf %32, %35 : vector<32x1xf32>
      %c0_24 = arith.constant 0 : index
      %c0_25 = arith.constant 0 : index
      %37 = vector.load %arg5[%c0_24, %c0_25] : memref<32x1xf32, #tpu.memory_space<vmem>>, vector<32x1xf32>
      tpu.vector_store %arg5[%c0_24, %c0_25], %36 {strides = array<i32>} : memref<32x1xf32, #tpu.memory_space<vmem>>, vector<32x1xf32>,
      %c0_26 = arith.constant 0 : index
      %c0_27 = arith.constant 0 : index
      %38 = vector.load %arg4[%c0_26, %c0_27] : memref<32x1xf32, #tpu.memory_space<vmem>>, vector<32x1xf32>
      %39 = arith.mulf %26, %36 : vector<32x1xf32>
      %40 = arith.subf %38, %39 : vector<32x1xf32>
      %c0_28 = arith.constant 0 : index
      %c0_29 = arith.constant 0 : index
      %41 = vector.load %arg6[%c0_28, %c0_29] : memref<32x1xf32, #tpu.memory_space<vmem>>, vector<32x1xf32>
      tpu.vector_store %arg6[%c0_28, %c0_29], %40 {strides = array<i32>} : memref<32x1xf32, #tpu.memory_space<vmem>>, vector<32x1xf32>,
    } else {
    }
    return
  }
  func.func @transform_0(%arg0: i32, %arg1: i32) -> (i32, i32, i32) {
    %c0_i32 = arith.constant 0 : i32
    %c0_i32_0 = arith.constant 0 : i32
    return %arg0, %c0_i32, %arg1 : i32, i32, i32
  }
  func.func @transform_1(%arg0: i32, %arg1: i32) -> (i32, i32) {
    %c0_i32 = arith.constant 0 : i32
    %c0_i32_0 = arith.constant 0 : i32
    %c0_i32_1 = arith.constant 0 : i32
    return %c0_i32, %c0_i32_0 : i32, i32
  }
  func.func @transform_2(%arg0: i32, %arg1: i32) -> (i32, i32) {
    %c0_i32 = arith.constant 0 : i32
    %c0_i32_0 = arith.constant 0 : i32
    %c0_i32_1 = arith.constant 0 : i32
    return %c0_i32, %c0_i32_0 : i32, i32
  }
  func.func @transform_3(%arg0: i32, %arg1: i32) -> (i32, i32) {
    %c0_i32 = arith.constant 0 : i32
    %c0_i32_0 = arith.constant 0 : i32
    %c0_i32_1 = arith.constant 0 : i32
    return %c0_i32, %c0_i32_0 : i32, i32
  }
  func.func @transform_4(%arg0: i32, %arg1: i32) -> (i32, i32) {
    %c0_i32 = arith.constant 0 : i32
    %c0_i32_0 = arith.constant 0 : i32
    %c0_i32_1 = arith.constant 0 : i32
    return %c0_i32, %c0_i32_0 : i32, i32
  }
}

module attributes {stable_mosaic.version = 11 : i64} {
  func.func @_bn2d_norm_kernel(%arg0: i32, %arg1: i32, %arg2: memref<1x32x32xbf16, #tpu.memory_space<vmem>>, %arg3: memref<32x1xf32, #tpu.memory_space<vmem>>, %arg4: memref<32x1xf32, #tpu.memory_space<vmem>>, %arg5: memref<1x32x32xbf16, #tpu.memory_space<vmem>>) attributes {dimension_semantics = [#tpu.dimension_semantics<parallel>, #tpu.dimension_semantics<parallel>], iteration_bounds = array<i64: 4, 1>, scalar_prefetch = 0 : i64, scratch_operands = 0 : i64, tpu.core_type = #tpu.core_type<tc>, window_params = [{transform_indices = @transform_0, window_bounds = array<i64: 1, 32, 32>}, {pipeline_mode = #tpu.pipeline_mode<synchronous>, transform_indices = @transform_1, window_bounds = array<i64: 32, 1>}, {pipeline_mode = #tpu.pipeline_mode<synchronous>, transform_indices = @transform_2, window_bounds = array<i64: 32, 1>}, {transform_indices = @transform_3, window_bounds = array<i64: 1, 32, 32>}]} {
    %c0 = arith.constant 0 : index
    %c0_0 = arith.constant 0 : index
    %c0_1 = arith.constant 0 : index
    %0 = vector.load %arg2[%c0, %c0_0, %c0_1] : memref<1x32x32xbf16, #tpu.memory_space<vmem>>, vector<1x32x32xbf16>
    %1 = vector.shape_cast %0 : vector<1x32x32xbf16> to vector<32x32xbf16>
    %2 = arith.extf %1 : vector<32x32xbf16> to vector<32x32xf32>
    %c0_2 = arith.constant 0 : index
    %c0_3 = arith.constant 0 : index
    %3 = vector.load %arg3[%c0_2, %c0_3] : memref<32x1xf32, #tpu.memory_space<vmem>>, vector<32x1xf32>
    %4 = vector.broadcast %3 : vector<32x1xf32> to vector<32x32xf32>
    %5 = arith.mulf %2, %4 : vector<32x32xf32>
    %c0_4 = arith.constant 0 : index
    %c0_5 = arith.constant 0 : index
    %6 = vector.load %arg4[%c0_4, %c0_5] : memref<32x1xf32, #tpu.memory_space<vmem>>, vector<32x1xf32>
    %7 = vector.broadcast %6 : vector<32x1xf32> to vector<32x32xf32>
    %8 = arith.addf %5, %7 : vector<32x32xf32>
    %cst = arith.constant 0.000000e+00 : f32
    %9 = vector.broadcast %cst : f32 to vector<32x32xf32>
    %10 = arith.maximumf %8, %9 : vector<32x32xf32>
    %11 = vector.shape_cast %10 : vector<32x32xf32> to vector<1x32x32xf32>
    %12 = arith.truncf %11 : vector<1x32x32xf32> to vector<1x32x32xbf16>
    %c0_6 = arith.constant 0 : index
    %c0_7 = arith.constant 0 : index
    %c0_8 = arith.constant 0 : index
    %13 = vector.load %arg5[%c0_6, %c0_7, %c0_8] : memref<1x32x32xbf16, #tpu.memory_space<vmem>>, vector<1x32x32xbf16>
    tpu.vector_store %arg5[%c0_6, %c0_7, %c0_8], %12 {strides = array<i32>} : memref<1x32x32xbf16, #tpu.memory_space<vmem>>, vector<1x32x32xbf16>,
    return
  }
  func.func @transform_0(%arg0: i32, %arg1: i32) -> (i32, i32, i32) {
    %c0_i32 = arith.constant 0 : i32
    %c0_i32_0 = arith.constant 0 : i32
    return %arg0, %c0_i32, %arg1 : i32, i32, i32
  }
  func.func @transform_1(%arg0: i32, %arg1: i32) -> (i32, i32) {
    %c0_i32 = arith.constant 0 : i32
    %c0_i32_0 = arith.constant 0 : i32
    %c0_i32_1 = arith.constant 0 : i32
    return %c0_i32, %c0_i32_0 : i32, i32
  }
  func.func @transform_2(%arg0: i32, %arg1: i32) -> (i32, i32) {
    %c0_i32 = arith.constant 0 : i32
    %c0_i32_0 = arith.constant 0 : i32
    %c0_i32_1 = arith.constant 0 : i32
    return %c0_i32, %c0_i32_0 : i32, i32
  }
  func.func @transform_3(%arg0: i32, %arg1: i32) -> (i32, i32, i32) {
    %c0_i32 = arith.constant 0 : i32
    %c0_i32_0 = arith.constant 0 : i32
    return %arg0, %c0_i32, %arg1 : i32, i32, i32
  }
}

module attributes {stable_mosaic.version = 11 : i64} {
  func.func @_deconv_matmul_kernel(%arg0: i32, %arg1: i32, %arg2: memref<1x1x128xbf16, #tpu.memory_space<vmem>>, %arg3: memref<1x128x128xbf16, #tpu.memory_space<vmem>>, %arg4: memref<1x1xf32, #tpu.memory_space<vmem>>, %arg5: memref<1x1x128xf32, #tpu.memory_space<vmem>>) attributes {dimension_semantics = [#tpu.dimension_semantics<parallel>, #tpu.dimension_semantics<parallel>], iteration_bounds = array<i64: 4, 1>, scalar_prefetch = 0 : i64, scratch_operands = 0 : i64, tpu.core_type = #tpu.core_type<tc>, window_params = [{transform_indices = @transform_0, window_bounds = array<i64: 1, 1, 128>}, {transform_indices = @transform_1, window_bounds = array<i64: 1, 128, 128>}, {pipeline_mode = #tpu.pipeline_mode<synchronous>, transform_indices = @transform_2, window_bounds = array<i64: 1, 1>}, {transform_indices = @transform_3, window_bounds = array<i64: 1, 1, 128>}]} {
    %c0 = arith.constant 0 : index
    %c0_0 = arith.constant 0 : index
    %c0_1 = arith.constant 0 : index
    %0 = vector.load %arg2[%c0, %c0_0, %c0_1] : memref<1x1x128xbf16, #tpu.memory_space<vmem>>, vector<1x1x128xbf16>
    %1 = vector.shape_cast %0 : vector<1x1x128xbf16> to vector<1x128xbf16>
    %c0_2 = arith.constant 0 : index
    %c0_3 = arith.constant 0 : index
    %c0_4 = arith.constant 0 : index
    %2 = vector.load %arg3[%c0_2, %c0_3, %c0_4] : memref<1x128x128xbf16, #tpu.memory_space<vmem>>, vector<1x128x128xbf16>
    %3 = vector.shape_cast %2 : vector<1x128x128xbf16> to vector<128x128xbf16>
    %cst = arith.constant dense<0.000000e+00> : vector<1x128xf32>
    %4 = tpu.matmul %1, %3, %cst {dimension_numbers = #tpu.dot_dimension_numbers<[1], [0], [0], [1], [0, 0, 1, 1], [], []>} : vector<1x128xbf16>, vector<128x128xbf16>, vector<1x128xf32> -> vector<1x128xf32>
    %c0_5 = arith.constant 0 : index
    %c0_6 = arith.constant 0 : index
    %5 = vector.load %arg4[%c0_5, %c0_6] : memref<1x1xf32, #tpu.memory_space<vmem>>, vector<1x1xf32>
    %6 = vector.broadcast %5 : vector<1x1xf32> to vector<1x128xf32>
    %7 = arith.addf %4, %6 : vector<1x128xf32>
    %8 = math.tanh %7 : vector<1x128xf32>
    %9 = vector.shape_cast %8 : vector<1x128xf32> to vector<1x1x128xf32>
    %c0_7 = arith.constant 0 : index
    %c0_8 = arith.constant 0 : index
    %c0_9 = arith.constant 0 : index
    %10 = vector.load %arg5[%c0_7, %c0_8, %c0_9] : memref<1x1x128xf32, #tpu.memory_space<vmem>>, vector<1x1x128xf32>
    tpu.vector_store %arg5[%c0_7, %c0_8, %c0_9], %9 {strides = array<i32>} : memref<1x1x128xf32, #tpu.memory_space<vmem>>, vector<1x1x128xf32>,
    return
  }
  func.func @transform_0(%arg0: i32, %arg1: i32) -> (i32, i32, i32) {
    %c0_i32 = arith.constant 0 : i32
    %c0_i32_0 = arith.constant 0 : i32
    %c0_i32_1 = arith.constant 0 : i32
    return %arg0, %c0_i32, %c0_i32_0 : i32, i32, i32
  }
  func.func @transform_1(%arg0: i32, %arg1: i32) -> (i32, i32, i32) {
    %c0_i32 = arith.constant 0 : i32
    %c0_i32_0 = arith.constant 0 : i32
    return %arg0, %c0_i32, %arg1 : i32, i32, i32
  }
  func.func @transform_2(%arg0: i32, %arg1: i32) -> (i32, i32) {
    %c0_i32 = arith.constant 0 : i32
    %c0_i32_0 = arith.constant 0 : i32
    %c0_i32_1 = arith.constant 0 : i32
    return %c0_i32, %c0_i32_0 : i32, i32
  }
  func.func @transform_3(%arg0: i32, %arg1: i32) -> (i32, i32, i32) {
    %c0_i32 = arith.constant 0 : i32
    %c0_i32_0 = arith.constant 0 : i32
    return %arg0, %c0_i32, %arg1 : i32, i32, i32
  }
}

</mosaic_0001>

<bundles_post_ra>
// kernel: generator_mwm_forward.10
= control target key start
LH: loop header
LB: loop body
LE: loop exit
PB: predicated region body
PF: predicated region fallthrough
CT: control target
= control target key end

     0   :  { %s1416_s0 = inlined_call_operand.vmem [shape: bf16[2,22], index: 0, kind: input, shape index: {}]   ;;  %s1417_s1 = inlined_call_operand.hbm [shape: bf16[22,1024], index: 1, kind: input, shape index: {}]   ;;  %s1418_s2 = inlined_call_operand.hbm [shape: f32[1,1024], index: 2, kind: input, shape index: {}]   ;;  %s1419_s3 = inlined_call_operand.hbm [shape: f32[1,1024], index: 3, kind: input, shape index: {}]   ;;  %s1420_s4 = inlined_call_operand.hbm [shape: f32[1,1024], index: 4, kind: input, shape index: {}]   ;;  %s1421_s5 = inlined_call_operand.vmem [shape: bf16[2,1024], index: 5, kind: output, shape index: {}]  }
   0x1   :  { %1425 = sst [smem:[#allocation12_spill]] %s1417_s1 }
   0x2   :  { %1426 = sst [smem:[#allocation13_spill]] %s1418_s2 }
   0x3   :  { %10 = vsyncpa [#allocation3], 0 }
   0x4   :  { %12 = vsyncpa [#allocation3 + $0x1], 0 }
   0x5   :  { %13 = vsyncpa [#allocation5], 0 }
   0x6   :  { %15 = vsyncpa [#allocation5 + $0x1], 0 }
   0x7   :  { %16 = vsyncpa [#allocation8], 0 }
   0x8   :  { %18 = vsyncpa [#allocation8 + $0x1], 0  ;;  %s1143_s18 = smov 0   ;;  %s1145_s19 = smov 0  }
   0x9   :  { %s1147_s20 = smov 0   ;;  %s1149_s21 = smov 0  }
   0xa LB: > { %s1162_s22 = sadd.s32 4294967295, %s1102_s21   ;;  %s1165_s23 = sadd.s32 1, %s1102_s21   ;;  %s1102_s21 = sphi %s1149_s21, %s1440_s21   ;;  %s1098_s20 = sphi %s1147_s20, %s1439_s20   ;;  %s1094_s19 = sphi %s1145_s19, %s1438_s19   ;;  %s1090_s18 = sphi %s1143_s18, %s1437_s18  }
   0xb   : > { %s49_s24 = ssub.s32 %s1102_s21, %s1165_s23  ;;  %s52_s25 = sadd.s32 1, %s1098_s20 }
   0xc   : > { %p50_p0 = scmp.eq.s32.totalorder %s49_s24, 0  ;;  %p59_p1 = scmp.ne.s32.totalorder %s1098_s20, %s1094_s19 }
   0xd   : > { %p60_p2 = scmp.eq.s32.totalorder %s1102_s21, 0  ;;  %p65_p3 = scmp.ne.s32.totalorder %s1094_s19, %s1090_s18 }
   0xe   : > { %s1175_s26 = scalar_select %p50_p0, %s1098_s20, %s52_s25  }
   0xf   : > { %p61_p4 = por %p60_p2, %p59_p1  ;;  %p66_p5 = scmp.eq.s32.totalorder %s1162_s22, 0 }
  0x10   : > { %p884_p6 = scmp.lt.s32.totalorder %s1102_s21, 2  ;;  %s1184_s28 = sand.u32 1, %s1098_s20  }
  0x11   : > { %p1179_p7 = por %p66_p5, %p65_p3  ;;  %s217_s30 = sand.u32 1, %s1102_s21  }
  0x12   : > { %p1186_p8 = pnand %p884_p6, %p61_p4  ;;  %s1192_s6 = sshll.u32 %s1184_s28, 2 }
  0x13   : > { %s1427_s27 = scalar_select %p1179_p7, 1, 0 }
  0x14   : > { %s1428_s29 = scalar_select %p1186_p8, 1, 0 }
  0x15   : > { %s1195_s7 = sshll.u32 %s1102_s21, 6  ;;  %s221_s8 = scalar_lea.vmem [#allocation4], %s1192_s6 }
  0x16   : > { %s229_s9 = sshll.u32 %s221_s8, 4  ;;  %s1429_s2 = sld [smem:[#allocation13_spill]]  ;;  %s1204_s9 = int_to_ptr.vmem [resolvable:$true] %s229_s9 }
  0x17   : > { %s1206_s13 = scalar_lea.sflag [#allocation5], %s217_s30  ;;  %p1212_p10 = pneg %p1186_p8 }
  0x1c   : > { %s1202_s12 = scalar_lea.hbm %s1429_s2, %s1195_s7  ;;  %s945_s18 = scalar_lea.hbm %s1429_s2, 128 }
  0x1d   : > { %s940_s14 = scalar_lea.hbm %s1202_s12, 64  ;;  %p946_p13 = scmp.lt.u32.totalorder %s1202_s12, %s1429_s2 }
  0x1e   : > { %p941_p9 = scmp.ne.s32.totalorder %s1202_s12, %s940_s14  ;;  %p947_p0 = scmp.lt.u32.totalorder %s945_s18, %s940_s14 }
  0x1f   : > { %p949_p2 = scmp.lt.u32.totalorder %s940_s14, %s1202_s12 }
  0x20   : > { %p943_p11 = pnand %p1212_p10, %p941_p9  ;;  %p948_p1 = por %p947_p0, %p946_p13 }
  0x22   : > { %p944_p12 = pneg %p943_p11  ;;  %p950_p3 = por %p949_p2, %p948_p1 }
  0x24   : > { %p951_p4 = pnand %p950_p3, %p944_p12 }
  0x26   : > { %954 = shalt.err (!%p951_p4)
}
  0x27   : > { %s955_s30 = scalar_lea.vmem %s1204_s9, 64  ;;  %s1104_s8 = smov [#allocation4]  }
  0x28   : > { %p956_p5 = scmp.ne.s32.totalorder %s1204_s9, %s955_s30  ;;  %s960_s10 = sshll.u32 %s1104_s8, 4  ;;  %s961_s10 = int_to_ptr.vmem [resolvable:$false] %s960_s10 }
  0x29   : > { %s962_s11 = scalar_lea.vmem %s961_s10, 128  ;;  %p963_p11 = scmp.lt.s32.totalorder %s1204_s9, %s961_s10 }
  0x2a   : > { %p958_p6 = pnand %p956_p5, %p1212_p10  ;;  %p964_p7 = scmp.lt.s32.totalorder %s962_s11, %s955_s30 }
  0x2c   : > { %p959_p9 = pneg %p958_p6  ;;  %p965_p13 = por %p964_p7, %p963_p11 }
  0x2e   : > { %p966_p0 = pnand %p965_p13, %p959_p9 }
  0x30   : > { %969 = shalt.err (!%p966_p0)
}
  0x31   : > { %877 = dma.hbm_to_vmem [thread:$0]  (!%p1186_p8), %s1202_s12, 64, %s1204_s9, %s1206_s13  }
  0x32   : > { %p835_p12 = scmp.ge.s32.totalorder %s1102_s21, 1  ;;  %p272_p1 = scmp.lt.s32.totalorder %s1102_s21, 3 }
  0x33   : > { %s861_s14 = smul.u32 48, %s1184_s28  ;;  %s857_s17 = sshll.u32 %s1102_s21, 8 }
  0x34   : > { %p1239_p2 = pnand %p835_p12, %p272_p1  ;;  %s1432_s1 = sld [smem:[#allocation12_spill]] }
  0x35   : > { %s200_s30 = scalar_lea.vmem [#allocation2], %s861_s14  ;;  %s197_s9 = scalar_lea.sflag [#allocation3], %s1184_s28 }
  0x36   : > { %s1431_s16 = scalar_select %p1239_p2, 1, 0 }
  0x37   : > { %s207_s8 = sshll.u32 %s200_s30, 4  ;;  %s1249_s8 = int_to_ptr.vmem [resolvable:$true] %s207_s8 }
  0x3a   : > { %s1247_s25 = scalar_lea.hbm %s1432_s1, %s857_s17  ;;  %s975_s11 = scalar_lea.hbm %s1432_s1, 1536 }
  0x3b   : > { %s970_s12 = scalar_lea.hbm %s1247_s25, 768  ;;  %p976_p5 = scmp.lt.u32.totalorder %s1247_s25, %s1432_s1 }
  0x3c   : > { %p971_p7 = scmp.ne.s32.totalorder %s1247_s25, %s970_s12  ;;  %p977_p6 = scmp.lt.u32.totalorder %s975_s11, %s970_s12 }
  0x3d   : > { %p979_p11 = scmp.lt.u32.totalorder %s970_s12, %s1247_s25 }
  0x3e   : > { %p973_p3 = pnand %p971_p7, %p1212_p10  ;;  %p978_p9 = por %p977_p6, %p976_p5 }
  0x40   : > { %p974_p4 = pneg %p973_p3  ;;  %p980_p13 = por %p979_p11, %p978_p9 }
  0x42   : > { %p981_p0 = pnand %p980_p13, %p974_p4 }
  0x44   : > { %984 = shalt.err (!%p981_p0)
}
  0x45   : > { %s985_s14 = scalar_lea.vmem %s1249_s8, 768  ;;  %s1105_s24 = smov [#allocation2]  }
  0x46   : > { %p986_p12 = scmp.ne.s32.totalorder %s1249_s8, %s985_s14  ;;  %s990_s30 = sshll.u32 %s1105_s24, 4  ;;  %s991_s30 = int_to_ptr.vmem [resolvable:$false] %s990_s30 }
  0x47   : > { %s992_s21 = scalar_lea.vmem %s991_s30, 1536  ;;  %p993_p3 = scmp.lt.s32.totalorder %s1249_s8, %s991_s30 }
  0x48   : > { %p988_p1 = pnand %p986_p12, %p1212_p10  ;;  %p994_p2 = scmp.lt.s32.totalorder %s992_s21, %s985_s14 }
  0x4a   : > { %p989_p7 = pneg %p988_p1  ;;  %p995_p5 = por %p994_p2, %p993_p3 }
  0x4c   : > { %p996_p6 = pnand %p995_p5, %p989_p7 }
  0x4e   : > { %999 = shalt.err (!%p996_p6)
}
  0x4f   : > { %s1106_s12 = smov 512   ;;  %s1107_s10 = smov 256  }
  0x50   : > { %s1108_s11 = smov 16   ;;  %s1279_s14 = scalar_lea.hbm %s1419_s3, %s1195_s7 }
  0x51   : > { %874 = dma.hbm_to_vmem [thread:$0]  (!%p1186_p8), %s1247_s25, 768, %s1249_s8, %s197_s9, %s1106_s12, %s1107_s10, %s1108_s11  }
  0x52   : > { %s240_s24 = scalar_lea.vmem [#allocation6], %s1192_s6  ;;  %s1000_s21 = scalar_lea.hbm %s1279_s14, 64 }
  0x53   : > { %s248_s30 = sshll.u32 %s240_s24, 4  ;;  %p1001_p2 = scmp.ne.s32.totalorder %s1279_s14, %s1000_s21  ;;  %s249_s30 = int_to_ptr.vmem [resolvable:$true] %s248_s30 }
  0x54   : > { %s1005_s25 = scalar_lea.hbm %s1419_s3, 128  ;;  %p1006_p11 = scmp.lt.u32.totalorder %s1279_s14, %s1419_s3 }
  0x55   : > { %p1003_p4 = pnand %p1001_p2, %p1212_p10  ;;  %p1007_p13 = scmp.lt.u32.totalorder %s1005_s25, %s1000_s21 }
  0x56   : > { %p1009_p12 = scmp.lt.u32.totalorder %s1000_s21, %s1279_s14 }
  0x57   : > { %p1004_p9 = pneg %p1003_p4  ;;  %p1008_p0 = por %p1007_p13, %p1006_p11 }
  0x59   : > { %p1010_p1 = por %p1009_p12, %p1008_p0 }
  0x5b   : > { %p1011_p7 = pnand %p1010_p1, %p1004_p9 }
  0x5d   : > { %1014 = shalt.err (!%p1011_p7)
}
  0x5e   : > { %s1015_s12 = scalar_lea.vmem %s249_s30, 64  ;;  %s1109_s10 = smov [#allocation6]  }
  0x5f   : > { %p1016_p3 = scmp.ne.s32.totalorder %s249_s30, %s1015_s12  ;;  %s1020_s11 = sshll.u32 %s1109_s10, 4  ;;  %s1021_s11 = int_to_ptr.vmem [resolvable:$false] %s1020_s11 }
  0x60   : > { %s1022_s1 = scalar_lea.vmem %s1021_s11, 128  ;;  %p1023_p2 = scmp.lt.s32.totalorder %s249_s30, %s1021_s11 }
  0x61   : > { %p1018_p5 = pnand %p1016_p3, %p1212_p10  ;;  %p1024_p4 = scmp.lt.s32.totalorder %s1022_s1, %s1015_s12 }
  0x63   : > { %p1019_p6 = pneg %p1018_p5  ;;  %p1025_p8 = por %p1024_p4, %p1023_p2 }
  0x65   : > { %p1026_p11 = pnand %p1025_p8, %p1019_p6 }
  0x67   : > { %1029 = shalt.err (!%p1026_p11)
}
  0x68   : > { %p1433_p13 = scmp.ne.s32.totalorder %s1428_s29, 0  ;;  %s1304_s18 = scalar_lea.hbm %s1420_s4, %s1195_s7 }
  0x69   : > { %s259_s24 = scalar_lea.vmem [#allocation7], %s1192_s6  ;;  %s256_s25 = scalar_lea.sflag [#allocation8], %s1184_s28 }
  0x6a   : > { %880 = dma.hbm_to_vmem [thread:$0]  (!%p1433_p13), %s1279_s14, 64, %s249_s30, %s1206_s13  }
  0x6b   : > { %s267_s21 = sshll.u32 %s259_s24, 4  ;;  %s1030_s8 = scalar_lea.hbm %s1304_s18, 64  ;;  %s268_s21 = int_to_ptr.vmem [resolvable:$true] %s267_s21 }
  0x6c   : > { %p1031_p8 = scmp.ne.s32.totalorder %s1304_s18, %s1030_s8  ;;  %s1035_s14 = scalar_lea.hbm %s1420_s4, 128 }
  0x6d   : > { %p1036_p12 = scmp.lt.u32.totalorder %s1304_s18, %s1420_s4  ;;  %p1037_p1 = scmp.lt.u32.totalorder %s1035_s14, %s1030_s8 }
  0x6e   : > { %p1033_p9 = pnand %p1031_p8, %p1212_p10  ;;  %p1039_p3 = scmp.lt.u32.totalorder %s1030_s8, %s1304_s18 }
  0x6f   : > { %p1038_p7 = por %p1037_p1, %p1036_p12 }
  0x70   : > { %p1034_p0 = pneg %p1033_p9 }
  0x71   : > { %p1040_p5 = por %p1039_p3, %p1038_p7 }
  0x73   : > { %p1041_p6 = pnand %p1040_p5, %p1034_p0 }
  0x75   : > { %1044 = shalt.err (!%p1041_p6)
}
  0x76   : > { %s1045_s28 = scalar_lea.vmem %s268_s21, 64  ;;  %s1110_s6 = smov [#allocation7]  }
  0x77   : > { %p1046_p2 = scmp.ne.s32.totalorder %s268_s21, %s1045_s28  ;;  %s1050_s12 = sshll.u32 %s1110_s6, 4  ;;  %s1051_s12 = int_to_ptr.vmem [resolvable:$false] %s1050_s12 }
  0x78   : > { %s1052_s10 = scalar_lea.vmem %s1051_s12, 128  ;;  %p1053_p8 = scmp.lt.s32.totalorder %s268_s21, %s1051_s12 }
  0x79   : > { %p1048_p4 = pnand %p1046_p2, %p1212_p10  ;;  %p1054_p9 = scmp.lt.s32.totalorder %s1052_s10, %s1045_s28 }
  0x7b   : > { %p1049_p11 = pneg %p1048_p4  ;;  %p1055_p13 = por %p1054_p9, %p1053_p8 }
  0x7d   : > { %p1056_p1 = pnand %p1055_p13, %p1049_p11 }
  0x7f   : > { %1059 = shalt.err (!%p1056_p1)
}
  0x80   : > { %p1434_p12 = scmp.ne.s32.totalorder %s1428_s29, 0  ;;  %p1435_p0 = scmp.ne.s32.totalorder %s1431_s16, 0 }
  0x81   : > { %s278_s15 = sand.u32 (!%p1435_p0), 1, %s1094_s19   ;;  %p1436_p10 = scmp.ne.s32.totalorder (!%p1435_p0), %s1427_s27, 0 }
  0x82   : > { %883 = dma.hbm_to_vmem [thread:$0]  (!%p1434_p12), %s1304_s18, 64, %s268_s21, %s256_s25  }
  0x83   : > { %276 = sbr.rel (%p1435_p0) target bundleno = 432 (0x1b0), region = 40  ;;  %s279_s1 = scalar_lea.sflag (!%p1435_p0), [#allocation3], %s278_s15 }
  0x84   : > { %s862_s11 = smul.u32 (!%p1435_p0), 48, %s278_s15 }
  0x86   : > { %s282_s2 = scalar_lea.vmem (!%p1435_p0), [#allocation2], %s862_s11 }
  0x8a   : > { %1077 = dma.done.wait (%p1436_p10), %s279_s1, 768  }
  0x8b   : > { %1079 = vsyncadd (%p1436_p10), %s279_s1, 4294966528  ;;  %s287_s17 = sand.u32 1, %s1162_s22   ;;  %s1333_s29 = sshll.u32 %s278_s15, 2 }
  0x8c   : > { %s288_s18 = scalar_lea.sflag [#allocation5], %s287_s17  ;;  %s291_s16 = scalar_lea.vmem [#allocation4], %s1333_s29 }
  0x8d   : > { %1081 = dma.done.wait (%p1436_p10), %s288_s18, 128  }
  0x8e   : > { %1083 = vsyncadd (%p1436_p10), %s288_s18, 4294967168  ;;  %s300_s24 = scalar_lea.vmem [#allocation6], %s1333_s29  ;;  %s306_s21 = scalar_lea.sflag [#allocation8], %s278_s15 }
  0x8f   : > { %s309_s25 = scalar_lea.vmem [#allocation7], %s1333_s29 }
  0x90   : > { %1085 = dma.done.wait (%p1436_p10), %s306_s21, 64  }
  0x91   : > { %1087 = vsyncadd (%p1436_p10), %s306_s21, 4294967232  ;;  %v1111_v0 = vmov 0   ;;  %v922_v1 = vld [vmem:[%s282_s2 + $0x4] ss:$16 sps:$4 sm:$0xff]   ;;  %v924_v2 = vld [vmem:[%s282_s2 + $0xc] ss:$16 sps:$4 sm:$0xff]   ;;  %v369_v14 = vlaneseq }
  0x92   : > { %468 = vmatprep.mubr.bf16.mxu0 %v1111_v0  ;;  %509 = vmatprep.mubr.bf16.mxu1 %v1111_v0  ;;  %vm423_vm0 = vcmask 1042432   ;;  %v926_v3 = vld [vmem:[%s282_s2] ss:$16 sps:$4 sm:$0xff]   ;;  %v927_v4 = vld [vmem:[%s282_s2 + $0x8] ss:$16 sps:$4 sm:$0xff]   ;;  %vm419_vm1 = vcmask 179200  }
  0x93   : > { %436 = vmatprep.subr.bf16.mxu0 %v922_v1  ;;  %v365_v5 = vld [vmem:[%s282_s2 + $0x20] sm:$0x77]  ;;  %477 = vmatprep.subr.bf16.mxu1 %v924_v2  ;;  %v366_v7 = vld [vmem:[%s282_s2 + $0x28] sm:$0x77]  ;;  %v1353_v15 = vshrl.u32 %v369_v14, 7  ;;  %vm518_vm2 = vcmask 1041408  }
  0x94   : > { %v845_v6 = vcombine.high %v365_v5, %v365_v5  ;;  %v844_v8 = vcombine.low %v365_v5, %v365_v5  ;;  %437 = vmatpush1.bf16.msra.mxu0 %v926_v3  ;;  %478 = vmatpush1.bf16.msra.mxu1 %v927_v4  ;;  %v847_v9 = vcombine.high %v366_v7, %v366_v7  ;;  %v360_v13 = vld [vmem:[%s1416_s0] sm:$0x1]  ;;  %s839_s9 = sshll.u32 %s1162_s22, 2 }
  0x95   : > { %v846_v10 = vcombine.low %v366_v7, %v366_v7  ;;  %v1356_v16 = vsub.s32 0, %v1353_v15  ;;  %v1359_v17 = vsub.s32 2, %v1353_v15  ;;  %v367_v18 = vld [vmem:[%s291_s16] sm:$0xf]  ;;  %v1364_v19 = vsub.s32 1, %v1353_v15  ;;  %p355_p13 = scmp.lt.s32.totalorder %s839_s9, 7 }
  0x96   : > { %848 = vmatprep.subr.msk.bf16.mxu0 %vm423_vm0, %v845_v6  ;;  %v425_v11 = vsel %vm423_vm0, %v844_v8, 0  ;;  %850 = vmatprep.subr.msk.bf16.mxu1 %vm423_vm0, %v847_v9  ;;  %v1367_v20 = vsub.s32 3, %v1353_v15 }
  0x97   : > { %v431_v12 = vsel %vm423_vm0, %v846_v10, 0  ;;  %v372_v21 = vrot.slane %v367_v18, %v1356_v16  ;;  %v380_v22 = vrot.slane %v367_v18, %v1359_v17  ;;  %v376_v23 = vrot.slane %v367_v18, %v1364_v19  ;;  %s1442_s9 = smov (!%p355_p13, %s839_s9), 7 }
  0x98   : > { %439 = vmatpush1.bf16.msra.mxu0 %v425_v11  ;;  %480 = vmatpush1.bf16.msra.mxu1 %v431_v12  ;;  %v384_v24 = vrot.slane %v367_v18, %v1367_v20  ;;  %s357_s14 = scalar_lea.vmem %s1421_s5, %s1442_s9 }
  0x9b   : > { %849 = vmatmul.mubr.msk.bf16.vlgmr.msra.gmra.mrb[0].mxu0 %vm419_vm1, %v360_v13  ;;  %851 = vmatmul.mubr.msk.bf16.vlgmr.msra.gmra.mrb[0].mxu1 %vm419_vm1, %v360_v13 }
 0x16e   : > { %v470_v25 = vpop.f32.mrb[0].mxu0  ;;  %v511_v26 = vpop.f32.mrb[0].mxu1 }
 0x16f   : > { %v471_v27 = vadd.f32 %v470_v25, %v372_v21  ;;  %v512_v28 = vadd.f32 %v511_v26, %v380_v22  ;;  %v472_v29 = vpop.f32.mrb[1].mxu0  ;;  %v513_v30 = vpop.f32.mrb[1].mxu1 }
 0x170   : > { %v473_v31 = vadd.f32 %v472_v29, %v376_v23  ;;  %v514_v32 = vadd.f32 %v513_v30, %v384_v24  ;;  %v474_v33 = vpop.f32.mrb[2].mxu0  ;;  %v515_v34 = vpop.f32.mrb[2].mxu1 }
 0x171   : > { %v519_v35 = vsel %vm518_vm2, %v471_v27, 0.0  ;;  %v533_v36 = vsel %vm518_vm2, %v512_v28, 0.0  ;;  %v475_v37 = vpop.f32.mrb[3].mxu0  ;;  %v516_v38 = vpop.f32.mrb[3].mxu1 }
 0x172   : > { %v520_v39 = vrot.slane %v519_v35, 4  ;;  %v534_v40 = vrot.slane %v533_v36, 4  ;;  %v526_v41 = vsel %vm518_vm2, %v473_v31, 0.0  ;;  %v540_v42 = vsel %vm518_vm2, %v514_v32, 0.0 }
 0x173   : > { %v527_v43 = vrot.slane %v526_v41, 4  ;;  %v541_v44 = vrot.slane %v540_v42, 4 }
 0x174   : > { %v521_v45 = vadd.f32 %v520_v39, %v519_v35  ;;  %v535_v46 = vadd.f32 %v534_v40, %v533_v36 }
 0x175   : > { %v528_v47 = vadd.f32 %v527_v43, %v526_v41  ;;  %v542_v48 = vadd.f32 %v541_v44, %v540_v42 }
 0x176   : > { %v522_v49 = vrot.slane %v521_v45, 2  ;;  %v536_v50 = vrot.slane %v535_v46, 2 }
 0x177   : > { %v529_v51 = vrot.slane %v528_v47, 2  ;;  %v543_v52 = vrot.slane %v542_v48, 2 }
 0x178   : > { %v523_v53 = vadd.f32 %v522_v49, %v521_v45  ;;  %v537_v54 = vadd.f32 %v536_v50, %v535_v46 }
 0x179   : > { %v530_v55 = vadd.f32 %v529_v51, %v528_v47  ;;  %v544_v56 = vadd.f32 %v543_v52, %v542_v48 }
 0x17a   : > { %v524_v57 = vrot.slane %v523_v53, 1  ;;  %v538_v58 = vrot.slane %v537_v54, 1 }
 0x17b   : > { %v531_v59 = vrot.slane %v530_v55, 1  ;;  %v545_v60 = vrot.slane %v544_v56, 1 }
 0x17c   : > { %v525_v61 = vadd.f32 %v524_v57, %v523_v53  ;;  %v539_v62 = vadd.f32 %v538_v58, %v537_v54  ;;  %v591_v54 = vld [vmem:[%s300_s24] sm:$0xf] }
 0x17d   : > { %v532_v63 = vadd.f32 %v531_v59, %v530_v55  ;;  %v546_v0 = vadd.f32 %v545_v60, %v544_v56  ;;  %v596_v55 = vrot.slane %v591_v54, %v1356_v16  ;;  %v629_v56 = vld [vmem:[%s309_s25] sm:$0xf]  ;;  %v604_v57 = vrot.slane %v591_v54, %v1359_v17 }
 0x17e   : > { %v547_v1 = vmul.f32 0.5, %v525_v61  ;;  %v549_v2 = vmul.f32 0.5, %v539_v62  ;;  %v600_v58 = vrot.slane %v591_v54, %v1364_v19  ;;  %v608_v59 = vrot.slane %v591_v54, %v1367_v20 }
 0x17f   : > { %v548_v3 = vmul.f32 0.5, %v532_v63  ;;  %v550_v4 = vmul.f32 0.5, %v546_v0  ;;  %v634_v61 = vrot.slane %v629_v56, %v1356_v16  ;;  %v1112_v62 = vmov 1966171168  }
 0x180   : > { %v551_v5 = vsub.f32 %v471_v27, %v547_v1  ;;  %v553_v6 = vsub.f32 %v512_v28, %v549_v2  ;;  %v670_v63 = vunpack.c.l.s4 %v1112_v62  ;;  %v642_v2 = vrot.slane %v629_v56, %v1359_v17 }
 0x181   : > { %v552_v7 = vsub.f32 %v473_v31, %v548_v3  ;;  %v1377_v8 = vsub.f32 %v514_v32, %v550_v4 }
 0x182   : > { %v555_v9 = vmul.f32 %v551_v5, %v551_v5  ;;  %v557_v10 = vmul.f32 %v553_v6, %v553_v6  ;;  %v613_v60 = vmul.f32 %v596_v55, %v551_v5  ;;  %v615_v1 = vmul.f32 %v604_v57, %v553_v6 }
 0x183   : > { %v556_v11 = vmul.f32 %v552_v7, %v552_v7  ;;  %v558_v12 = vmul.f32 %v1377_v8, %v1377_v8  ;;  %v646_v5 = vrot.slane %v629_v56, %v1367_v20 }
 0x184   : > { %v559_v13 = vsel %vm518_vm2, %v555_v9, 0.0  ;;  %v573_v14 = vsel %vm518_vm2, %v557_v10, 0.0  ;;  %v614_v9 = vmul.f32 %v600_v58, %v552_v7  ;;  %v638_v10 = vrot.slane %v629_v56, %v1364_v19 }
 0x185   : > { %v560_v18 = vrot.slane %v559_v13, 4  ;;  %v574_v21 = vrot.slane %v573_v14, 4  ;;  %v566_v22 = vsel %vm518_vm2, %v556_v11, 0.0  ;;  %v580_v23 = vsel %vm518_vm2, %v558_v12, 0.0 }
 0x186   : > { %v567_v24 = vrot.slane %v566_v22, 4  ;;  %v581_v25 = vrot.slane %v580_v23, 4 }
 0x187   : > { %v561_v26 = vadd.f32 %v560_v18, %v559_v13  ;;  %v575_v27 = vadd.f32 %v574_v21, %v573_v14  ;;  %v616_v13 = vmul.f32 %v608_v59, %v1377_v8  ;;  %v671_v21 = vunpack.c.0.s8 %v670_v63 }
 0x188   : > { %v568_v28 = vadd.f32 %v567_v24, %v566_v22  ;;  %v582_v29 = vadd.f32 %v581_v25, %v580_v23 }
 0x189   : > { %v562_v30 = vrot.slane %v561_v26, 2  ;;  %v576_v31 = vrot.slane %v575_v27, 2  ;;  %v674_v19 = vsub.s32 %v671_v21, %v1353_v15 }
 0x18a   : > { %v569_v32 = vrot.slane %v568_v28, 2  ;;  %v583_v33 = vrot.slane %v582_v29, 2 }
 0x18b   : > { %v563_v34 = vadd.f32 %v562_v30, %v561_v26  ;;  %v577_v35 = vadd.f32 %v576_v31, %v575_v27 }
 0x18c   : > { %v570_v36 = vadd.f32 %v569_v32, %v568_v28  ;;  %v584_v37 = vadd.f32 %v583_v33, %v582_v29 }
 0x18d   : > { %v564_v38 = vrot.slane %v563_v34, 1  ;;  %v578_v39 = vrot.slane %v577_v35, 1 }
 0x18e   : > { %v571_v40 = vrot.slane %v570_v36, 1  ;;  %v585_v41 = vrot.slane %v584_v37, 1 }
 0x18f   : > { %v565_v42 = vadd.f32 %v564_v38, %v563_v34  ;;  %v579_v43 = vadd.f32 %v578_v39, %v577_v35 }
 0x190   : > { %v572_v44 = vadd.f32 %v571_v40, %v570_v36  ;;  %v586_v45 = vadd.f32 %v585_v41, %v584_v37 }
 0x191   : > { %v587_v46 = vmul.f32 0.5, %v565_v42  ;;  %v589_v47 = vmul.f32 0.5, %v579_v43 }
 0x192   : > { %v588_v48 = vmul.f32 0.5, %v572_v44  ;;  %v590_v49 = vmul.f32 0.5, %v586_v45 }
 0x193   : > { %v617_v50 = vadd.f32 1e-05, %v587_v46  ;;  %v619_v51 = vadd.f32 1e-05, %v589_v47 }
 0x194   : > { %v618_v52 = vadd.f32 1e-05, %v588_v48  ;;  %v620_v53 = vadd.f32 1e-05, %v590_v49 }
 0x195   : > { %932 = vrsqrt.f32 %v617_v50 }
 0x196   : > { %934 = vrsqrt.f32 %v619_v51 }
 0x197   : > { %936 = vrsqrt.f32 %v618_v52 }
 0x198   : > { %938 = vrsqrt.f32 %v620_v53 }
 0x19f   : > { %v933_v0 = vpop.eup %932 }
 0x1a0   : > { %v935_v3 = vpop.eup %934  ;;  %v625_v4 = vmul.f32 %v933_v0, %v613_v60 }
 0x1a1   : > { %v937_v11 = vpop.eup %936  ;;  %v627_v12 = vmul.f32 %v935_v3, %v615_v1 }
 0x1a2   : > { %v939_v14 = vpop.eup %938  ;;  %v651_v16 = vadd.f32 %v634_v61, %v625_v4  ;;  %v626_v18 = vmul.f32 %v937_v11, %v614_v9 }
 0x1a3   : > { %v653_v22 = vadd.f32 %v642_v2, %v627_v12  ;;  %v628_v6 = vmul.f32 %v939_v14, %v616_v13 }
 0x1a4   : > { %v655_v23 = vmax.f32 %v651_v16, 0.0  ;;  %v652_v17 = vadd.f32 %v638_v10, %v626_v18 }
 0x1a5   : > { %v657_v24 = vmax.f32 %v653_v22, 0.0  ;;  %v654_v7 = vadd.f32 %v646_v5, %v628_v6 }
 0x1a6   : > { %v656_v25 = vmax.f32 %v652_v17, 0.0 }
 0x1a7   : > { %v658_v26 = vmax.f32 %v654_v7, 0.0 }
 0x1a8   : > { %v852_v27 = vpack.c.bf16 %v656_v25, %v655_v23 }
 0x1a9   : > { %v853_v8 = vpack.c.bf16 %v658_v26, %v657_v24 }
 0x1aa   : > { %v675_v28 = vrot.slane %v852_v27, %v674_v19 }
 0x1ab   : > { %v682_v20 = vrot.slane %v853_v8, %v674_v19 }
 0x1ad   : > { %v683_v29 = vcombine.low %v675_v28, %v682_v20 }
 0x1af   : > { %854 = vst.sshfl [vmem:[%s357_s14] sm:$0x55 pattern:$0x73625140] %v683_v29 }
 0x1b0 PF: > { %p21_p7 = scmp.ge.s32.totalorder %s1165_s23, 4   ;;  %s1437_s18 = smov %s1094_s19 }
 0x1b1   : > { %s1438_s19 = smov %s1098_s20  ;;  %s1439_s20 = smov %s1175_s26 }
 0x1b2   : > { %s1440_s21 = smov %s1165_s23  ;;  %23 = sbr.rel (!%p21_p7) target bundleno = 10 (0xa), region = 117 }
 0x1b9   :  { %713 = vsyncpa [#allocation3], 1 }
 0x1ba   :  { %715 = vsyncpa [#allocation3 + $0x1], 1 }
 0x1bb   :  { %716 = vsyncpa [#allocation5], 1 }
 0x1bc   :  { %718 = vsyncpa [#allocation5 + $0x1], 1 }
 0x1bd   :  { %719 = vsyncpa [#allocation8], 1 }
 0x1be   :  { %721 = vsyncpa [#allocation8 + $0x1], 1 }

// kernel: generator_mwm_forward.12
= control target key start
LH: loop header
LB: loop body
LE: loop exit
PB: predicated region body
PF: predicated region fallthrough
CT: control target
= control target key end

     0   :  { %v279_v36 = vlaneseq  ;;  %v2825_v37 = vmov 1966171168   ;;  %vm1965_vm0 = vcmask 1041408   ;;  %s3717_s1 = inlined_call_operand.vmem [shape: bf16[1024,512], index: 1, kind: input, shape index: {}]   ;;  %s3718_s0 = inlined_call_operand.vmem [shape: bf16[2,1024], index: 0, kind: input, shape index: {}]   ;;  %s3719_s2 = inlined_call_operand.vmem [shape: f32[1,512], index: 2, kind: input, shape index: {}]   ;;  %s3720_s3 = inlined_call_operand.vmem [shape: f32[1,512], index: 3, kind: input, shape index: {}]   ;;  %s3721_s4 = inlined_call_operand.vmem [shape: f32[1,512], index: 4, kind: input, shape index: {}]   ;;  %s3722_s5 = inlined_call_operand.vmem [shape: bf16[2,512], index: 5, kind: output, shape index: {}]  }
   0x1   :  { %v2432_v0 = vld [vmem:[%s3717_s1 + $0x4] ss:$16 sps:$4 sm:$0xff]   ;;  %v2434_v1 = vld [vmem:[%s3717_s1 + $0xc] ss:$16 sps:$4 sm:$0xff]   ;;  %v2436_v2 = vld [vmem:[%s3717_s1] ss:$16 sps:$4 sm:$0xff]   ;;  %v302_v38 = vunpack.c.l.s4 %v2825_v37 }
   0x2   :  { %1637 = vmatprep.subr.bf16.mxu0 %v2432_v0  ;;  %v2437_v3 = vld [vmem:[%s3717_s1 + $0x8] ss:$16 sps:$4 sm:$0xff]   ;;  %1801 = vmatprep.subr.bf16.mxu1 %v2434_v1  ;;  %v2438_v4 = vld [vmem:[%s3717_s1 + $0x24] ss:$16 sps:$4 sm:$0xff]   ;;  %v2440_v5 = vld [vmem:[%s3717_s1 + $0x2c] ss:$16 sps:$4 sm:$0xff]  }
   0x3   :  { %1638 = vmatpush1.bf16.msra.mxu0 %v2436_v2  ;;  %1802 = vmatpush1.bf16.msra.mxu1 %v2437_v3  ;;  %v2442_v6 = vld [vmem:[%s3717_s1 + $0x20] ss:$16 sps:$4 sm:$0xff]   ;;  %v2443_v7 = vld [vmem:[%s3717_s1 + $0x28] ss:$16 sps:$4 sm:$0xff]   ;;  %v2444_v8 = vld [vmem:[%s3717_s1 + $0x44] ss:$16 sps:$4 sm:$0xff]   ;;  %v303_v43 = vunpack.c.0.s8 %v302_v38 }
   0x4   :  { %1639 = vmatprep.subr.bf16.mxu0 %v2438_v4  ;;  %1803 = vmatprep.subr.bf16.mxu1 %v2440_v5  ;;  %v2446_v9 = vld [vmem:[%s3717_s1 + $0x4c] ss:$16 sps:$4 sm:$0xff]   ;;  %v2448_v10 = vld [vmem:[%s3717_s1 + $0x40] ss:$16 sps:$4 sm:$0xff]   ;;  %v2449_v11 = vld [vmem:[%s3717_s1 + $0x48] ss:$16 sps:$4 sm:$0xff]  }
   0x5   :  { %v2450_v12 = vld [vmem:[%s3717_s1 + $0x64] ss:$16 sps:$4 sm:$0xff]   ;;  %v2452_v13 = vld [vmem:[%s3717_s1 + $0x6c] ss:$16 sps:$4 sm:$0xff]   ;;  %v2454_v14 = vld [vmem:[%s3717_s1 + $0x60] ss:$16 sps:$4 sm:$0xff]  }
   0x6   :  { %v2455_v15 = vld [vmem:[%s3717_s1 + $0x68] ss:$16 sps:$4 sm:$0xff]   ;;  %v2456_v16 = vld [vmem:[%s3717_s1 + $0x84] ss:$16 sps:$4 sm:$0xff]   ;;  %v2458_v17 = vld [vmem:[%s3717_s1 + $0x8c] ss:$16 sps:$4 sm:$0xff]  }
   0x7   :  { %1640 = vmatpush1.bf16.msra.mxu0 %v2442_v6  ;;  %1804 = vmatpush1.bf16.msra.mxu1 %v2443_v7  ;;  %v2460_v18 = vld [vmem:[%s3717_s1 + $0x80] ss:$16 sps:$4 sm:$0xff]   ;;  %v2461_v19 = vld [vmem:[%s3717_s1 + $0x88] ss:$16 sps:$4 sm:$0xff]   ;;  %v2462_v20 = vld [vmem:[%s3717_s1 + $0xa4] ss:$16 sps:$4 sm:$0xff]  }
   0x8   :  { %1641 = vmatprep.subr.bf16.mxu0 %v2444_v8  ;;  %1805 = vmatprep.subr.bf16.mxu1 %v2446_v9  ;;  %v2464_v21 = vld [vmem:[%s3717_s1 + $0xac] ss:$16 sps:$4 sm:$0xff]   ;;  %v2466_v22 = vld [vmem:[%s3717_s1 + $0xa0] ss:$16 sps:$4 sm:$0xff]   ;;  %v2467_v23 = vld [vmem:[%s3717_s1 + $0xa8] ss:$16 sps:$4 sm:$0xff]  }
   0x9   :  { %v2468_v24 = vld [vmem:[%s3717_s1 + $0xc4] ss:$16 sps:$4 sm:$0xff]   ;;  %v2470_v25 = vld [vmem:[%s3717_s1 + $0xcc] ss:$16 sps:$4 sm:$0xff]   ;;  %v2472_v26 = vld [vmem:[%s3717_s1 + $0xc0] ss:$16 sps:$4 sm:$0xff]  }
   0xa   :  { %v2473_v27 = vld [vmem:[%s3717_s1 + $0xc8] ss:$16 sps:$4 sm:$0xff]   ;;  %v2474_v28 = vld [vmem:[%s3717_s1 + $0xe4] ss:$16 sps:$4 sm:$0xff]   ;;  %v2476_v29 = vld [vmem:[%s3717_s1 + $0xec] ss:$16 sps:$4 sm:$0xff]  }
   0xb   :  { %1642 = vmatpush1.bf16.msra.mxu0 %v2448_v10  ;;  %1806 = vmatpush1.bf16.msra.mxu1 %v2449_v11  ;;  %v2478_v30 = vld [vmem:[%s3717_s1 + $0xe0] ss:$16 sps:$4 sm:$0xff]   ;;  %v2479_v31 = vld [vmem:[%s3717_s1 + $0xe8] ss:$16 sps:$4 sm:$0xff]   ;;  %v2480_v32 = vld [vmem:[%s3717_s1 + $0x104] ss:$16 sps:$4 sm:$0xff]  }
   0xc   :  { %1643 = vmatprep.subr.bf16.mxu0 %v2450_v12  ;;  %1807 = vmatprep.subr.bf16.mxu1 %v2452_v13  ;;  %v2482_v33 = vld [vmem:[%s3717_s1 + $0x10c] ss:$16 sps:$4 sm:$0xff]   ;;  %v2484_v34 = vld [vmem:[%s3717_s1 + $0x100] ss:$16 sps:$4 sm:$0xff]   ;;  %v2485_v35 = vld [vmem:[%s3717_s1 + $0x108] ss:$16 sps:$4 sm:$0xff]  }
   0xd   :  { %v2486_v39 = vld [vmem:[%s3717_s1 + $0x124] ss:$16 sps:$4 sm:$0xff]   ;;  %v2488_v40 = vld [vmem:[%s3717_s1 + $0x12c] ss:$16 sps:$4 sm:$0xff]   ;;  %v2490_v41 = vld [vmem:[%s3717_s1 + $0x120] ss:$16 sps:$4 sm:$0xff]  }
   0xe   :  { %v2973_v42 = vshrl.u32 %v279_v36, 7  ;;  %v2491_v44 = vld [vmem:[%s3717_s1 + $0x128] ss:$16 sps:$4 sm:$0xff]   ;;  %v2492_v45 = vld [vmem:[%s3717_s1 + $0x144] ss:$16 sps:$4 sm:$0xff]  }
   0xf   :  { %1644 = vmatpush1.bf16.msra.mxu0 %v2454_v14  ;;  %1808 = vmatpush1.bf16.msra.mxu1 %v2455_v15  ;;  %v2494_v46 = vld [vmem:[%s3717_s1 + $0x14c] ss:$16 sps:$4 sm:$0xff]   ;;  %v2496_v47 = vld [vmem:[%s3717_s1 + $0x140] ss:$16 sps:$4 sm:$0xff]   ;;  %v2497_v48 = vld [vmem:[%s3717_s1 + $0x148] ss:$16 sps:$4 sm:$0xff]  }
  0x10   :  { %1645 = vmatprep.subr.bf16.mxu0 %v2456_v16  ;;  %1809 = vmatprep.subr.bf16.mxu1 %v2458_v17  ;;  %v2991_v49 = vsub.s32 %v303_v43, %v2973_v42  ;;  %v2498_v50 = vld [vmem:[%s3717_s1 + $0x164] ss:$16 sps:$4 sm:$0xff]   ;;  %v2500_v51 = vld [vmem:[%s3717_s1 + $0x16c] ss:$16 sps:$4 sm:$0xff]   ;;  %v2502_v53 = vld [vmem:[%s3717_s1 + $0x160] ss:$16 sps:$4 sm:$0xff]  }
  0x11   :  { %v3002_v52 = vld [vmem:[%s3718_s0] sm:$0xff]  ;;  %v2503_v55 = vld [vmem:[%s3717_s1 + $0x168] ss:$16 sps:$4 sm:$0xff]   ;;  %v2506_v57 = vld [vmem:[%s3717_s1 + $0x18c] ss:$16 sps:$4 sm:$0xff]  }
  0x12   :  { %v307_v54 = vrot.slane %v3002_v52, %v2991_v49  ;;  %v2504_v56 = vld [vmem:[%s3717_s1 + $0x184] ss:$16 sps:$4 sm:$0xff]   ;;  %v2508_v59 = vld [vmem:[%s3717_s1 + $0x180] ss:$16 sps:$4 sm:$0xff]   ;;  %v2509_v61 = vld [vmem:[%s3717_s1 + $0x188] ss:$16 sps:$4 sm:$0xff]  }
  0x13   :  { %1646 = vmatpush1.bf16.msra.mxu0 %v2460_v18  ;;  %1810 = vmatpush1.bf16.msra.mxu1 %v2461_v19  ;;  %v2510_v62 = vld [vmem:[%s3717_s1 + $0x1a4] ss:$16 sps:$4 sm:$0xff]   ;;  %v2512_v63 = vld [vmem:[%s3717_s1 + $0x1ac] ss:$16 sps:$4 sm:$0xff]   ;;  %v2514_v0 = vld [vmem:[%s3717_s1 + $0x1a0] ss:$16 sps:$4 sm:$0xff]  }
  0x14   :  { %1647 = vmatprep.subr.bf16.mxu0 %v2462_v20  ;;  %1811 = vmatprep.subr.bf16.mxu1 %v2464_v21  ;;  %v315_v58 = vcombine.high %v307_v54, %v307_v54  ;;  %v2515_v1 = vld [vmem:[%s3717_s1 + $0x1a8] ss:$16 sps:$4 sm:$0xff]   ;;  %v2516_v2 = vld [vmem:[%s3717_s1 + $0x1c4] ss:$16 sps:$4 sm:$0xff]   ;;  %v2518_v3 = vld [vmem:[%s3717_s1 + $0x1cc] ss:$16 sps:$4 sm:$0xff]   ;;  %v3071_v13 = vrot.slane %v307_v54, %v2991_v49 }
  0x15   :  { %v2520_v4 = vld [vmem:[%s3717_s1 + $0x1c0] ss:$16 sps:$4 sm:$0xff]   ;;  %v2521_v5 = vld [vmem:[%s3717_s1 + $0x1c8] ss:$16 sps:$4 sm:$0xff]   ;;  %v2522_v6 = vld [vmem:[%s3717_s1 + $0x1e4] ss:$16 sps:$4 sm:$0xff]  }
  0x16   :  { %v337_v60 = vrot.slane %v315_v58, %v2991_v49  ;;  %v2524_v7 = vld [vmem:[%s3717_s1 + $0x1ec] ss:$16 sps:$4 sm:$0xff]   ;;  %v2526_v8 = vld [vmem:[%s3717_s1 + $0x1e0] ss:$16 sps:$4 sm:$0xff]   ;;  %v2527_v9 = vld [vmem:[%s3717_s1 + $0x1e8] ss:$16 sps:$4 sm:$0xff]  }
  0x17   :  { %1648 = vmatpush1.bf16.msra.mxu0 %v2466_v22  ;;  %1812 = vmatpush1.bf16.msra.mxu1 %v2467_v23  ;;  %v2530_v10 = vld [vmem:[%s3717_s1 + $0x204] ss:$16 sps:$4 sm:$0xff]   ;;  %v2533_v11 = vld [vmem:[%s3717_s1 + $0x20c] ss:$16 sps:$4 sm:$0xff]   ;;  %v2528_v12 = vld [vmem:[%s3717_s1 + $0x200] ss:$16 sps:$4 sm:$0xff]  }
  0x18   :  { %1649 = vmatprep.subr.bf16.mxu0 %v2468_v24  ;;  %1813 = vmatprep.subr.bf16.mxu1 %v2470_v25  ;;  %v2531_v14 = vld [vmem:[%s3717_s1 + $0x208] ss:$16 sps:$4 sm:$0xff]   ;;  %v2536_v15 = vld [vmem:[%s3717_s1 + $0x224] ss:$16 sps:$4 sm:$0xff]   ;;  %v2539_v16 = vld [vmem:[%s3717_s1 + $0x22c] ss:$16 sps:$4 sm:$0xff]   ;;  %v347_v17 = vcombine.high %v337_v60, %v337_v60 }
  0x19   :  { %1669 = vmatprep.mubr.bf16.mxu0 %v337_v60  ;;  %1833 = vmatprep.mubr.bf16.mxu1 %v337_v60  ;;  %v2534_v18 = vld [vmem:[%s3717_s1 + $0x220] ss:$16 sps:$4 sm:$0xff]   ;;  %v2537_v19 = vld [vmem:[%s3717_s1 + $0x228] ss:$16 sps:$4 sm:$0xff]   ;;  %v2542_v20 = vld [vmem:[%s3717_s1 + $0x244] ss:$16 sps:$4 sm:$0xff]  }
  0x1a   :  { %v2545_v21 = vld [vmem:[%s3717_s1 + $0x24c] ss:$16 sps:$4 sm:$0xff]   ;;  %v2540_v22 = vld [vmem:[%s3717_s1 + $0x240] ss:$16 sps:$4 sm:$0xff]   ;;  %v2543_v23 = vld [vmem:[%s3717_s1 + $0x248] ss:$16 sps:$4 sm:$0xff]  }
  0x1b   :  { %1650 = vmatpush1.bf16.msra.mxu0 %v2472_v26  ;;  %1814 = vmatpush1.bf16.msra.mxu1 %v2473_v27  ;;  %v2548_v24 = vld [vmem:[%s3717_s1 + $0x264] ss:$16 sps:$4 sm:$0xff]   ;;  %v2551_v25 = vld [vmem:[%s3717_s1 + $0x26c] ss:$16 sps:$4 sm:$0xff]   ;;  %v2546_v26 = vld [vmem:[%s3717_s1 + $0x260] ss:$16 sps:$4 sm:$0xff]  }
  0x1c   :  { %1651 = vmatprep.subr.bf16.mxu0 %v2474_v28  ;;  %1815 = vmatprep.subr.bf16.mxu1 %v2476_v29  ;;  %v2549_v27 = vld [vmem:[%s3717_s1 + $0x268] ss:$16 sps:$4 sm:$0xff]   ;;  %v2554_v28 = vld [vmem:[%s3717_s1 + $0x284] ss:$16 sps:$4 sm:$0xff]   ;;  %v2557_v29 = vld [vmem:[%s3717_s1 + $0x28c] ss:$16 sps:$4 sm:$0xff]  }
  0x1d   :  { %v2566_v36 = vld [vmem:[%s3717_s1 + $0x2c4] ss:$16 sps:$4 sm:$0xff]   ;;  %v2569_v37 = vld [vmem:[%s3717_s1 + $0x2cc] ss:$16 sps:$4 sm:$0xff]   ;;  %v2564_v38 = vld [vmem:[%s3717_s1 + $0x2c0] ss:$16 sps:$4 sm:$0xff]  }
  0x1e   :  { %v2570_v43 = vld [vmem:[%s3717_s1 + $0x2e0] ss:$16 sps:$4 sm:$0xff]   ;;  %v2585_v54 = vld [vmem:[%s3717_s1 + $0x328] ss:$16 sps:$4 sm:$0xff]   ;;  %v2599_v60 = vld [vmem:[%s3717_s1 + $0x36c] ss:$16 sps:$4 sm:$0xff]  }
  0x1f   :  { %1652 = vmatpush1.bf16.msra.mxu0 %v2478_v30  ;;  %1816 = vmatpush1.bf16.msra.mxu1 %v2479_v31  ;;  %v2552_v30 = vld [vmem:[%s3717_s1 + $0x280] ss:$16 sps:$4 sm:$0xff]   ;;  %v2555_v31 = vld [vmem:[%s3717_s1 + $0x288] ss:$16 sps:$4 sm:$0xff]  }
  0x20   :  { %1653 = vmatprep.subr.bf16.mxu0 %v2480_v32  ;;  %1817 = vmatprep.subr.bf16.mxu1 %v2482_v33  ;;  %v2560_v32 = vld [vmem:[%s3717_s1 + $0x2a4] ss:$16 sps:$4 sm:$0xff]   ;;  %v2563_v33 = vld [vmem:[%s3717_s1 + $0x2ac] ss:$16 sps:$4 sm:$0xff]   ;;  %v2591_v58 = vld [vmem:[%s3717_s1 + $0x348] ss:$16 sps:$4 sm:$0xff]  }
  0x23   :  { %1654 = vmatpush1.bf16.msra.mxu0 %v2484_v34  ;;  %1818 = vmatpush1.bf16.msra.mxu1 %v2485_v35  ;;  %v2558_v34 = vld [vmem:[%s3717_s1 + $0x2a0] ss:$16 sps:$4 sm:$0xff]   ;;  %v2561_v35 = vld [vmem:[%s3717_s1 + $0x2a8] ss:$16 sps:$4 sm:$0xff]  }
  0x24   :  { %1655 = vmatprep.subr.bf16.mxu0 %v2486_v39  ;;  %1819 = vmatprep.subr.bf16.mxu1 %v2488_v40  ;;  %v2567_v39 = vld [vmem:[%s3717_s1 + $0x2c8] ss:$16 sps:$4 sm:$0xff]   ;;  %v2572_v40 = vld [vmem:[%s3717_s1 + $0x2e4] ss:$16 sps:$4 sm:$0xff]  }
  0x27   :  { %1656 = vmatpush1.bf16.msra.mxu0 %v2490_v41  ;;  %1820 = vmatpush1.bf16.msra.mxu1 %v2491_v44  ;;  %v2575_v41 = vld [vmem:[%s3717_s1 + $0x2ec] ss:$16 sps:$4 sm:$0xff]   ;;  %v2573_v44 = vld [vmem:[%s3717_s1 + $0x2e8] ss:$16 sps:$4 sm:$0xff]  }
  0x28   :  { %1657 = vmatprep.subr.bf16.mxu0 %v2492_v45  ;;  %1821 = vmatprep.subr.bf16.mxu1 %v2494_v46  ;;  %v2578_v45 = vld [vmem:[%s3717_s1 + $0x304] ss:$16 sps:$4 sm:$0xff]   ;;  %v2581_v46 = vld [vmem:[%s3717_s1 + $0x30c] ss:$16 sps:$4 sm:$0xff]  }
  0x2b   :  { %1658 = vmatpush1.bf16.msra.mxu0 %v2496_v47  ;;  %1822 = vmatpush1.bf16.msra.mxu1 %v2497_v48  ;;  %v2576_v47 = vld [vmem:[%s3717_s1 + $0x300] ss:$16 sps:$4 sm:$0xff]   ;;  %v2579_v48 = vld [vmem:[%s3717_s1 + $0x308] ss:$16 sps:$4 sm:$0xff]  }
  0x2c   :  { %1659 = vmatprep.subr.bf16.mxu0 %v2498_v50  ;;  %1823 = vmatprep.subr.bf16.mxu1 %v2500_v51  ;;  %v2584_v50 = vld [vmem:[%s3717_s1 + $0x324] ss:$16 sps:$4 sm:$0xff]   ;;  %v2587_v51 = vld [vmem:[%s3717_s1 + $0x32c] ss:$16 sps:$4 sm:$0xff]  }
  0x2f   :  { %1660 = vmatpush1.bf16.msra.mxu0 %v2502_v53  ;;  %1824 = vmatpush1.bf16.msra.mxu1 %v2503_v55  ;;  %v2582_v53 = vld [vmem:[%s3717_s1 + $0x320] ss:$16 sps:$4 sm:$0xff]   ;;  %v2590_v55 = vld [vmem:[%s3717_s1 + $0x344] ss:$16 sps:$4 sm:$0xff]  }
  0x30   :  { %1661 = vmatprep.subr.bf16.mxu0 %v2504_v56  ;;  %1825 = vmatprep.subr.bf16.mxu1 %v2506_v57  ;;  %v2593_v56 = vld [vmem:[%s3717_s1 + $0x34c] ss:$16 sps:$4 sm:$0xff]   ;;  %v2588_v57 = vld [vmem:[%s3717_s1 + $0x340] ss:$16 sps:$4 sm:$0xff]  }
  0x33   :  { %1662 = vmatpush1.bf16.msra.mxu0 %v2508_v59  ;;  %1826 = vmatpush1.bf16.msra.mxu1 %v2509_v61  ;;  %v2596_v59 = vld [vmem:[%s3717_s1 + $0x364] ss:$16 sps:$4 sm:$0xff]   ;;  %v2594_v61 = vld [vmem:[%s3717_s1 + $0x360] ss:$16 sps:$4 sm:$0xff]  }
  0x34   :  { %1663 = vmatprep.subr.bf16.mxu0 %v2510_v62  ;;  %1827 = vmatprep.subr.bf16.mxu1 %v2512_v63  ;;  %v2597_v62 = vld [vmem:[%s3717_s1 + $0x368] ss:$16 sps:$4 sm:$0xff]   ;;  %v2602_v63 = vld [vmem:[%s3717_s1 + $0x384] ss:$16 sps:$4 sm:$0xff]  }
  0x37   :  { %1664 = vmatpush1.bf16.msra.mxu0 %v2514_v0  ;;  %1828 = vmatpush1.bf16.msra.mxu1 %v2515_v1  ;;  %v2605_v0 = vld [vmem:[%s3717_s1 + $0x38c] ss:$16 sps:$4 sm:$0xff]   ;;  %v2600_v1 = vld [vmem:[%s3717_s1 + $0x380] ss:$16 sps:$4 sm:$0xff]  }
  0x38   :  { %1665 = vmatprep.subr.bf16.mxu0 %v2516_v2  ;;  %1829 = vmatprep.subr.bf16.mxu1 %v2518_v3  ;;  %v2603_v2 = vld [vmem:[%s3717_s1 + $0x388] ss:$16 sps:$4 sm:$0xff]   ;;  %v2608_v3 = vld [vmem:[%s3717_s1 + $0x3a4] ss:$16 sps:$4 sm:$0xff]  }
  0x3b   :  { %1666 = vmatpush1.bf16.msra.mxu0 %v2520_v4  ;;  %1830 = vmatpush1.bf16.msra.mxu1 %v2521_v5  ;;  %v2611_v4 = vld [vmem:[%s3717_s1 + $0x3ac] ss:$16 sps:$4 sm:$0xff]   ;;  %v2606_v5 = vld [vmem:[%s3717_s1 + $0x3a0] ss:$16 sps:$4 sm:$0xff]  }
  0x3c   :  { %1667 = vmatprep.subr.bf16.mxu0 %v2522_v6  ;;  %1831 = vmatprep.subr.bf16.mxu1 %v2524_v7  ;;  %v2609_v6 = vld [vmem:[%s3717_s1 + $0x3a8] ss:$16 sps:$4 sm:$0xff]   ;;  %v2614_v7 = vld [vmem:[%s3717_s1 + $0x3c4] ss:$16 sps:$4 sm:$0xff]  }
  0x3f   :  { %1668 = vmatpush1.bf16.msra.mxu0 %v2526_v8  ;;  %1832 = vmatpush1.bf16.msra.mxu1 %v2527_v9  ;;  %v2617_v8 = vld [vmem:[%s3717_s1 + $0x3cc] ss:$16 sps:$4 sm:$0xff]   ;;  %v300_v9 = vcombine.high %v3002_v52, %v3002_v52 }
  0x40   :  { %1678 = vmatprep.subr.bf16.mxu0 %v2530_v10  ;;  %1842 = vmatprep.subr.bf16.mxu1 %v2533_v11  ;;  %v2612_v10 = vld [vmem:[%s3717_s1 + $0x3c0] ss:$16 sps:$4 sm:$0xff]   ;;  %v2615_v11 = vld [vmem:[%s3717_s1 + $0x3c8] ss:$16 sps:$4 sm:$0xff]   ;;  %v2623_v52 = vld [vmem:[%s3717_s1 + $0x3ec] ss:$16 sps:$4 sm:$0xff]  }
  0x42   :  { %1670 = vmatmul.mubr.bf16.vlgmr.msra.gmra.mrb[0].mxu0 %v3071_v13  ;;  %1834 = vmatmul.mubr.bf16.vlgmr.msra.gmra.mrb[0].mxu1 %v3071_v13 }
  0x43   :  { %1679 = vmatpush1.bf16.msra.mxu0 %v2528_v12  ;;  %1843 = vmatpush1.bf16.msra.mxu1 %v2531_v14  ;;  %v2620_v12 = vld [vmem:[%s3717_s1 + $0x3e4] ss:$16 sps:$4 sm:$0xff]   ;;  %v3255_v14 = vrot.slane %v300_v9, %v2991_v49  ;;  %v2699_v9 = vld [vmem:[%s3717_s1 + $0x588] ss:$16 sps:$4 sm:$0xff]  }
  0x44   :  { %1680 = vmatprep.subr.bf16.mxu0 %v2536_v15  ;;  %1844 = vmatprep.subr.bf16.mxu1 %v2539_v16  ;;  %v2618_v15 = vld [vmem:[%s3717_s1 + $0x3e0] ss:$16 sps:$4 sm:$0xff]   ;;  %v2621_v16 = vld [vmem:[%s3717_s1 + $0x3e8] ss:$16 sps:$4 sm:$0xff]  }
  0x45   :  { %1710 = vmatprep.mubr.bf16.mxu0 %v347_v17  ;;  %1874 = vmatprep.mubr.bf16.mxu1 %v347_v17  ;;  %v2626_v17 = vld [vmem:[%s3717_s1 + $0x404] ss:$16 sps:$4 sm:$0xff]  }
  0x47   :  { %1681 = vmatpush1.bf16.msra.mxu0 %v2534_v18  ;;  %1845 = vmatpush1.bf16.msra.mxu1 %v2537_v19  ;;  %v2629_v18 = vld [vmem:[%s3717_s1 + $0x40c] ss:$16 sps:$4 sm:$0xff]   ;;  %v316_v19 = vcombine.high %v3255_v14, %v3255_v14 }
  0x48   :  { %1682 = vmatprep.subr.bf16.mxu0 %v2542_v20  ;;  %1846 = vmatprep.subr.bf16.mxu1 %v2545_v21  ;;  %v2624_v20 = vld [vmem:[%s3717_s1 + $0x400] ss:$16 sps:$4 sm:$0xff]   ;;  %v345_v21 = vcombine.high %v3071_v13, %v3071_v13 }
  0x49   :  { %v2630_v13 = vld [vmem:[%s3717_s1 + $0x420] ss:$16 sps:$4 sm:$0xff]  }
  0x4b   :  { %1683 = vmatpush1.bf16.msra.mxu0 %v2540_v22  ;;  %1847 = vmatpush1.bf16.msra.mxu1 %v2543_v23  ;;  %v2627_v22 = vld [vmem:[%s3717_s1 + $0x408] ss:$16 sps:$4 sm:$0xff]   ;;  %v2632_v23 = vld [vmem:[%s3717_s1 + $0x424] ss:$16 sps:$4 sm:$0xff]  }
  0x4c   :  { %1684 = vmatprep.subr.bf16.mxu0 %v2548_v24  ;;  %1848 = vmatprep.subr.bf16.mxu1 %v2551_v25  ;;  %v2635_v24 = vld [vmem:[%s3717_s1 + $0x42c] ss:$16 sps:$4 sm:$0xff]   ;;  %v3286_v25 = vrot.slane %v316_v19, %v2991_v49  ;;  %v2716_v19 = vld [vmem:[%s3717_s1 + $0x5e4] ss:$16 sps:$4 sm:$0xff]  }
  0x4f   :  { %1685 = vmatpush1.bf16.msra.mxu0 %v2546_v26  ;;  %1849 = vmatpush1.bf16.msra.mxu1 %v2549_v27  ;;  %v2633_v26 = vld [vmem:[%s3717_s1 + $0x428] ss:$16 sps:$4 sm:$0xff]   ;;  %v2638_v27 = vld [vmem:[%s3717_s1 + $0x444] ss:$16 sps:$4 sm:$0xff]  }
  0x50   :  { %1686 = vmatprep.subr.bf16.mxu0 %v2554_v28  ;;  %1850 = vmatprep.subr.bf16.mxu1 %v2557_v29  ;;  %v2641_v28 = vld [vmem:[%s3717_s1 + $0x44c] ss:$16 sps:$4 sm:$0xff]   ;;  %v2636_v29 = vld [vmem:[%s3717_s1 + $0x440] ss:$16 sps:$4 sm:$0xff]  }
  0x53   :  { %1687 = vmatpush1.bf16.msra.mxu0 %v2552_v30  ;;  %1851 = vmatpush1.bf16.msra.mxu1 %v2555_v31  ;;  %v2639_v30 = vld [vmem:[%s3717_s1 + $0x448] ss:$16 sps:$4 sm:$0xff]   ;;  %v2644_v31 = vld [vmem:[%s3717_s1 + $0x464] ss:$16 sps:$4 sm:$0xff]  }
  0x54   :  { %1688 = vmatprep.subr.bf16.mxu0 %v2560_v32  ;;  %1852 = vmatprep.subr.bf16.mxu1 %v2563_v33  ;;  %v2647_v32 = vld [vmem:[%s3717_s1 + $0x46c] ss:$16 sps:$4 sm:$0xff]   ;;  %v2642_v33 = vld [vmem:[%s3717_s1 + $0x460] ss:$16 sps:$4 sm:$0xff]  }
  0x57   :  { %1689 = vmatpush1.bf16.msra.mxu0 %v2558_v34  ;;  %1853 = vmatpush1.bf16.msra.mxu1 %v2561_v35  ;;  %v2645_v34 = vld [vmem:[%s3717_s1 + $0x468] ss:$16 sps:$4 sm:$0xff]   ;;  %v2650_v35 = vld [vmem:[%s3717_s1 + $0x484] ss:$16 sps:$4 sm:$0xff]  }
  0x58   :  { %1690 = vmatprep.subr.bf16.mxu0 %v2566_v36  ;;  %1854 = vmatprep.subr.bf16.mxu1 %v2569_v37  ;;  %v2653_v36 = vld [vmem:[%s3717_s1 + $0x48c] ss:$16 sps:$4 sm:$0xff]   ;;  %v2648_v37 = vld [vmem:[%s3717_s1 + $0x480] ss:$16 sps:$4 sm:$0xff]  }
  0x5b   :  { %1691 = vmatpush1.bf16.msra.mxu0 %v2564_v38  ;;  %1855 = vmatpush1.bf16.msra.mxu1 %v2567_v39  ;;  %v2651_v38 = vld [vmem:[%s3717_s1 + $0x488] ss:$16 sps:$4 sm:$0xff]   ;;  %v2656_v39 = vld [vmem:[%s3717_s1 + $0x4a4] ss:$16 sps:$4 sm:$0xff]  }
  0x5c   :  { %1692 = vmatprep.subr.bf16.mxu0 %v2572_v40  ;;  %1856 = vmatprep.subr.bf16.mxu1 %v2575_v41  ;;  %v2659_v40 = vld [vmem:[%s3717_s1 + $0x4ac] ss:$16 sps:$4 sm:$0xff]   ;;  %v2654_v41 = vld [vmem:[%s3717_s1 + $0x4a0] ss:$16 sps:$4 sm:$0xff]  }
  0x5f   :  { %1693 = vmatpush1.bf16.msra.mxu0 %v2570_v43  ;;  %1857 = vmatpush1.bf16.msra.mxu1 %v2573_v44  ;;  %v2657_v43 = vld [vmem:[%s3717_s1 + $0x4a8] ss:$16 sps:$4 sm:$0xff]   ;;  %v2662_v44 = vld [vmem:[%s3717_s1 + $0x4c4] ss:$16 sps:$4 sm:$0xff]  }
  0x60   :  { %1694 = vmatprep.subr.bf16.mxu0 %v2578_v45  ;;  %1858 = vmatprep.subr.bf16.mxu1 %v2581_v46  ;;  %v2665_v45 = vld [vmem:[%s3717_s1 + $0x4cc] ss:$16 sps:$4 sm:$0xff]   ;;  %v2660_v46 = vld [vmem:[%s3717_s1 + $0x4c0] ss:$16 sps:$4 sm:$0xff]  }
  0x63   :  { %1695 = vmatpush1.bf16.msra.mxu0 %v2576_v47  ;;  %1859 = vmatpush1.bf16.msra.mxu1 %v2579_v48  ;;  %v2663_v47 = vld [vmem:[%s3717_s1 + $0x4c8] ss:$16 sps:$4 sm:$0xff]   ;;  %v2668_v48 = vld [vmem:[%s3717_s1 + $0x4e4] ss:$16 sps:$4 sm:$0xff]  }
  0x64   :  { %1696 = vmatprep.subr.bf16.mxu0 %v2584_v50  ;;  %1860 = vmatprep.subr.bf16.mxu1 %v2587_v51  ;;  %v2671_v50 = vld [vmem:[%s3717_s1 + $0x4ec] ss:$16 sps:$4 sm:$0xff]   ;;  %v2666_v51 = vld [vmem:[%s3717_s1 + $0x4e0] ss:$16 sps:$4 sm:$0xff]  }
  0x67   :  { %1697 = vmatpush1.bf16.msra.mxu0 %v2582_v53  ;;  %1861 = vmatpush1.bf16.msra.mxu1 %v2585_v54  ;;  %v2669_v53 = vld [vmem:[%s3717_s1 + $0x4e8] ss:$16 sps:$4 sm:$0xff]   ;;  %v2674_v54 = vld [vmem:[%s3717_s1 + $0x504] ss:$16 sps:$4 sm:$0xff]  }
  0x68   :  { %1698 = vmatprep.subr.bf16.mxu0 %v2590_v55  ;;  %1862 = vmatprep.subr.bf16.mxu1 %v2593_v56  ;;  %v2677_v55 = vld [vmem:[%s3717_s1 + $0x50c] ss:$16 sps:$4 sm:$0xff]   ;;  %v2672_v56 = vld [vmem:[%s3717_s1 + $0x500] ss:$16 sps:$4 sm:$0xff]  }
  0x6b   :  { %1699 = vmatpush1.bf16.msra.mxu0 %v2588_v57  ;;  %1863 = vmatpush1.bf16.msra.mxu1 %v2591_v58  ;;  %v2675_v57 = vld [vmem:[%s3717_s1 + $0x508] ss:$16 sps:$4 sm:$0xff]   ;;  %v2680_v58 = vld [vmem:[%s3717_s1 + $0x524] ss:$16 sps:$4 sm:$0xff]  }
  0x6c   :  { %1700 = vmatprep.subr.bf16.mxu0 %v2596_v59  ;;  %1864 = vmatprep.subr.bf16.mxu1 %v2599_v60  ;;  %v2683_v59 = vld [vmem:[%s3717_s1 + $0x52c] ss:$16 sps:$4 sm:$0xff]   ;;  %v2678_v60 = vld [vmem:[%s3717_s1 + $0x520] ss:$16 sps:$4 sm:$0xff]  }
  0x6f   :  { %1701 = vmatpush1.bf16.msra.mxu0 %v2594_v61  ;;  %1865 = vmatpush1.bf16.msra.mxu1 %v2597_v62  ;;  %v2681_v61 = vld [vmem:[%s3717_s1 + $0x528] ss:$16 sps:$4 sm:$0xff]   ;;  %v2686_v62 = vld [vmem:[%s3717_s1 + $0x544] ss:$16 sps:$4 sm:$0xff]  }
  0x70   :  { %1702 = vmatprep.subr.bf16.mxu0 %v2602_v63  ;;  %1866 = vmatprep.subr.bf16.mxu1 %v2605_v0  ;;  %v2689_v63 = vld [vmem:[%s3717_s1 + $0x54c] ss:$16 sps:$4 sm:$0xff]   ;;  %v2684_v0 = vld [vmem:[%s3717_s1 + $0x540] ss:$16 sps:$4 sm:$0xff]  }
  0x73   :  { %1703 = vmatpush1.bf16.msra.mxu0 %v2600_v1  ;;  %1867 = vmatpush1.bf16.msra.mxu1 %v2603_v2  ;;  %v2687_v1 = vld [vmem:[%s3717_s1 + $0x548] ss:$16 sps:$4 sm:$0xff]   ;;  %v2692_v2 = vld [vmem:[%s3717_s1 + $0x564] ss:$16 sps:$4 sm:$0xff]  }
  0x74   :  { %1704 = vmatprep.subr.bf16.mxu0 %v2608_v3  ;;  %1868 = vmatprep.subr.bf16.mxu1 %v2611_v4  ;;  %v2695_v3 = vld [vmem:[%s3717_s1 + $0x56c] ss:$16 sps:$4 sm:$0xff]   ;;  %v2690_v4 = vld [vmem:[%s3717_s1 + $0x560] ss:$16 sps:$4 sm:$0xff]  }
  0x77   :  { %1705 = vmatpush1.bf16.msra.mxu0 %v2606_v5  ;;  %1869 = vmatpush1.bf16.msra.mxu1 %v2609_v6  ;;  %v2693_v5 = vld [vmem:[%s3717_s1 + $0x568] ss:$16 sps:$4 sm:$0xff]   ;;  %v2698_v6 = vld [vmem:[%s3717_s1 + $0x584] ss:$16 sps:$4 sm:$0xff]  }
  0x78   :  { %1706 = vmatprep.subr.bf16.mxu0 %v2614_v7  ;;  %1870 = vmatprep.subr.bf16.mxu1 %v2617_v8  ;;  %v2701_v7 = vld [vmem:[%s3717_s1 + $0x58c] ss:$16 sps:$4 sm:$0xff]   ;;  %v2696_v8 = vld [vmem:[%s3717_s1 + $0x580] ss:$16 sps:$4 sm:$0xff]  }
  0x7b   :  { %1707 = vmatpush1.bf16.msra.mxu0 %v2612_v10  ;;  %1871 = vmatpush1.bf16.msra.mxu1 %v2615_v11  ;;  %v2704_v10 = vld [vmem:[%s3717_s1 + $0x5a4] ss:$16 sps:$4 sm:$0xff]   ;;  %v2707_v11 = vld [vmem:[%s3717_s1 + $0x5ac] ss:$16 sps:$4 sm:$0xff]  }
  0x7c   :  { %1708 = vmatprep.subr.bf16.mxu0 %v2620_v12  ;;  %1872 = vmatprep.subr.bf16.mxu1 %v2623_v52  ;;  %v2702_v12 = vld [vmem:[%s3717_s1 + $0x5a0] ss:$16 sps:$4 sm:$0xff]   ;;  %v2705_v52 = vld [vmem:[%s3717_s1 + $0x5a8] ss:$16 sps:$4 sm:$0xff]  }
  0x7f   :  { %1709 = vmatpush1.bf16.msra.mxu0 %v2618_v15  ;;  %1873 = vmatpush1.bf16.msra.mxu1 %v2621_v16  ;;  %v2710_v15 = vld [vmem:[%s3717_s1 + $0x5c4] ss:$16 sps:$4 sm:$0xff]   ;;  %v2713_v16 = vld [vmem:[%s3717_s1 + $0x5cc] ss:$16 sps:$4 sm:$0xff]  }
  0x80   :  { %1719 = vmatprep.subr.bf16.mxu0 %v2626_v17  ;;  %1883 = vmatprep.subr.bf16.mxu1 %v2629_v18  ;;  %v2708_v17 = vld [vmem:[%s3717_s1 + $0x5c0] ss:$16 sps:$4 sm:$0xff]   ;;  %v2711_v18 = vld [vmem:[%s3717_s1 + $0x5c8] ss:$16 sps:$4 sm:$0xff]  }
  0x82   :  { %1711 = vmatmul.mubr.bf16.vlgmr.msra.gmra.mrb[0].mxu0 %v345_v21  ;;  %1875 = vmatmul.mubr.bf16.vlgmr.msra.gmra.mrb[0].mxu1 %v345_v21  ;;  %v2714_v21 = vld [vmem:[%s3717_s1 + $0x5e0] ss:$16 sps:$4 sm:$0xff]  }
  0x83   :  { %1720 = vmatpush1.bf16.msra.mxu0 %v2624_v20  ;;  %1884 = vmatpush1.bf16.msra.mxu1 %v2627_v22  ;;  %v2719_v20 = vld [vmem:[%s3717_s1 + $0x5ec] ss:$16 sps:$4 sm:$0xff]   ;;  %v2717_v22 = vld [vmem:[%s3717_s1 + $0x5e8] ss:$16 sps:$4 sm:$0xff]  }
  0x84   :  { %1721 = vmatprep.subr.bf16.mxu0 %v2632_v23  ;;  %1885 = vmatprep.subr.bf16.mxu1 %v2635_v24  ;;  %v2723_v23 = vld [vmem:[%s3717_s1 + $0x604] ss:$16 sps:$4 sm:$0xff]   ;;  %v2726_v24 = vld [vmem:[%s3717_s1 + $0x60c] ss:$16 sps:$4 sm:$0xff]  }
  0x85   :  { %1751 = vmatprep.mubr.bf16.mxu0 %v3286_v25  ;;  %1915 = vmatprep.mubr.bf16.mxu1 %v3286_v25 }
  0x87   :  { %1722 = vmatpush1.bf16.msra.mxu0 %v2630_v13  ;;  %1886 = vmatpush1.bf16.msra.mxu1 %v2633_v26  ;;  %v3472_v13 = vrot.slane %v3255_v14, %v2991_v49  ;;  %v2721_v26 = vld [vmem:[%s3717_s1 + $0x600] ss:$16 sps:$4 sm:$0xff]   ;;  %v2732_v14 = vld [vmem:[%s3717_s1 + $0x62c] ss:$16 sps:$4 sm:$0xff]  }
  0x88   :  { %1723 = vmatprep.subr.bf16.mxu0 %v2638_v27  ;;  %1887 = vmatprep.subr.bf16.mxu1 %v2641_v28  ;;  %v2724_v27 = vld [vmem:[%s3717_s1 + $0x608] ss:$16 sps:$4 sm:$0xff]   ;;  %v2729_v28 = vld [vmem:[%s3717_s1 + $0x624] ss:$16 sps:$4 sm:$0xff]  }
  0x8b   :  { %1724 = vmatpush1.bf16.msra.mxu0 %v2636_v29  ;;  %1888 = vmatpush1.bf16.msra.mxu1 %v2639_v30  ;;  %v348_v29 = vcombine.high %v3286_v25, %v3286_v25  ;;  %v2727_v30 = vld [vmem:[%s3717_s1 + $0x620] ss:$16 sps:$4 sm:$0xff]   ;;  %v2735_v25 = vld [vmem:[%s3717_s1 + $0x644] ss:$16 sps:$4 sm:$0xff]  }
  0x8c   :  { %1725 = vmatprep.subr.bf16.mxu0 %v2644_v31  ;;  %1889 = vmatprep.subr.bf16.mxu1 %v2647_v32  ;;  %v2730_v31 = vld [vmem:[%s3717_s1 + $0x628] ss:$16 sps:$4 sm:$0xff]   ;;  %v2738_v32 = vld [vmem:[%s3717_s1 + $0x64c] ss:$16 sps:$4 sm:$0xff]  }
  0x8f   :  { %1726 = vmatpush1.bf16.msra.mxu0 %v2642_v33  ;;  %1890 = vmatpush1.bf16.msra.mxu1 %v2645_v34  ;;  %v2733_v33 = vld [vmem:[%s3717_s1 + $0x640] ss:$16 sps:$4 sm:$0xff]   ;;  %v2736_v34 = vld [vmem:[%s3717_s1 + $0x648] ss:$16 sps:$4 sm:$0xff]  }
  0x90   :  { %1727 = vmatprep.subr.bf16.mxu0 %v2650_v35  ;;  %1891 = vmatprep.subr.bf16.mxu1 %v2653_v36  ;;  %v2741_v35 = vld [vmem:[%s3717_s1 + $0x664] ss:$16 sps:$4 sm:$0xff]   ;;  %v2744_v36 = vld [vmem:[%s3717_s1 + $0x66c] ss:$16 sps:$4 sm:$0xff]  }
  0x93   :  { %1728 = vmatpush1.bf16.msra.mxu0 %v2648_v37  ;;  %1892 = vmatpush1.bf16.msra.mxu1 %v2651_v38  ;;  %v2739_v37 = vld [vmem:[%s3717_s1 + $0x660] ss:$16 sps:$4 sm:$0xff]   ;;  %v2742_v38 = vld [vmem:[%s3717_s1 + $0x668] ss:$16 sps:$4 sm:$0xff]  }
  0x94   :  { %1729 = vmatprep.subr.bf16.mxu0 %v2656_v39  ;;  %1893 = vmatprep.subr.bf16.mxu1 %v2659_v40  ;;  %v2747_v39 = vld [vmem:[%s3717_s1 + $0x684] ss:$16 sps:$4 sm:$0xff]   ;;  %v2750_v40 = vld [vmem:[%s3717_s1 + $0x68c] ss:$16 sps:$4 sm:$0xff]  }
  0x97   :  { %1730 = vmatpush1.bf16.msra.mxu0 %v2654_v41  ;;  %1894 = vmatpush1.bf16.msra.mxu1 %v2657_v43  ;;  %v2745_v41 = vld [vmem:[%s3717_s1 + $0x680] ss:$16 sps:$4 sm:$0xff]   ;;  %v2748_v43 = vld [vmem:[%s3717_s1 + $0x688] ss:$16 sps:$4 sm:$0xff]  }
  0x98   :  { %1731 = vmatprep.subr.bf16.mxu0 %v2662_v44  ;;  %1895 = vmatprep.subr.bf16.mxu1 %v2665_v45  ;;  %v2753_v44 = vld [vmem:[%s3717_s1 + $0x6a4] ss:$16 sps:$4 sm:$0xff]   ;;  %v2756_v45 = vld [vmem:[%s3717_s1 + $0x6ac] ss:$16 sps:$4 sm:$0xff]  }
  0x9b   :  { %1732 = vmatpush1.bf16.msra.mxu0 %v2660_v46  ;;  %1896 = vmatpush1.bf16.msra.mxu1 %v2663_v47  ;;  %v2751_v46 = vld [vmem:[%s3717_s1 + $0x6a0] ss:$16 sps:$4 sm:$0xff]   ;;  %v2754_v47 = vld [vmem:[%s3717_s1 + $0x6a8] ss:$16 sps:$4 sm:$0xff]  }
  0x9c   :  { %1733 = vmatprep.subr.bf16.mxu0 %v2668_v48  ;;  %1897 = vmatprep.subr.bf16.mxu1 %v2671_v50  ;;  %v2759_v48 = vld [vmem:[%s3717_s1 + $0x6c4] ss:$16 sps:$4 sm:$0xff]   ;;  %v2762_v50 = vld [vmem:[%s3717_s1 + $0x6cc] ss:$16 sps:$4 sm:$0xff]  }
  0x9f   :  { %1734 = vmatpush1.bf16.msra.mxu0 %v2666_v51  ;;  %1898 = vmatpush1.bf16.msra.mxu1 %v2669_v53  ;;  %v2757_v51 = vld [vmem:[%s3717_s1 + $0x6c0] ss:$16 sps:$4 sm:$0xff]   ;;  %v2760_v53 = vld [vmem:[%s3717_s1 + $0x6c8] ss:$16 sps:$4 sm:$0xff]  }
  0xa0   :  { %1735 = vmatprep.subr.bf16.mxu0 %v2674_v54  ;;  %1899 = vmatprep.subr.bf16.mxu1 %v2677_v55  ;;  %v2765_v54 = vld [vmem:[%s3717_s1 + $0x6e4] ss:$16 sps:$4 sm:$0xff]   ;;  %v2768_v55 = vld [vmem:[%s3717_s1 + $0x6ec] ss:$16 sps:$4 sm:$0xff]  }
  0xa3   :  { %1736 = vmatpush1.bf16.msra.mxu0 %v2672_v56  ;;  %1900 = vmatpush1.bf16.msra.mxu1 %v2675_v57  ;;  %v2763_v56 = vld [vmem:[%s3717_s1 + $0x6e0] ss:$16 sps:$4 sm:$0xff]   ;;  %v2766_v57 = vld [vmem:[%s3717_s1 + $0x6e8] ss:$16 sps:$4 sm:$0xff]  }
  0xa4   :  { %1737 = vmatprep.subr.bf16.mxu0 %v2680_v58  ;;  %1901 = vmatprep.subr.bf16.mxu1 %v2683_v59  ;;  %v2771_v58 = vld [vmem:[%s3717_s1 + $0x704] ss:$16 sps:$4 sm:$0xff]   ;;  %v2774_v59 = vld [vmem:[%s3717_s1 + $0x70c] ss:$16 sps:$4 sm:$0xff]  }
  0xa7   :  { %1738 = vmatpush1.bf16.msra.mxu0 %v2678_v60  ;;  %1902 = vmatpush1.bf16.msra.mxu1 %v2681_v61  ;;  %v2769_v60 = vld [vmem:[%s3717_s1 + $0x700] ss:$16 sps:$4 sm:$0xff]   ;;  %v2772_v61 = vld [vmem:[%s3717_s1 + $0x708] ss:$16 sps:$4 sm:$0xff]  }
  0xa8   :  { %1739 = vmatprep.subr.bf16.mxu0 %v2686_v62  ;;  %1903 = vmatprep.subr.bf16.mxu1 %v2689_v63  ;;  %v2777_v62 = vld [vmem:[%s3717_s1 + $0x724] ss:$16 sps:$4 sm:$0xff]   ;;  %v2780_v63 = vld [vmem:[%s3717_s1 + $0x72c] ss:$16 sps:$4 sm:$0xff]  }
  0xab   :  { %1740 = vmatpush1.bf16.msra.mxu0 %v2684_v0  ;;  %1904 = vmatpush1.bf16.msra.mxu1 %v2687_v1  ;;  %v2775_v0 = vld [vmem:[%s3717_s1 + $0x720] ss:$16 sps:$4 sm:$0xff]   ;;  %v2778_v1 = vld [vmem:[%s3717_s1 + $0x728] ss:$16 sps:$4 sm:$0xff]  }
  0xac   :  { %1741 = vmatprep.subr.bf16.mxu0 %v2692_v2  ;;  %1905 = vmatprep.subr.bf16.mxu1 %v2695_v3  ;;  %v2783_v2 = vld [vmem:[%s3717_s1 + $0x744] ss:$16 sps:$4 sm:$0xff]   ;;  %v2786_v3 = vld [vmem:[%s3717_s1 + $0x74c] ss:$16 sps:$4 sm:$0xff]  }
  0xaf   :  { %1742 = vmatpush1.bf16.msra.mxu0 %v2690_v4  ;;  %1906 = vmatpush1.bf16.msra.mxu1 %v2693_v5  ;;  %v2781_v4 = vld [vmem:[%s3717_s1 + $0x740] ss:$16 sps:$4 sm:$0xff]   ;;  %v2784_v5 = vld [vmem:[%s3717_s1 + $0x748] ss:$16 sps:$4 sm:$0xff]  }
  0xb0   :  { %1743 = vmatprep.subr.bf16.mxu0 %v2698_v6  ;;  %1907 = vmatprep.subr.bf16.mxu1 %v2701_v7  ;;  %v2789_v6 = vld [vmem:[%s3717_s1 + $0x764] ss:$16 sps:$4 sm:$0xff]   ;;  %v2792_v7 = vld [vmem:[%s3717_s1 + $0x76c] ss:$16 sps:$4 sm:$0xff]  }
  0xb3   :  { %1744 = vmatpush1.bf16.msra.mxu0 %v2696_v8  ;;  %1908 = vmatpush1.bf16.msra.mxu1 %v2699_v9  ;;  %v2787_v8 = vld [vmem:[%s3717_s1 + $0x760] ss:$16 sps:$4 sm:$0xff]   ;;  %v2790_v9 = vld [vmem:[%s3717_s1 + $0x768] ss:$16 sps:$4 sm:$0xff]  }
  0xb4   :  { %1745 = vmatprep.subr.bf16.mxu0 %v2704_v10  ;;  %1909 = vmatprep.subr.bf16.mxu1 %v2707_v11  ;;  %v2795_v10 = vld [vmem:[%s3717_s1 + $0x784] ss:$16 sps:$4 sm:$0xff]   ;;  %v2798_v11 = vld [vmem:[%s3717_s1 + $0x78c] ss:$16 sps:$4 sm:$0xff]  }
  0xb7   :  { %1746 = vmatpush1.bf16.msra.mxu0 %v2702_v12  ;;  %1910 = vmatpush1.bf16.msra.mxu1 %v2705_v52  ;;  %v2793_v12 = vld [vmem:[%s3717_s1 + $0x780] ss:$16 sps:$4 sm:$0xff]   ;;  %v2796_v52 = vld [vmem:[%s3717_s1 + $0x788] ss:$16 sps:$4 sm:$0xff]  }
  0xb8   :  { %1747 = vmatprep.subr.bf16.mxu0 %v2710_v15  ;;  %1911 = vmatprep.subr.bf16.mxu1 %v2713_v16  ;;  %v2801_v15 = vld [vmem:[%s3717_s1 + $0x7a4] ss:$16 sps:$4 sm:$0xff]   ;;  %v2804_v16 = vld [vmem:[%s3717_s1 + $0x7ac] ss:$16 sps:$4 sm:$0xff]  }
  0xbb   :  { %1748 = vmatpush1.bf16.msra.mxu0 %v2708_v17  ;;  %1912 = vmatpush1.bf16.msra.mxu1 %v2711_v18  ;;  %v2799_v17 = vld [vmem:[%s3717_s1 + $0x7a0] ss:$16 sps:$4 sm:$0xff]   ;;  %v2802_v18 = vld [vmem:[%s3717_s1 + $0x7a8] ss:$16 sps:$4 sm:$0xff]  }
  0xbc   :  { %1749 = vmatprep.subr.bf16.mxu0 %v2716_v19  ;;  %1913 = vmatprep.subr.bf16.mxu1 %v2719_v20  ;;  %v2807_v19 = vld [vmem:[%s3717_s1 + $0x7c4] ss:$16 sps:$4 sm:$0xff]   ;;  %v2810_v20 = vld [vmem:[%s3717_s1 + $0x7cc] ss:$16 sps:$4 sm:$0xff]  }
  0xbf   :  { %1750 = vmatpush1.bf16.msra.mxu0 %v2714_v21  ;;  %1914 = vmatpush1.bf16.msra.mxu1 %v2717_v22  ;;  %v2805_v21 = vld [vmem:[%s3717_s1 + $0x7c0] ss:$16 sps:$4 sm:$0xff]   ;;  %v2808_v22 = vld [vmem:[%s3717_s1 + $0x7c8] ss:$16 sps:$4 sm:$0xff]  }
  0xc0   :  { %1760 = vmatprep.subr.bf16.mxu0 %v2723_v23  ;;  %1924 = vmatprep.subr.bf16.mxu1 %v2726_v24  ;;  %v2813_v23 = vld [vmem:[%s3717_s1 + $0x7e4] ss:$16 sps:$4 sm:$0xff]   ;;  %v2816_v24 = vld [vmem:[%s3717_s1 + $0x7ec] ss:$16 sps:$4 sm:$0xff]  }
  0xc2   :  { %1752 = vmatmul.mubr.bf16.vlgmr.msra.gmra.mrb[0].mxu0 %v3472_v13  ;;  %1916 = vmatmul.mubr.bf16.vlgmr.msra.gmra.mrb[0].mxu1 %v3472_v13 }
  0xc3   :  { %1761 = vmatpush1.bf16.msra.mxu0 %v2721_v26  ;;  %1925 = vmatpush1.bf16.msra.mxu1 %v2724_v27  ;;  %v2811_v26 = vld [vmem:[%s3717_s1 + $0x7e0] ss:$16 sps:$4 sm:$0xff]   ;;  %v2814_v27 = vld [vmem:[%s3717_s1 + $0x7e8] ss:$16 sps:$4 sm:$0xff]  }
  0xc4   :  { %1762 = vmatprep.subr.bf16.mxu0 %v2729_v28  ;;  %1926 = vmatprep.subr.bf16.mxu1 %v2732_v14  ;;  %v346_v28 = vcombine.high %v3472_v13, %v3472_v13  ;;  %v3667_v14 = vsub.s32 0, %v2973_v42 }
  0xc5   :  { %1792 = vmatprep.mubr.bf16.mxu0 %v348_v29  ;;  %1956 = vmatprep.mubr.bf16.mxu1 %v348_v29  ;;  %v3670_v29 = vsub.s32 2, %v2973_v42 }
  0xc7   :  { %1763 = vmatpush1.bf16.msra.mxu0 %v2727_v30  ;;  %1927 = vmatpush1.bf16.msra.mxu1 %v2730_v31  ;;  %v277_v30 = vld [vmem:[%s3719_s2] sm:$0xf]  ;;  %v3676_v31 = vsub.s32 1, %v2973_v42 }
  0xc8   :  { %1764 = vmatprep.subr.bf16.mxu0 %v2735_v25  ;;  %1928 = vmatprep.subr.bf16.mxu1 %v2738_v32  ;;  %v3679_v25 = vsub.s32 3, %v2973_v42  ;;  %v282_v13 = vrot.slane %v277_v30, %v3667_v14  ;;  %v290_v32 = vrot.slane %v277_v30, %v3670_v29 }
  0xcb   :  { %1765 = vmatpush1.bf16.msra.mxu0 %v2733_v33  ;;  %1929 = vmatpush1.bf16.msra.mxu1 %v2736_v34  ;;  %v286_v33 = vrot.slane %v277_v30, %v3676_v31  ;;  %v294_v34 = vrot.slane %v277_v30, %v3679_v25 }
  0xcc   :  { %1766 = vmatprep.subr.bf16.mxu0 %v2741_v35  ;;  %1930 = vmatprep.subr.bf16.mxu1 %v2744_v36 }
  0xcf   :  { %1767 = vmatpush1.bf16.msra.mxu0 %v2739_v37  ;;  %1931 = vmatpush1.bf16.msra.mxu1 %v2742_v38 }
  0xd0   :  { %1768 = vmatprep.subr.bf16.mxu0 %v2747_v39  ;;  %1932 = vmatprep.subr.bf16.mxu1 %v2750_v40 }
  0xd3   :  { %1769 = vmatpush1.bf16.msra.mxu0 %v2745_v41  ;;  %1933 = vmatpush1.bf16.msra.mxu1 %v2748_v43 }
  0xd4   :  { %1770 = vmatprep.subr.bf16.mxu0 %v2753_v44  ;;  %1934 = vmatprep.subr.bf16.mxu1 %v2756_v45 }
  0xd7   :  { %1771 = vmatpush1.bf16.msra.mxu0 %v2751_v46  ;;  %1935 = vmatpush1.bf16.msra.mxu1 %v2754_v47 }
  0xd8   :  { %1772 = vmatprep.subr.bf16.mxu0 %v2759_v48  ;;  %1936 = vmatprep.subr.bf16.mxu1 %v2762_v50 }
  0xdb   :  { %1773 = vmatpush1.bf16.msra.mxu0 %v2757_v51  ;;  %1937 = vmatpush1.bf16.msra.mxu1 %v2760_v53 }
  0xdc   :  { %1774 = vmatprep.subr.bf16.mxu0 %v2765_v54  ;;  %1938 = vmatprep.subr.bf16.mxu1 %v2768_v55 }
  0xdf   :  { %1775 = vmatpush1.bf16.msra.mxu0 %v2763_v56  ;;  %1939 = vmatpush1.bf16.msra.mxu1 %v2766_v57 }
  0xe0   :  { %1776 = vmatprep.subr.bf16.mxu0 %v2771_v58  ;;  %1940 = vmatprep.subr.bf16.mxu1 %v2774_v59 }
  0xe3   :  { %1777 = vmatpush1.bf16.msra.mxu0 %v2769_v60  ;;  %1941 = vmatpush1.bf16.msra.mxu1 %v2772_v61 }
  0xe4   :  { %1778 = vmatprep.subr.bf16.mxu0 %v2777_v62  ;;  %1942 = vmatprep.subr.bf16.mxu1 %v2780_v63 }
  0xe7   :  { %1779 = vmatpush1.bf16.msra.mxu0 %v2775_v0  ;;  %1943 = vmatpush1.bf16.msra.mxu1 %v2778_v1 }
  0xe8   :  { %1780 = vmatprep.subr.bf16.mxu0 %v2783_v2  ;;  %1944 = vmatprep.subr.bf16.mxu1 %v2786_v3 }
  0xeb   :  { %1781 = vmatpush1.bf16.msra.mxu0 %v2781_v4  ;;  %1945 = vmatpush1.bf16.msra.mxu1 %v2784_v5 }
  0xec   :  { %1782 = vmatprep.subr.bf16.mxu0 %v2789_v6  ;;  %1946 = vmatprep.subr.bf16.mxu1 %v2792_v7 }
  0xef   :  { %1783 = vmatpush1.bf16.msra.mxu0 %v2787_v8  ;;  %1947 = vmatpush1.bf16.msra.mxu1 %v2790_v9 }
  0xf0   :  { %1784 = vmatprep.subr.bf16.mxu0 %v2795_v10  ;;  %1948 = vmatprep.subr.bf16.mxu1 %v2798_v11 }
  0xf3   :  { %1785 = vmatpush1.bf16.msra.mxu0 %v2793_v12  ;;  %1949 = vmatpush1.bf16.msra.mxu1 %v2796_v52 }
  0xf4   :  { %1786 = vmatprep.subr.bf16.mxu0 %v2801_v15  ;;  %1950 = vmatprep.subr.bf16.mxu1 %v2804_v16 }
  0xf7   :  { %1787 = vmatpush1.bf16.msra.mxu0 %v2799_v17  ;;  %1951 = vmatpush1.bf16.msra.mxu1 %v2802_v18 }
  0xf8   :  { %1788 = vmatprep.subr.bf16.mxu0 %v2807_v19  ;;  %1952 = vmatprep.subr.bf16.mxu1 %v2810_v20 }
  0xfb   :  { %1789 = vmatpush1.bf16.msra.mxu0 %v2805_v21  ;;  %1953 = vmatpush1.bf16.msra.mxu1 %v2808_v22 }
  0xfc   :  { %1790 = vmatprep.subr.bf16.mxu0 %v2813_v23  ;;  %1954 = vmatprep.subr.bf16.mxu1 %v2816_v24 }
  0xff   :  { %1791 = vmatpush1.bf16.msra.mxu0 %v2811_v26  ;;  %1955 = vmatpush1.bf16.msra.mxu1 %v2814_v27 }
 0x102   :  { %1793 = vmatmul.mubr.bf16.vlgmr.msra.gmra.mrb[0].mxu0 %v346_v28  ;;  %1957 = vmatmul.mubr.bf16.vlgmr.msra.gmra.mrb[0].mxu1 %v346_v28 }
 0x1d5   :  { %v1794_v35 = vpop.f32.mrb[0].mxu0  ;;  %v1958_v36 = vpop.f32.mrb[0].mxu1 }
 0x1d6   :  { %v2403_v37 = vadd.f32 %v1794_v35, %v282_v13  ;;  %v2405_v38 = vadd.f32 %v1958_v36, %v290_v32  ;;  %v1796_v39 = vpop.f32.mrb[1].mxu0  ;;  %v1960_v40 = vpop.f32.mrb[1].mxu1 }
 0x1d7   :  { %v2404_v41 = vadd.f32 %v1796_v39, %v286_v33  ;;  %v2406_v43 = vadd.f32 %v1960_v40, %v294_v34  ;;  %v1798_v44 = vpop.f32.mrb[2].mxu0  ;;  %v1962_v42 = vpop.f32.mrb[2].mxu1 }
 0x1d8   :  { %v1966_v45 = vsel %vm1965_vm0, %v2403_v37, 0.0  ;;  %v1980_v46 = vsel %vm1965_vm0, %v2405_v38, 0.0  ;;  %v1799_v47 = vpop.f32.mrb[3].mxu0  ;;  %v1963_v48 = vpop.f32.mrb[3].mxu1 }
 0x1d9   :  { %v1967_v50 = vrot.slane %v1966_v45, 4  ;;  %v1981_v51 = vrot.slane %v1980_v46, 4  ;;  %v1973_v53 = vsel %vm1965_vm0, %v2404_v41, 0.0  ;;  %v1987_v54 = vsel %vm1965_vm0, %v2406_v43, 0.0 }
 0x1da   :  { %v1974_v55 = vrot.slane %v1973_v53, 4  ;;  %v1988_v56 = vrot.slane %v1987_v54, 4 }
 0x1db   :  { %v1968_v57 = vadd.f32 %v1967_v50, %v1966_v45  ;;  %v1982_v58 = vadd.f32 %v1981_v51, %v1980_v46 }
 0x1dc   :  { %v1975_v59 = vadd.f32 %v1974_v55, %v1973_v53  ;;  %v1989_v60 = vadd.f32 %v1988_v56, %v1987_v54 }
 0x1dd   :  { %v1969_v61 = vrot.slane %v1968_v57, 2  ;;  %v1983_v62 = vrot.slane %v1982_v58, 2 }
 0x1de   :  { %v1976_v63 = vrot.slane %v1975_v59, 2  ;;  %v1990_v0 = vrot.slane %v1989_v60, 2 }
 0x1df   :  { %v1970_v1 = vadd.f32 %v1969_v61, %v1968_v57  ;;  %v1984_v2 = vadd.f32 %v1983_v62, %v1982_v58 }
 0x1e0   :  { %v1977_v3 = vadd.f32 %v1976_v63, %v1975_v59  ;;  %v1991_v4 = vadd.f32 %v1990_v0, %v1989_v60 }
 0x1e1   :  { %v1971_v5 = vrot.slane %v1970_v1, 1  ;;  %v1985_v6 = vrot.slane %v1984_v2, 1 }
 0x1e2   :  { %v1978_v7 = vrot.slane %v1977_v3, 1  ;;  %v1992_v8 = vrot.slane %v1991_v4, 1 }
 0x1e3   :  { %v1972_v9 = vadd.f32 %v1971_v5, %v1970_v1  ;;  %v1986_v10 = vadd.f32 %v1985_v6, %v1984_v2  ;;  %v2038_v2 = vld [vmem:[%s3720_s3] sm:$0xf] }
 0x1e4   :  { %v1979_v11 = vadd.f32 %v1978_v7, %v1977_v3  ;;  %v1993_v12 = vadd.f32 %v1992_v8, %v1991_v4  ;;  %v2043_v3 = vrot.slane %v2038_v2, %v3667_v14  ;;  %v2076_v4 = vld [vmem:[%s3721_s4] sm:$0xf]  ;;  %v2051_v5 = vrot.slane %v2038_v2, %v3670_v29 }
 0x1e5   :  { %v1994_v52 = vmul.f32 0.5, %v1972_v9  ;;  %v1996_v15 = vmul.f32 0.5, %v1986_v10  ;;  %v2047_v6 = vrot.slane %v2038_v2, %v3676_v31  ;;  %v2055_v7 = vrot.slane %v2038_v2, %v3679_v25 }
 0x1e6   :  { %v1995_v16 = vmul.f32 0.5, %v1979_v11  ;;  %v1997_v17 = vmul.f32 0.5, %v1993_v12  ;;  %v2081_v9 = vrot.slane %v2076_v4, %v3667_v14  ;;  %v2089_v12 = vrot.slane %v2076_v4, %v3670_v29 }
 0x1e7   :  { %v1998_v18 = vsub.f32 %v2403_v37, %v1994_v52  ;;  %v2000_v19 = vsub.f32 %v2405_v38, %v1996_v15 }
 0x1e8   :  { %v1999_v20 = vsub.f32 %v2404_v41, %v1995_v16  ;;  %v3689_v21 = vsub.f32 %v2406_v43, %v1997_v17  ;;  %v2085_v17 = vrot.slane %v2076_v4, %v3676_v31 }
 0x1e9   :  { %v2002_v22 = vmul.f32 %v1998_v18, %v1998_v18  ;;  %v2004_v23 = vmul.f32 %v2000_v19, %v2000_v19  ;;  %v2060_v8 = vmul.f32 %v2043_v3, %v1998_v18  ;;  %v2062_v11 = vmul.f32 %v2051_v5, %v2000_v19 }
 0x1ea   :  { %v2003_v24 = vmul.f32 %v1999_v20, %v1999_v20  ;;  %v2005_v26 = vmul.f32 %v3689_v21, %v3689_v21  ;;  %v2061_v16 = vmul.f32 %v2047_v6, %v1999_v20 }
 0x1eb   :  { %v2006_v27 = vsel %vm1965_vm0, %v2002_v22, 0.0  ;;  %v2020_v28 = vsel %vm1965_vm0, %v2004_v23, 0.0 }
 0x1ec   :  { %v2007_v30 = vrot.slane %v2006_v27, 4  ;;  %v2021_v13 = vrot.slane %v2020_v28, 4  ;;  %v2013_v32 = vsel %vm1965_vm0, %v2003_v24, 0.0  ;;  %v2027_v33 = vsel %vm1965_vm0, %v2005_v26, 0.0 }
 0x1ed   :  { %v2014_v34 = vrot.slane %v2013_v32, 4  ;;  %v2028_v35 = vrot.slane %v2027_v33, 4  ;;  %v2063_v24 = vmul.f32 %v2055_v7, %v3689_v21  ;;  %v2093_v26 = vrot.slane %v2076_v4, %v3679_v25 }
 0x1ee   :  { %v2008_v36 = vadd.f32 %v2007_v30, %v2006_v27  ;;  %v2022_v37 = vadd.f32 %v2021_v13, %v2020_v28 }
 0x1ef   :  { %v2015_v38 = vadd.f32 %v2014_v34, %v2013_v32  ;;  %v2029_v39 = vadd.f32 %v2028_v35, %v2027_v33 }
 0x1f0   :  { %v2009_v40 = vrot.slane %v2008_v36, 2  ;;  %v2023_v41 = vrot.slane %v2022_v37, 2 }
 0x1f1   :  { %v2016_v43 = vrot.slane %v2015_v38, 2  ;;  %v2030_v44 = vrot.slane %v2029_v39, 2 }
 0x1f2   :  { %v2010_v42 = vadd.f32 %v2009_v40, %v2008_v36  ;;  %v2024_v45 = vadd.f32 %v2023_v41, %v2022_v37 }
 0x1f3   :  { %v2017_v46 = vadd.f32 %v2016_v43, %v2015_v38  ;;  %v2031_v47 = vadd.f32 %v2030_v44, %v2029_v39 }
 0x1f4   :  { %v2011_v48 = vrot.slane %v2010_v42, 1  ;;  %v2025_v50 = vrot.slane %v2024_v45, 1 }
 0x1f5   :  { %v2018_v51 = vrot.slane %v2017_v46, 1  ;;  %v2032_v53 = vrot.slane %v2031_v47, 1 }
 0x1f6   :  { %v2012_v54 = vadd.f32 %v2011_v48, %v2010_v42  ;;  %v2026_v55 = vadd.f32 %v2025_v50, %v2024_v45 }
 0x1f7   :  { %v2019_v56 = vadd.f32 %v2018_v51, %v2017_v46  ;;  %v2033_v57 = vadd.f32 %v2032_v53, %v2031_v47 }
 0x1f8   :  { %v2034_v58 = vmul.f32 0.5, %v2012_v54  ;;  %v2036_v59 = vmul.f32 0.5, %v2026_v55 }
 0x1f9   :  { %v2035_v60 = vmul.f32 0.5, %v2019_v56  ;;  %v2037_v61 = vmul.f32 0.5, %v2033_v57 }
 0x1fa   :  { %v2064_v62 = vadd.f32 1e-05, %v2034_v58  ;;  %v2066_v63 = vadd.f32 1e-05, %v2036_v59 }
 0x1fb   :  { %v2065_v0 = vadd.f32 1e-05, %v2035_v60  ;;  %v2067_v1 = vadd.f32 1e-05, %v2037_v61 }
 0x1fc   :  { %2817 = vrsqrt.f32 %v2064_v62 }
 0x1fd   :  { %2819 = vrsqrt.f32 %v2066_v63 }
 0x1fe   :  { %2821 = vrsqrt.f32 %v2065_v0 }
 0x1ff   :  { %2823 = vrsqrt.f32 %v2067_v1 }
 0x206   :  { %v2818_v10 = vpop.eup %2817 }
 0x207   :  { %v2820_v52 = vpop.eup %2819  ;;  %v2072_v15 = vmul.f32 %v2818_v10, %v2060_v8 }
 0x208   :  { %v2822_v22 = vpop.eup %2821  ;;  %v2074_v23 = vmul.f32 %v2820_v52, %v2062_v11 }
 0x209   :  { %v2824_v27 = vpop.eup %2823  ;;  %v2098_v28 = vadd.f32 %v2081_v9, %v2072_v15  ;;  %v2073_v18 = vmul.f32 %v2822_v22, %v2061_v16 }
 0x20a   :  { %v2100_v30 = vadd.f32 %v2089_v12, %v2074_v23  ;;  %v2075_v14 = vmul.f32 %v2824_v27, %v2063_v24 }
 0x20b   :  { %v2102_v13 = vmax.f32 %v2098_v28, 0.0  ;;  %v2099_v19 = vadd.f32 %v2085_v17, %v2073_v18 }
 0x20c   :  { %v2104_v32 = vmax.f32 %v2100_v30, 0.0  ;;  %v2101_v29 = vadd.f32 %v2093_v26, %v2075_v14 }
 0x20d   :  { %v2103_v33 = vmax.f32 %v2099_v19, 0.0 }
 0x20e   :  { %v2105_v34 = vmax.f32 %v2101_v29, 0.0 }
 0x20f   :  { %v2400_v20 = vpack.c.bf16 %v2103_v33, %v2102_v13 }
 0x210   :  { %v2401_v35 = vpack.c.bf16 %v2105_v34, %v2104_v32 }
 0x211   :  { %v2122_v31 = vrot.slane %v2400_v20, %v2991_v49 }
 0x212   :  { %v2129_v36 = vrot.slane %v2401_v35, %v2991_v49 }
 0x214   :  { %v2130_v21 = vcombine.low %v2122_v31, %v2129_v36 }
 0x216   :  { %2402 = vst.sshfl [vmem:[%s3722_s5] sm:$0x55 pattern:$0x73625140] %v2130_v21 }

// kernel: generator_mwm_forward.11
= control target key start
LH: loop header
LB: loop body
LE: loop exit
PB: predicated region body
PF: predicated region fallthrough
CT: control target
= control target key end

     0   :  { %s4139_s0 = inlined_call_operand.vmem [shape: bf16[2,1024], index: 0, kind: input, shape index: {}]   ;;  %s4140_s1 = inlined_call_operand.hbm [shape: bf16[1024,1024], index: 1, kind: input, shape index: {}]   ;;  %s4141_s2 = inlined_call_operand.hbm [shape: f32[1,1024], index: 2, kind: input, shape index: {}]   ;;  %s4142_s3 = inlined_call_operand.hbm [shape: f32[1,1024], index: 3, kind: input, shape index: {}]   ;;  %s4143_s4 = inlined_call_operand.hbm [shape: f32[1,1024], index: 4, kind: input, shape index: {}]   ;;  %s4144_s5 = inlined_call_operand.vmem [shape: bf16[2,1024], index: 5, kind: output, shape index: {}]  }
   0x1   :  { %4148 = sst [smem:[#allocation12_spill]] %s4140_s1 }
   0x2   :  { %4149 = sst [smem:[#allocation13_spill]] %s4141_s2 }
   0x3   :  { %10 = vsyncpa [#allocation3], 0 }
   0x4   :  { %12 = vsyncpa [#allocation3 + $0x1], 0 }
   0x5   :  { %13 = vsyncpa [#allocation5], 0 }
   0x6   :  { %15 = vsyncpa [#allocation5 + $0x1], 0 }
   0x7   :  { %16 = vsyncpa [#allocation8], 0 }
   0x8   :  { %18 = vsyncpa [#allocation8 + $0x1], 0  ;;  %s3574_s18 = smov 0   ;;  %s3576_s19 = smov 0  }
   0x9   :  { %s3578_s20 = smov 0   ;;  %s3580_s21 = smov 0  }
   0xa LB: > { %s3593_s22 = sadd.s32 4294967295, %s3534_s21   ;;  %s3596_s23 = sadd.s32 1, %s3534_s21   ;;  %s3534_s21 = sphi %s3580_s21, %s4163_s21   ;;  %s3530_s20 = sphi %s3578_s20, %s4162_s20   ;;  %s3526_s19 = sphi %s3576_s19, %s4161_s19   ;;  %s3522_s18 = sphi %s3574_s18, %s4160_s18  }
   0xb   : > { %s49_s24 = ssub.s32 %s3534_s21, %s3596_s23  ;;  %s52_s25 = sadd.s32 1, %s3530_s20 }
   0xc   : > { %p50_p0 = scmp.eq.s32.totalorder %s49_s24, 0  ;;  %p59_p1 = scmp.ne.s32.totalorder %s3530_s20, %s3526_s19 }
   0xd   : > { %p60_p2 = scmp.eq.s32.totalorder %s3534_s21, 0  ;;  %p65_p3 = scmp.ne.s32.totalorder %s3526_s19, %s3522_s18 }
   0xe   : > { %s3606_s26 = scalar_select %p50_p0, %s3530_s20, %s52_s25  }
   0xf   : > { %p61_p4 = por %p60_p2, %p59_p1  ;;  %p66_p5 = scmp.eq.s32.totalorder %s3593_s22, 0 }
  0x10   : > { %p2942_p6 = scmp.lt.s32.totalorder %s3534_s21, 2  ;;  %s3615_s28 = sand.u32 1, %s3530_s20  }
  0x11   : > { %p3610_p7 = por %p66_p5, %p65_p3  ;;  %s217_s30 = sand.u32 1, %s3534_s21  }
  0x12   : > { %p3617_p8 = pnand %p2942_p6, %p61_p4  ;;  %s3623_s6 = sshll.u32 %s3615_s28, 2 }
  0x13   : > { %s4150_s27 = scalar_select %p3610_p7, 1, 0 }
  0x14   : > { %s4151_s29 = scalar_select %p3617_p8, 1, 0 }
  0x15   : > { %s3626_s7 = sshll.u32 %s3534_s21, 6  ;;  %s221_s8 = scalar_lea.vmem [#allocation4], %s3623_s6 }
  0x16   : > { %s229_s9 = sshll.u32 %s221_s8, 4  ;;  %s4152_s2 = sld [smem:[#allocation13_spill]]  ;;  %s3635_s9 = int_to_ptr.vmem [resolvable:$true] %s229_s9 }
  0x17   : > { %s3637_s13 = scalar_lea.sflag [#allocation5], %s217_s30  ;;  %p3643_p10 = pneg %p3617_p8 }
  0x1c   : > { %s3633_s12 = scalar_lea.hbm %s4152_s2, %s3626_s7  ;;  %s3377_s18 = scalar_lea.hbm %s4152_s2, 128 }
  0x1d   : > { %s3372_s14 = scalar_lea.hbm %s3633_s12, 64  ;;  %p3378_p13 = scmp.lt.u32.totalorder %s3633_s12, %s4152_s2 }
  0x1e   : > { %p3373_p9 = scmp.ne.s32.totalorder %s3633_s12, %s3372_s14  ;;  %p3379_p0 = scmp.lt.u32.totalorder %s3377_s18, %s3372_s14 }
  0x1f   : > { %p3381_p2 = scmp.lt.u32.totalorder %s3372_s14, %s3633_s12 }
  0x20   : > { %p3375_p11 = pnand %p3643_p10, %p3373_p9  ;;  %p3380_p1 = por %p3379_p0, %p3378_p13 }
  0x22   : > { %p3376_p12 = pneg %p3375_p11  ;;  %p3382_p3 = por %p3381_p2, %p3380_p1 }
  0x24   : > { %p3383_p4 = pnand %p3382_p3, %p3376_p12 }
  0x26   : > { %3386 = shalt.err (!%p3383_p4)
}
  0x27   : > { %s3387_s30 = scalar_lea.vmem %s3635_s9, 64  ;;  %s3536_s8 = smov [#allocation4]  }
  0x28   : > { %p3388_p5 = scmp.ne.s32.totalorder %s3635_s9, %s3387_s30  ;;  %s3392_s10 = sshll.u32 %s3536_s8, 4  ;;  %s3393_s10 = int_to_ptr.vmem [resolvable:$false] %s3392_s10 }
  0x29   : > { %s3394_s11 = scalar_lea.vmem %s3393_s10, 128  ;;  %p3395_p11 = scmp.lt.s32.totalorder %s3635_s9, %s3393_s10 }
  0x2a   : > { %p3390_p6 = pnand %p3388_p5, %p3643_p10  ;;  %p3396_p7 = scmp.lt.s32.totalorder %s3394_s11, %s3387_s30 }
  0x2c   : > { %p3391_p9 = pneg %p3390_p6  ;;  %p3397_p13 = por %p3396_p7, %p3395_p11 }
  0x2e   : > { %p3398_p0 = pnand %p3397_p13, %p3391_p9 }
  0x30   : > { %3401 = shalt.err (!%p3398_p0)
}
  0x31   : > { %2935 = dma.hbm_to_vmem [thread:$0]  (!%p3617_p8), %s3633_s12, 64, %s3635_s9, %s3637_s13  }
  0x32   : > { %p2622_p12 = scmp.ge.s32.totalorder %s3534_s21, 1  ;;  %p272_p1 = scmp.lt.s32.totalorder %s3534_s21, 3 }
  0x33   : > { %s2610_s14 = sshll.u32 %s3615_s28, 11  ;;  %s2889_s17 = sshll.u32 %s3534_s21, 8 }
  0x34   : > { %p3670_p2 = pnand %p2622_p12, %p272_p1  ;;  %s200_s18 = scalar_lea.vmem [#allocation2], %s2610_s14 }
  0x35   : > { %s207_s24 = sshll.u32 %s200_s18, 4  ;;  %s4155_s1 = sld [smem:[#allocation12_spill]]  ;;  %s3680_s24 = int_to_ptr.vmem [resolvable:$true] %s207_s24 }
  0x36   : > { %s4154_s16 = scalar_select %p3670_p2, 1, 0 }
  0x37   : > { %s197_s9 = scalar_lea.sflag [#allocation3], %s3615_s28 }
  0x3b   : > { %s3678_s8 = scalar_lea.hbm %s4155_s1, %s2889_s17  ;;  %s3407_s11 = scalar_lea.hbm %s4155_s1, 65536 }
  0x3c   : > { %s3402_s12 = scalar_lea.hbm %s3678_s8, 32768  ;;  %p3408_p5 = scmp.lt.u32.totalorder %s3678_s8, %s4155_s1 }
  0x3d   : > { %p3403_p7 = scmp.ne.s32.totalorder %s3678_s8, %s3402_s12  ;;  %p3409_p6 = scmp.lt.u32.totalorder %s3407_s11, %s3402_s12 }
  0x3e   : > { %p3411_p11 = scmp.lt.u32.totalorder %s3402_s12, %s3678_s8 }
  0x3f   : > { %p3405_p3 = pnand %p3403_p7, %p3643_p10  ;;  %p3410_p9 = por %p3409_p6, %p3408_p5 }
  0x41   : > { %p3406_p4 = pneg %p3405_p3  ;;  %p3412_p13 = por %p3411_p11, %p3410_p9 }
  0x43   : > { %p3413_p0 = pnand %p3412_p13, %p3406_p4 }
  0x45   : > { %3416 = shalt.err (!%p3413_p0)
}
  0x46   : > { %s3417_s17 = scalar_lea.vmem %s3680_s24, 32768  ;;  %s3537_s25 = smov [#allocation2]  }
  0x47   : > { %p3418_p12 = scmp.ne.s32.totalorder %s3680_s24, %s3417_s17  ;;  %s3422_s30 = sshll.u32 %s3537_s25, 4  ;;  %s3423_s30 = int_to_ptr.vmem [resolvable:$false] %s3422_s30 }
  0x48   : > { %s3424_s21 = scalar_lea.vmem %s3423_s30, 65536  ;;  %p3425_p3 = scmp.lt.s32.totalorder %s3680_s24, %s3423_s30 }
  0x49   : > { %p3420_p1 = pnand %p3418_p12, %p3643_p10  ;;  %p3426_p2 = scmp.lt.s32.totalorder %s3424_s21, %s3417_s17 }
  0x4b   : > { %p3421_p7 = pneg %p3420_p1  ;;  %p3427_p5 = por %p3426_p2, %p3425_p3 }
  0x4d   : > { %p3428_p6 = pnand %p3427_p5, %p3421_p7 }
  0x4f   : > { %3431 = shalt.err (!%p3428_p6)
}
  0x50   : > { %s3538_s12 = smov 512   ;;  %s3539_s10 = smov 256  }
  0x51   : > { %s3540_s11 = smov 16   ;;  %s3710_s17 = scalar_lea.hbm %s4142_s3, %s3626_s7 }
  0x52   : > { %2932 = dma.hbm_to_vmem [thread:$0]  (!%p3617_p8), %s3678_s8, 32768, %s3680_s24, %s197_s9, %s3538_s12, %s3539_s10, %s3540_s11  }
  0x53   : > { %s240_s25 = scalar_lea.vmem [#allocation6], %s3623_s6  ;;  %s3432_s21 = scalar_lea.hbm %s3710_s17, 64 }
  0x54   : > { %s248_s30 = sshll.u32 %s240_s25, 4  ;;  %p3433_p2 = scmp.ne.s32.totalorder %s3710_s17, %s3432_s21  ;;  %s249_s30 = int_to_ptr.vmem [resolvable:$true] %s248_s30 }
  0x55   : > { %s3437_s24 = scalar_lea.hbm %s4142_s3, 128  ;;  %p3438_p11 = scmp.lt.u32.totalorder %s3710_s17, %s4142_s3 }
  0x56   : > { %p3435_p4 = pnand %p3433_p2, %p3643_p10  ;;  %p3439_p13 = scmp.lt.u32.totalorder %s3437_s24, %s3432_s21 }
  0x57   : > { %p3441_p12 = scmp.lt.u32.totalorder %s3432_s21, %s3710_s17 }
  0x58   : > { %p3436_p9 = pneg %p3435_p4  ;;  %p3440_p0 = por %p3439_p13, %p3438_p11 }
  0x5a   : > { %p3442_p1 = por %p3441_p12, %p3440_p0 }
  0x5c   : > { %p3443_p7 = pnand %p3442_p1, %p3436_p9 }
  0x5e   : > { %3446 = shalt.err (!%p3443_p7)
}
  0x5f   : > { %s3447_s12 = scalar_lea.vmem %s249_s30, 64  ;;  %s3541_s10 = smov [#allocation6]  }
  0x60   : > { %p3448_p3 = scmp.ne.s32.totalorder %s249_s30, %s3447_s12  ;;  %s3452_s11 = sshll.u32 %s3541_s10, 4  ;;  %s3453_s11 = int_to_ptr.vmem [resolvable:$false] %s3452_s11 }
  0x61   : > { %s3454_s1 = scalar_lea.vmem %s3453_s11, 128  ;;  %p3455_p2 = scmp.lt.s32.totalorder %s249_s30, %s3453_s11 }
  0x62   : > { %p3450_p5 = pnand %p3448_p3, %p3643_p10  ;;  %p3456_p4 = scmp.lt.s32.totalorder %s3454_s1, %s3447_s12 }
  0x64   : > { %p3451_p6 = pneg %p3450_p5  ;;  %p3457_p8 = por %p3456_p4, %p3455_p2 }
  0x66   : > { %p3458_p11 = pnand %p3457_p8, %p3451_p6 }
  0x68   : > { %3461 = shalt.err (!%p3458_p11)
}
  0x69   : > { %p4156_p13 = scmp.ne.s32.totalorder %s4151_s29, 0  ;;  %s3735_s18 = scalar_lea.hbm %s4143_s4, %s3626_s7 }
  0x6a   : > { %s259_s25 = scalar_lea.vmem [#allocation7], %s3623_s6  ;;  %s256_s24 = scalar_lea.sflag [#allocation8], %s3615_s28 }
  0x6b   : > { %2938 = dma.hbm_to_vmem [thread:$0]  (!%p4156_p13), %s3710_s17, 64, %s249_s30, %s3637_s13  }
  0x6c   : > { %s267_s21 = sshll.u32 %s259_s25, 4  ;;  %s3462_s8 = scalar_lea.hbm %s3735_s18, 64  ;;  %s268_s21 = int_to_ptr.vmem [resolvable:$true] %s267_s21 }
  0x6d   : > { %p3463_p8 = scmp.ne.s32.totalorder %s3735_s18, %s3462_s8  ;;  %s3467_s17 = scalar_lea.hbm %s4143_s4, 128 }
  0x6e   : > { %p3468_p12 = scmp.lt.u32.totalorder %s3735_s18, %s4143_s4  ;;  %p3469_p1 = scmp.lt.u32.totalorder %s3467_s17, %s3462_s8 }
  0x6f   : > { %p3465_p9 = pnand %p3463_p8, %p3643_p10  ;;  %p3471_p3 = scmp.lt.u32.totalorder %s3462_s8, %s3735_s18 }
  0x70   : > { %p3470_p7 = por %p3469_p1, %p3468_p12 }
  0x71   : > { %p3466_p0 = pneg %p3465_p9 }
  0x72   : > { %p3472_p5 = por %p3471_p3, %p3470_p7 }
  0x74   : > { %p3473_p6 = pnand %p3472_p5, %p3466_p0 }
  0x76   : > { %3476 = shalt.err (!%p3473_p6)
}
  0x77   : > { %s3477_s28 = scalar_lea.vmem %s268_s21, 64  ;;  %s3542_s6 = smov [#allocation7]  }
  0x78   : > { %p3478_p2 = scmp.ne.s32.totalorder %s268_s21, %s3477_s28  ;;  %s3482_s12 = sshll.u32 %s3542_s6, 4  ;;  %s3483_s12 = int_to_ptr.vmem [resolvable:$false] %s3482_s12 }
  0x79   : > { %s3484_s10 = scalar_lea.vmem %s3483_s12, 128  ;;  %p3485_p8 = scmp.lt.s32.totalorder %s268_s21, %s3483_s12 }
  0x7a   : > { %p3480_p4 = pnand %p3478_p2, %p3643_p10  ;;  %p3486_p9 = scmp.lt.s32.totalorder %s3484_s10, %s3477_s28 }
  0x7c   : > { %p3481_p11 = pneg %p3480_p4  ;;  %p3487_p13 = por %p3486_p9, %p3485_p8 }
  0x7e   : > { %p3488_p1 = pnand %p3487_p13, %p3481_p11 }
  0x80   : > { %3491 = shalt.err (!%p3488_p1)
}
  0x81   : > { %p4157_p12 = scmp.ne.s32.totalorder %s4151_s29, 0  ;;  %p4158_p0 = scmp.ne.s32.totalorder %s4154_s16, 0 }
  0x82   : > { %s278_s15 = sand.u32 (!%p4158_p0), 1, %s3526_s19   ;;  %p4159_p10 = scmp.ne.s32.totalorder (!%p4158_p0), %s4150_s27, 0 }
  0x83   : > { %2941 = dma.hbm_to_vmem [thread:$0]  (!%p4157_p12), %s3735_s18, 64, %s268_s21, %s256_s24  }
  0x84   : > { %276 = sbr.rel (%p4158_p0) target bundleno = 680 (0x2a8), region = 40  ;;  %s2623_s11 = sshll.u32 (!%p4158_p0), %s278_s15, 11 }
  0x85   : > { %s279_s1 = scalar_lea.sflag (!%p4158_p0), [#allocation3], %s278_s15  ;;  %s3759_s2 = scalar_lea.vmem (!%p4158_p0), [#allocation2], %s2623_s11 }
  0x8b   : > { %3509 = dma.done.wait (%p4159_p10), %s279_s1, 32768  }
  0x8c   : > { %3511 = vsyncadd (%p4159_p10), %s279_s1, 4294934528  ;;  %s287_s29 = sand.u32 1, %s3593_s22   ;;  %s3766_s14 = sshll.u32 %s278_s15, 2 }
  0x8d   : > { %s288_s16 = scalar_lea.sflag [#allocation5], %s287_s29  ;;  %s291_s18 = scalar_lea.vmem [#allocation4], %s3766_s14 }
  0x8e   : > { %3513 = dma.done.wait (%p4159_p10), %s288_s16, 128  }
  0x8f   : > { %3515 = vsyncadd (%p4159_p10), %s288_s16, 4294967168  ;;  %s300_s25 = scalar_lea.vmem [#allocation6], %s3766_s14  ;;  %s306_s21 = scalar_lea.sflag [#allocation8], %s278_s15 }
  0x90   : > { %s309_s24 = scalar_lea.vmem [#allocation7], %s3766_s14 }
  0x91   : > { %3517 = dma.done.wait (%p4159_p10), %s306_s21, 64  }
  0x92   : > { %3519 = vsyncadd (%p4159_p10), %s306_s21, 4294967232  ;;  %v2979_v0 = vld [vmem:[%s3759_s2 + $0x4] ss:$16 sps:$4 sm:$0xff]   ;;  %v2981_v1 = vld [vmem:[%s3759_s2 + $0xc] ss:$16 sps:$4 sm:$0xff]   ;;  %v618_v36 = vlaneseq  ;;  %vm2304_vm0 = vcmask 1041408  }
  0x93   : > { %1976 = vmatprep.subr.bf16.mxu0 %v2979_v0  ;;  %v2983_v2 = vld [vmem:[%s3759_s2] ss:$16 sps:$4 sm:$0xff]   ;;  %v2984_v3 = vld [vmem:[%s3759_s2 + $0x8] ss:$16 sps:$4 sm:$0xff]   ;;  %2140 = vmatprep.subr.bf16.mxu1 %v2981_v1  ;;  %v2985_v4 = vld [vmem:[%s3759_s2 + $0x24] ss:$16 sps:$4 sm:$0xff]  }
  0x94   : > { %1977 = vmatpush1.bf16.msra.mxu0 %v2983_v2  ;;  %2141 = vmatpush1.bf16.msra.mxu1 %v2984_v3  ;;  %v2987_v5 = vld [vmem:[%s3759_s2 + $0x2c] ss:$16 sps:$4 sm:$0xff]   ;;  %v2989_v6 = vld [vmem:[%s3759_s2 + $0x20] ss:$16 sps:$4 sm:$0xff]   ;;  %v2990_v7 = vld [vmem:[%s3759_s2 + $0x28] ss:$16 sps:$4 sm:$0xff]  }
  0x95   : > { %1978 = vmatprep.subr.bf16.mxu0 %v2985_v4  ;;  %2142 = vmatprep.subr.bf16.mxu1 %v2987_v5  ;;  %v2991_v8 = vld [vmem:[%s3759_s2 + $0x44] ss:$16 sps:$4 sm:$0xff]   ;;  %v2993_v9 = vld [vmem:[%s3759_s2 + $0x4c] ss:$16 sps:$4 sm:$0xff]   ;;  %v2995_v10 = vld [vmem:[%s3759_s2 + $0x40] ss:$16 sps:$4 sm:$0xff]  }
  0x96   : > { %v2996_v11 = vld [vmem:[%s3759_s2 + $0x48] ss:$16 sps:$4 sm:$0xff]   ;;  %v2997_v12 = vld [vmem:[%s3759_s2 + $0x64] ss:$16 sps:$4 sm:$0xff]   ;;  %v2999_v13 = vld [vmem:[%s3759_s2 + $0x6c] ss:$16 sps:$4 sm:$0xff]  }
  0x97   : > { %v3001_v14 = vld [vmem:[%s3759_s2 + $0x60] ss:$16 sps:$4 sm:$0xff]   ;;  %v3002_v15 = vld [vmem:[%s3759_s2 + $0x68] ss:$16 sps:$4 sm:$0xff]   ;;  %v3003_v16 = vld [vmem:[%s3759_s2 + $0x84] ss:$16 sps:$4 sm:$0xff]  }
  0x98   : > { %1979 = vmatpush1.bf16.msra.mxu0 %v2989_v6  ;;  %2143 = vmatpush1.bf16.msra.mxu1 %v2990_v7  ;;  %v3005_v17 = vld [vmem:[%s3759_s2 + $0x8c] ss:$16 sps:$4 sm:$0xff]   ;;  %v3007_v18 = vld [vmem:[%s3759_s2 + $0x80] ss:$16 sps:$4 sm:$0xff]   ;;  %v3008_v19 = vld [vmem:[%s3759_s2 + $0x88] ss:$16 sps:$4 sm:$0xff]  }
  0x99   : > { %1980 = vmatprep.subr.bf16.mxu0 %v2991_v8  ;;  %2144 = vmatprep.subr.bf16.mxu1 %v2993_v9  ;;  %v3009_v20 = vld [vmem:[%s3759_s2 + $0xa4] ss:$16 sps:$4 sm:$0xff]   ;;  %v3011_v21 = vld [vmem:[%s3759_s2 + $0xac] ss:$16 sps:$4 sm:$0xff]   ;;  %v3013_v22 = vld [vmem:[%s3759_s2 + $0xa0] ss:$16 sps:$4 sm:$0xff]  }
  0x9a   : > { %v3014_v23 = vld [vmem:[%s3759_s2 + $0xa8] ss:$16 sps:$4 sm:$0xff]   ;;  %v3015_v24 = vld [vmem:[%s3759_s2 + $0xc4] ss:$16 sps:$4 sm:$0xff]   ;;  %v3017_v25 = vld [vmem:[%s3759_s2 + $0xcc] ss:$16 sps:$4 sm:$0xff]  }
  0x9b   : > { %v3019_v26 = vld [vmem:[%s3759_s2 + $0xc0] ss:$16 sps:$4 sm:$0xff]   ;;  %v3020_v27 = vld [vmem:[%s3759_s2 + $0xc8] ss:$16 sps:$4 sm:$0xff]   ;;  %v3021_v28 = vld [vmem:[%s3759_s2 + $0xe4] ss:$16 sps:$4 sm:$0xff]  }
  0x9c   : > { %1981 = vmatpush1.bf16.msra.mxu0 %v2995_v10  ;;  %2145 = vmatpush1.bf16.msra.mxu1 %v2996_v11  ;;  %v3023_v29 = vld [vmem:[%s3759_s2 + $0xec] ss:$16 sps:$4 sm:$0xff]   ;;  %v3025_v30 = vld [vmem:[%s3759_s2 + $0xe0] ss:$16 sps:$4 sm:$0xff]   ;;  %v3026_v31 = vld [vmem:[%s3759_s2 + $0xe8] ss:$16 sps:$4 sm:$0xff]  }
  0x9d   : > { %1982 = vmatprep.subr.bf16.mxu0 %v2997_v12  ;;  %2146 = vmatprep.subr.bf16.mxu1 %v2999_v13  ;;  %v3027_v32 = vld [vmem:[%s3759_s2 + $0x104] ss:$16 sps:$4 sm:$0xff]   ;;  %v3029_v33 = vld [vmem:[%s3759_s2 + $0x10c] ss:$16 sps:$4 sm:$0xff]   ;;  %v3031_v34 = vld [vmem:[%s3759_s2 + $0x100] ss:$16 sps:$4 sm:$0xff]  }
  0x9e   : > { %v3032_v35 = vld [vmem:[%s3759_s2 + $0x108] ss:$16 sps:$4 sm:$0xff]   ;;  %v3543_v37 = vmov 1966171168   ;;  %v3033_v39 = vld [vmem:[%s3759_s2 + $0x124] ss:$16 sps:$4 sm:$0xff]  }
  0x9f   : > { %v641_v38 = vunpack.c.l.s4 %v3543_v37  ;;  %v3035_v40 = vld [vmem:[%s3759_s2 + $0x12c] ss:$16 sps:$4 sm:$0xff]   ;;  %v3037_v41 = vld [vmem:[%s3759_s2 + $0x120] ss:$16 sps:$4 sm:$0xff]   ;;  %v3818_v42 = vshrl.u32 %v618_v36, 7  ;;  %s2627_s9 = sshll.u32 %s3593_s22, 2 }
  0xa0   : > { %1983 = vmatpush1.bf16.msra.mxu0 %v3001_v14  ;;  %2147 = vmatpush1.bf16.msra.mxu1 %v3002_v15  ;;  %v3038_v44 = vld [vmem:[%s3759_s2 + $0x128] ss:$16 sps:$4 sm:$0xff]   ;;  %v3039_v45 = vld [vmem:[%s3759_s2 + $0x144] ss:$16 sps:$4 sm:$0xff]   ;;  %v3041_v46 = vld [vmem:[%s3759_s2 + $0x14c] ss:$16 sps:$4 sm:$0xff]  }
  0xa1   : > { %1984 = vmatprep.subr.bf16.mxu0 %v3003_v16  ;;  %2148 = vmatprep.subr.bf16.mxu1 %v3005_v17  ;;  %v642_v43 = vunpack.c.0.s8 %v641_v38  ;;  %v3043_v47 = vld [vmem:[%s3759_s2 + $0x140] ss:$16 sps:$4 sm:$0xff]   ;;  %v3044_v48 = vld [vmem:[%s3759_s2 + $0x148] ss:$16 sps:$4 sm:$0xff]   ;;  %v3045_v50 = vld [vmem:[%s3759_s2 + $0x164] ss:$16 sps:$4 sm:$0xff]  }
  0xa2   : > { %v3047_v51 = vld [vmem:[%s3759_s2 + $0x16c] ss:$16 sps:$4 sm:$0xff]   ;;  %v3833_v52 = vld [vmem:[%s4139_s0] sm:$0xff]  ;;  %v3050_v55 = vld [vmem:[%s3759_s2 + $0x168] ss:$16 sps:$4 sm:$0xff]   ;;  %p355_p13 = scmp.lt.s32.totalorder %s2627_s9, 7 }
  0xa3   : > { %v3826_v49 = vsub.s32 %v642_v43, %v3818_v42  ;;  %v3049_v53 = vld [vmem:[%s3759_s2 + $0x160] ss:$16 sps:$4 sm:$0xff]   ;;  %v3051_v56 = vld [vmem:[%s3759_s2 + $0x184] ss:$16 sps:$4 sm:$0xff]   ;;  %v3053_v57 = vld [vmem:[%s3759_s2 + $0x18c] ss:$16 sps:$4 sm:$0xff]  }
  0xa4   : > { %1985 = vmatpush1.bf16.msra.mxu0 %v3007_v18  ;;  %2149 = vmatpush1.bf16.msra.mxu1 %v3008_v19  ;;  %v3055_v59 = vld [vmem:[%s3759_s2 + $0x180] ss:$16 sps:$4 sm:$0xff]   ;;  %v3056_v61 = vld [vmem:[%s3759_s2 + $0x188] ss:$16 sps:$4 sm:$0xff]   ;;  %v3057_v62 = vld [vmem:[%s3759_s2 + $0x1a4] ss:$16 sps:$4 sm:$0xff]  }
  0xa5   : > { %1986 = vmatprep.subr.bf16.mxu0 %v3009_v20  ;;  %2150 = vmatprep.subr.bf16.mxu1 %v3011_v21  ;;  %v646_v54 = vrot.slane %v3833_v52, %v3826_v49  ;;  %v3059_v63 = vld [vmem:[%s3759_s2 + $0x1ac] ss:$16 sps:$4 sm:$0xff]   ;;  %v3061_v0 = vld [vmem:[%s3759_s2 + $0x1a0] ss:$16 sps:$4 sm:$0xff]   ;;  %v3062_v1 = vld [vmem:[%s3759_s2 + $0x1a8] ss:$16 sps:$4 sm:$0xff]  }
  0xa6   : > { %v3063_v2 = vld [vmem:[%s3759_s2 + $0x1c4] ss:$16 sps:$4 sm:$0xff]   ;;  %v3065_v3 = vld [vmem:[%s3759_s2 + $0x1cc] ss:$16 sps:$4 sm:$0xff]   ;;  %v3067_v4 = vld [vmem:[%s3759_s2 + $0x1c0] ss:$16 sps:$4 sm:$0xff]  }
  0xa7   : > { %v654_v58 = vcombine.high %v646_v54, %v646_v54  ;;  %v3068_v5 = vld [vmem:[%s3759_s2 + $0x1c8] ss:$16 sps:$4 sm:$0xff]   ;;  %v3069_v6 = vld [vmem:[%s3759_s2 + $0x1e4] ss:$16 sps:$4 sm:$0xff]   ;;  %v3071_v7 = vld [vmem:[%s3759_s2 + $0x1ec] ss:$16 sps:$4 sm:$0xff]   ;;  %v3860_v13 = vrot.slane %v646_v54, %v3826_v49 }
  0xa8   : > { %1987 = vmatpush1.bf16.msra.mxu0 %v3013_v22  ;;  %2151 = vmatpush1.bf16.msra.mxu1 %v3014_v23  ;;  %v3073_v8 = vld [vmem:[%s3759_s2 + $0x1e0] ss:$16 sps:$4 sm:$0xff]   ;;  %v3074_v9 = vld [vmem:[%s3759_s2 + $0x1e8] ss:$16 sps:$4 sm:$0xff]   ;;  %v3077_v10 = vld [vmem:[%s3759_s2 + $0x204] ss:$16 sps:$4 sm:$0xff]  }
  0xa9   : > { %1988 = vmatprep.subr.bf16.mxu0 %v3015_v24  ;;  %2152 = vmatprep.subr.bf16.mxu1 %v3017_v25  ;;  %v676_v60 = vrot.slane %v654_v58, %v3826_v49  ;;  %v3080_v11 = vld [vmem:[%s3759_s2 + $0x20c] ss:$16 sps:$4 sm:$0xff]   ;;  %v3075_v12 = vld [vmem:[%s3759_s2 + $0x200] ss:$16 sps:$4 sm:$0xff]   ;;  %v3078_v14 = vld [vmem:[%s3759_s2 + $0x208] ss:$16 sps:$4 sm:$0xff]  }
  0xaa   : > { %v3083_v15 = vld [vmem:[%s3759_s2 + $0x224] ss:$16 sps:$4 sm:$0xff]   ;;  %v3086_v16 = vld [vmem:[%s3759_s2 + $0x22c] ss:$16 sps:$4 sm:$0xff]   ;;  %v3081_v18 = vld [vmem:[%s3759_s2 + $0x220] ss:$16 sps:$4 sm:$0xff]  }
  0xab   : > { %2008 = vmatprep.mubr.bf16.mxu0 %v676_v60  ;;  %2172 = vmatprep.mubr.bf16.mxu1 %v676_v60  ;;  %v686_v17 = vcombine.high %v676_v60, %v676_v60  ;;  %v3084_v19 = vld [vmem:[%s3759_s2 + $0x228] ss:$16 sps:$4 sm:$0xff]   ;;  %v3089_v20 = vld [vmem:[%s3759_s2 + $0x244] ss:$16 sps:$4 sm:$0xff]   ;;  %v3092_v21 = vld [vmem:[%s3759_s2 + $0x24c] ss:$16 sps:$4 sm:$0xff]  }
  0xac   : > { %1989 = vmatpush1.bf16.msra.mxu0 %v3019_v26  ;;  %2153 = vmatpush1.bf16.msra.mxu1 %v3020_v27  ;;  %v3087_v22 = vld [vmem:[%s3759_s2 + $0x240] ss:$16 sps:$4 sm:$0xff]   ;;  %v3090_v23 = vld [vmem:[%s3759_s2 + $0x248] ss:$16 sps:$4 sm:$0xff]   ;;  %v3095_v24 = vld [vmem:[%s3759_s2 + $0x264] ss:$16 sps:$4 sm:$0xff]  }
  0xad   : > { %1990 = vmatprep.subr.bf16.mxu0 %v3021_v28  ;;  %2154 = vmatprep.subr.bf16.mxu1 %v3023_v29  ;;  %v3098_v25 = vld [vmem:[%s3759_s2 + $0x26c] ss:$16 sps:$4 sm:$0xff]   ;;  %v3093_v26 = vld [vmem:[%s3759_s2 + $0x260] ss:$16 sps:$4 sm:$0xff]   ;;  %v3096_v27 = vld [vmem:[%s3759_s2 + $0x268] ss:$16 sps:$4 sm:$0xff]  }
  0xae   : > { %v3101_v28 = vld [vmem:[%s3759_s2 + $0x284] ss:$16 sps:$4 sm:$0xff]   ;;  %v3104_v29 = vld [vmem:[%s3759_s2 + $0x28c] ss:$16 sps:$4 sm:$0xff]   ;;  %v3111_v38 = vld [vmem:[%s3759_s2 + $0x2c0] ss:$16 sps:$4 sm:$0xff]  }
  0xaf   : > { %v3113_v36 = vld [vmem:[%s3759_s2 + $0x2c4] ss:$16 sps:$4 sm:$0xff]   ;;  %v3116_v37 = vld [vmem:[%s3759_s2 + $0x2cc] ss:$16 sps:$4 sm:$0xff]   ;;  %v3117_v43 = vld [vmem:[%s3759_s2 + $0x2e0] ss:$16 sps:$4 sm:$0xff]  }
  0xb0   : > { %1991 = vmatpush1.bf16.msra.mxu0 %v3025_v30  ;;  %2155 = vmatpush1.bf16.msra.mxu1 %v3026_v31  ;;  %v3099_v30 = vld [vmem:[%s3759_s2 + $0x280] ss:$16 sps:$4 sm:$0xff]   ;;  %v3102_v31 = vld [vmem:[%s3759_s2 + $0x288] ss:$16 sps:$4 sm:$0xff]   ;;  %v3146_v60 = vld [vmem:[%s3759_s2 + $0x36c] ss:$16 sps:$4 sm:$0xff]  }
  0xb1   : > { %1992 = vmatprep.subr.bf16.mxu0 %v3027_v32  ;;  %2156 = vmatprep.subr.bf16.mxu1 %v3029_v33  ;;  %v3107_v32 = vld [vmem:[%s3759_s2 + $0x2a4] ss:$16 sps:$4 sm:$0xff]   ;;  %v3110_v33 = vld [vmem:[%s3759_s2 + $0x2ac] ss:$16 sps:$4 sm:$0xff]   ;;  %v3132_v54 = vld [vmem:[%s3759_s2 + $0x328] ss:$16 sps:$4 sm:$0xff]  }
  0xb2   : > { %v3138_v58 = vld [vmem:[%s3759_s2 + $0x348] ss:$16 sps:$4 sm:$0xff]   ;;  %s4165_s9 = smov (!%p355_p13, %s2627_s9), 7 }
  0xb3   : > { %s357_s17 = scalar_lea.vmem %s4144_s5, %s4165_s9 }
  0xb4   : > { %1993 = vmatpush1.bf16.msra.mxu0 %v3031_v34  ;;  %2157 = vmatpush1.bf16.msra.mxu1 %v3032_v35  ;;  %v3105_v34 = vld [vmem:[%s3759_s2 + $0x2a0] ss:$16 sps:$4 sm:$0xff]   ;;  %v3108_v35 = vld [vmem:[%s3759_s2 + $0x2a8] ss:$16 sps:$4 sm:$0xff]  }
  0xb5   : > { %1994 = vmatprep.subr.bf16.mxu0 %v3033_v39  ;;  %2158 = vmatprep.subr.bf16.mxu1 %v3035_v40  ;;  %v3114_v39 = vld [vmem:[%s3759_s2 + $0x2c8] ss:$16 sps:$4 sm:$0xff]   ;;  %v3119_v40 = vld [vmem:[%s3759_s2 + $0x2e4] ss:$16 sps:$4 sm:$0xff]  }
  0xb8   : > { %1995 = vmatpush1.bf16.msra.mxu0 %v3037_v41  ;;  %2159 = vmatpush1.bf16.msra.mxu1 %v3038_v44  ;;  %v3122_v41 = vld [vmem:[%s3759_s2 + $0x2ec] ss:$16 sps:$4 sm:$0xff]   ;;  %v3120_v44 = vld [vmem:[%s3759_s2 + $0x2e8] ss:$16 sps:$4 sm:$0xff]  }
  0xb9   : > { %1996 = vmatprep.subr.bf16.mxu0 %v3039_v45  ;;  %2160 = vmatprep.subr.bf16.mxu1 %v3041_v46  ;;  %v3125_v45 = vld [vmem:[%s3759_s2 + $0x304] ss:$16 sps:$4 sm:$0xff]   ;;  %v3128_v46 = vld [vmem:[%s3759_s2 + $0x30c] ss:$16 sps:$4 sm:$0xff]  }
  0xbc   : > { %1997 = vmatpush1.bf16.msra.mxu0 %v3043_v47  ;;  %2161 = vmatpush1.bf16.msra.mxu1 %v3044_v48  ;;  %v3123_v47 = vld [vmem:[%s3759_s2 + $0x300] ss:$16 sps:$4 sm:$0xff]   ;;  %v3126_v48 = vld [vmem:[%s3759_s2 + $0x308] ss:$16 sps:$4 sm:$0xff]  }
  0xbd   : > { %1998 = vmatprep.subr.bf16.mxu0 %v3045_v50  ;;  %2162 = vmatprep.subr.bf16.mxu1 %v3047_v51  ;;  %v3131_v50 = vld [vmem:[%s3759_s2 + $0x324] ss:$16 sps:$4 sm:$0xff]   ;;  %v3134_v51 = vld [vmem:[%s3759_s2 + $0x32c] ss:$16 sps:$4 sm:$0xff]  }
  0xc0   : > { %1999 = vmatpush1.bf16.msra.mxu0 %v3049_v53  ;;  %2163 = vmatpush1.bf16.msra.mxu1 %v3050_v55  ;;  %v3129_v53 = vld [vmem:[%s3759_s2 + $0x320] ss:$16 sps:$4 sm:$0xff]   ;;  %v3137_v55 = vld [vmem:[%s3759_s2 + $0x344] ss:$16 sps:$4 sm:$0xff]  }
  0xc1   : > { %2000 = vmatprep.subr.bf16.mxu0 %v3051_v56  ;;  %2164 = vmatprep.subr.bf16.mxu1 %v3053_v57  ;;  %v3140_v56 = vld [vmem:[%s3759_s2 + $0x34c] ss:$16 sps:$4 sm:$0xff]   ;;  %v3135_v57 = vld [vmem:[%s3759_s2 + $0x340] ss:$16 sps:$4 sm:$0xff]  }
  0xc4   : > { %2001 = vmatpush1.bf16.msra.mxu0 %v3055_v59  ;;  %2165 = vmatpush1.bf16.msra.mxu1 %v3056_v61  ;;  %v3143_v59 = vld [vmem:[%s3759_s2 + $0x364] ss:$16 sps:$4 sm:$0xff]   ;;  %v3141_v61 = vld [vmem:[%s3759_s2 + $0x360] ss:$16 sps:$4 sm:$0xff]  }
  0xc5   : > { %2002 = vmatprep.subr.bf16.mxu0 %v3057_v62  ;;  %2166 = vmatprep.subr.bf16.mxu1 %v3059_v63  ;;  %v3144_v62 = vld [vmem:[%s3759_s2 + $0x368] ss:$16 sps:$4 sm:$0xff]   ;;  %v3149_v63 = vld [vmem:[%s3759_s2 + $0x384] ss:$16 sps:$4 sm:$0xff]  }
  0xc8   : > { %2003 = vmatpush1.bf16.msra.mxu0 %v3061_v0  ;;  %2167 = vmatpush1.bf16.msra.mxu1 %v3062_v1  ;;  %v3152_v0 = vld [vmem:[%s3759_s2 + $0x38c] ss:$16 sps:$4 sm:$0xff]   ;;  %v3147_v1 = vld [vmem:[%s3759_s2 + $0x380] ss:$16 sps:$4 sm:$0xff]  }
  0xc9   : > { %2004 = vmatprep.subr.bf16.mxu0 %v3063_v2  ;;  %2168 = vmatprep.subr.bf16.mxu1 %v3065_v3  ;;  %v3150_v2 = vld [vmem:[%s3759_s2 + $0x388] ss:$16 sps:$4 sm:$0xff]   ;;  %v3155_v3 = vld [vmem:[%s3759_s2 + $0x3a4] ss:$16 sps:$4 sm:$0xff]  }
  0xcc   : > { %2005 = vmatpush1.bf16.msra.mxu0 %v3067_v4  ;;  %2169 = vmatpush1.bf16.msra.mxu1 %v3068_v5  ;;  %v3158_v4 = vld [vmem:[%s3759_s2 + $0x3ac] ss:$16 sps:$4 sm:$0xff]   ;;  %v3153_v5 = vld [vmem:[%s3759_s2 + $0x3a0] ss:$16 sps:$4 sm:$0xff]  }
  0xcd   : > { %2006 = vmatprep.subr.bf16.mxu0 %v3069_v6  ;;  %2170 = vmatprep.subr.bf16.mxu1 %v3071_v7  ;;  %v3156_v6 = vld [vmem:[%s3759_s2 + $0x3a8] ss:$16 sps:$4 sm:$0xff]   ;;  %v3161_v7 = vld [vmem:[%s3759_s2 + $0x3c4] ss:$16 sps:$4 sm:$0xff]  }
  0xd0   : > { %2007 = vmatpush1.bf16.msra.mxu0 %v3073_v8  ;;  %2171 = vmatpush1.bf16.msra.mxu1 %v3074_v9  ;;  %v3164_v8 = vld [vmem:[%s3759_s2 + $0x3cc] ss:$16 sps:$4 sm:$0xff]   ;;  %v639_v9 = vcombine.high %v3833_v52, %v3833_v52  ;;  %v3168_v52 = vld [vmem:[%s3759_s2 + $0x3e8] ss:$16 sps:$4 sm:$0xff]  }
  0xd1   : > { %2017 = vmatprep.subr.bf16.mxu0 %v3077_v10  ;;  %2181 = vmatprep.subr.bf16.mxu1 %v3080_v11  ;;  %v3159_v10 = vld [vmem:[%s3759_s2 + $0x3c0] ss:$16 sps:$4 sm:$0xff]   ;;  %v3162_v11 = vld [vmem:[%s3759_s2 + $0x3c8] ss:$16 sps:$4 sm:$0xff]  }
  0xd3   : > { %2009 = vmatmul.mubr.bf16.vlgmr.msra.gmra.mrb[0].mxu0 %v3860_v13  ;;  %2173 = vmatmul.mubr.bf16.vlgmr.msra.gmra.mrb[0].mxu1 %v3860_v13 }
  0xd4   : > { %2018 = vmatpush1.bf16.msra.mxu0 %v3075_v12  ;;  %2182 = vmatpush1.bf16.msra.mxu1 %v3078_v14  ;;  %v3167_v12 = vld [vmem:[%s3759_s2 + $0x3e4] ss:$16 sps:$4 sm:$0xff]   ;;  %v3170_v14 = vld [vmem:[%s3759_s2 + $0x3ec] ss:$16 sps:$4 sm:$0xff]  }
  0xd5   : > { %2019 = vmatprep.subr.bf16.mxu0 %v3083_v15  ;;  %2183 = vmatprep.subr.bf16.mxu1 %v3086_v16  ;;  %v3926_v15 = vrot.slane %v639_v9, %v3826_v49  ;;  %v3165_v16 = vld [vmem:[%s3759_s2 + $0x3e0] ss:$16 sps:$4 sm:$0xff]   ;;  %v3246_v9 = vld [vmem:[%s3759_s2 + $0x588] ss:$16 sps:$4 sm:$0xff]  }
  0xd6   : > { %2049 = vmatprep.mubr.bf16.mxu0 %v686_v17  ;;  %2213 = vmatprep.mubr.bf16.mxu1 %v686_v17  ;;  %v3173_v17 = vld [vmem:[%s3759_s2 + $0x404] ss:$16 sps:$4 sm:$0xff]  }
  0xd8   : > { %2020 = vmatpush1.bf16.msra.mxu0 %v3081_v18  ;;  %2184 = vmatpush1.bf16.msra.mxu1 %v3084_v19  ;;  %v3176_v18 = vld [vmem:[%s3759_s2 + $0x40c] ss:$16 sps:$4 sm:$0xff]   ;;  %v655_v19 = vcombine.high %v3926_v15, %v3926_v15 }
  0xd9   : > { %2021 = vmatprep.subr.bf16.mxu0 %v3089_v20  ;;  %2185 = vmatprep.subr.bf16.mxu1 %v3092_v21  ;;  %v3171_v20 = vld [vmem:[%s3759_s2 + $0x400] ss:$16 sps:$4 sm:$0xff]   ;;  %v684_v21 = vcombine.high %v3860_v13, %v3860_v13  ;;  %v3180_v13 = vld [vmem:[%s3759_s2 + $0x428] ss:$16 sps:$4 sm:$0xff]  }
  0xdc   : > { %2022 = vmatpush1.bf16.msra.mxu0 %v3087_v22  ;;  %2186 = vmatpush1.bf16.msra.mxu1 %v3090_v23  ;;  %v3174_v22 = vld [vmem:[%s3759_s2 + $0x408] ss:$16 sps:$4 sm:$0xff]   ;;  %v3179_v23 = vld [vmem:[%s3759_s2 + $0x424] ss:$16 sps:$4 sm:$0xff]  }
  0xdd   : > { %2023 = vmatprep.subr.bf16.mxu0 %v3095_v24  ;;  %2187 = vmatprep.subr.bf16.mxu1 %v3098_v25  ;;  %v3182_v24 = vld [vmem:[%s3759_s2 + $0x42c] ss:$16 sps:$4 sm:$0xff]   ;;  %v3941_v25 = vrot.slane %v655_v19, %v3826_v49  ;;  %v3263_v19 = vld [vmem:[%s3759_s2 + $0x5e4] ss:$16 sps:$4 sm:$0xff]  }
  0xe0   : > { %2024 = vmatpush1.bf16.msra.mxu0 %v3093_v26  ;;  %2188 = vmatpush1.bf16.msra.mxu1 %v3096_v27  ;;  %v3177_v26 = vld [vmem:[%s3759_s2 + $0x420] ss:$16 sps:$4 sm:$0xff]   ;;  %v3185_v27 = vld [vmem:[%s3759_s2 + $0x444] ss:$16 sps:$4 sm:$0xff]  }
  0xe1   : > { %2025 = vmatprep.subr.bf16.mxu0 %v3101_v28  ;;  %2189 = vmatprep.subr.bf16.mxu1 %v3104_v29  ;;  %v3188_v28 = vld [vmem:[%s3759_s2 + $0x44c] ss:$16 sps:$4 sm:$0xff]   ;;  %v3183_v29 = vld [vmem:[%s3759_s2 + $0x440] ss:$16 sps:$4 sm:$0xff]  }
  0xe4   : > { %2026 = vmatpush1.bf16.msra.mxu0 %v3099_v30  ;;  %2190 = vmatpush1.bf16.msra.mxu1 %v3102_v31  ;;  %v3186_v30 = vld [vmem:[%s3759_s2 + $0x448] ss:$16 sps:$4 sm:$0xff]   ;;  %v3191_v31 = vld [vmem:[%s3759_s2 + $0x464] ss:$16 sps:$4 sm:$0xff]  }
  0xe5   : > { %2027 = vmatprep.subr.bf16.mxu0 %v3107_v32  ;;  %2191 = vmatprep.subr.bf16.mxu1 %v3110_v33  ;;  %v3194_v32 = vld [vmem:[%s3759_s2 + $0x46c] ss:$16 sps:$4 sm:$0xff]   ;;  %v3189_v33 = vld [vmem:[%s3759_s2 + $0x460] ss:$16 sps:$4 sm:$0xff]  }
  0xe8   : > { %2028 = vmatpush1.bf16.msra.mxu0 %v3105_v34  ;;  %2192 = vmatpush1.bf16.msra.mxu1 %v3108_v35  ;;  %v3192_v34 = vld [vmem:[%s3759_s2 + $0x468] ss:$16 sps:$4 sm:$0xff]   ;;  %v3197_v35 = vld [vmem:[%s3759_s2 + $0x484] ss:$16 sps:$4 sm:$0xff]  }
  0xe9   : > { %2029 = vmatprep.subr.bf16.mxu0 %v3113_v36  ;;  %2193 = vmatprep.subr.bf16.mxu1 %v3116_v37  ;;  %v3200_v36 = vld [vmem:[%s3759_s2 + $0x48c] ss:$16 sps:$4 sm:$0xff]   ;;  %v3195_v37 = vld [vmem:[%s3759_s2 + $0x480] ss:$16 sps:$4 sm:$0xff]  }
  0xec   : > { %2030 = vmatpush1.bf16.msra.mxu0 %v3111_v38  ;;  %2194 = vmatpush1.bf16.msra.mxu1 %v3114_v39  ;;  %v3198_v38 = vld [vmem:[%s3759_s2 + $0x488] ss:$16 sps:$4 sm:$0xff]   ;;  %v3203_v39 = vld [vmem:[%s3759_s2 + $0x4a4] ss:$16 sps:$4 sm:$0xff]  }
  0xed   : > { %2031 = vmatprep.subr.bf16.mxu0 %v3119_v40  ;;  %2195 = vmatprep.subr.bf16.mxu1 %v3122_v41  ;;  %v3206_v40 = vld [vmem:[%s3759_s2 + $0x4ac] ss:$16 sps:$4 sm:$0xff]   ;;  %v3201_v41 = vld [vmem:[%s3759_s2 + $0x4a0] ss:$16 sps:$4 sm:$0xff]  }
  0xf0   : > { %2032 = vmatpush1.bf16.msra.mxu0 %v3117_v43  ;;  %2196 = vmatpush1.bf16.msra.mxu1 %v3120_v44  ;;  %v3204_v43 = vld [vmem:[%s3759_s2 + $0x4a8] ss:$16 sps:$4 sm:$0xff]   ;;  %v3209_v44 = vld [vmem:[%s3759_s2 + $0x4c4] ss:$16 sps:$4 sm:$0xff]  }
  0xf1   : > { %2033 = vmatprep.subr.bf16.mxu0 %v3125_v45  ;;  %2197 = vmatprep.subr.bf16.mxu1 %v3128_v46  ;;  %v3212_v45 = vld [vmem:[%s3759_s2 + $0x4cc] ss:$16 sps:$4 sm:$0xff]   ;;  %v3207_v46 = vld [vmem:[%s3759_s2 + $0x4c0] ss:$16 sps:$4 sm:$0xff]  }
  0xf4   : > { %2034 = vmatpush1.bf16.msra.mxu0 %v3123_v47  ;;  %2198 = vmatpush1.bf16.msra.mxu1 %v3126_v48  ;;  %v3210_v47 = vld [vmem:[%s3759_s2 + $0x4c8] ss:$16 sps:$4 sm:$0xff]   ;;  %v3215_v48 = vld [vmem:[%s3759_s2 + $0x4e4] ss:$16 sps:$4 sm:$0xff]  }
  0xf5   : > { %2035 = vmatprep.subr.bf16.mxu0 %v3131_v50  ;;  %2199 = vmatprep.subr.bf16.mxu1 %v3134_v51  ;;  %v3218_v50 = vld [vmem:[%s3759_s2 + $0x4ec] ss:$16 sps:$4 sm:$0xff]   ;;  %v3213_v51 = vld [vmem:[%s3759_s2 + $0x4e0] ss:$16 sps:$4 sm:$0xff]  }
  0xf8   : > { %2036 = vmatpush1.bf16.msra.mxu0 %v3129_v53  ;;  %2200 = vmatpush1.bf16.msra.mxu1 %v3132_v54  ;;  %v3216_v53 = vld [vmem:[%s3759_s2 + $0x4e8] ss:$16 sps:$4 sm:$0xff]   ;;  %v3221_v54 = vld [vmem:[%s3759_s2 + $0x504] ss:$16 sps:$4 sm:$0xff]  }
  0xf9   : > { %2037 = vmatprep.subr.bf16.mxu0 %v3137_v55  ;;  %2201 = vmatprep.subr.bf16.mxu1 %v3140_v56  ;;  %v3224_v55 = vld [vmem:[%s3759_s2 + $0x50c] ss:$16 sps:$4 sm:$0xff]   ;;  %v3219_v56 = vld [vmem:[%s3759_s2 + $0x500] ss:$16 sps:$4 sm:$0xff]  }
  0xfc   : > { %2038 = vmatpush1.bf16.msra.mxu0 %v3135_v57  ;;  %2202 = vmatpush1.bf16.msra.mxu1 %v3138_v58  ;;  %v3222_v57 = vld [vmem:[%s3759_s2 + $0x508] ss:$16 sps:$4 sm:$0xff]   ;;  %v3227_v58 = vld [vmem:[%s3759_s2 + $0x524] ss:$16 sps:$4 sm:$0xff]  }
  0xfd   : > { %2039 = vmatprep.subr.bf16.mxu0 %v3143_v59  ;;  %2203 = vmatprep.subr.bf16.mxu1 %v3146_v60  ;;  %v3230_v59 = vld [vmem:[%s3759_s2 + $0x52c] ss:$16 sps:$4 sm:$0xff]   ;;  %v3225_v60 = vld [vmem:[%s3759_s2 + $0x520] ss:$16 sps:$4 sm:$0xff]  }
 0x100   : > { %2040 = vmatpush1.bf16.msra.mxu0 %v3141_v61  ;;  %2204 = vmatpush1.bf16.msra.mxu1 %v3144_v62  ;;  %v3228_v61 = vld [vmem:[%s3759_s2 + $0x528] ss:$16 sps:$4 sm:$0xff]   ;;  %v3233_v62 = vld [vmem:[%s3759_s2 + $0x544] ss:$16 sps:$4 sm:$0xff]  }
 0x101   : > { %2041 = vmatprep.subr.bf16.mxu0 %v3149_v63  ;;  %2205 = vmatprep.subr.bf16.mxu1 %v3152_v0  ;;  %v3236_v63 = vld [vmem:[%s3759_s2 + $0x54c] ss:$16 sps:$4 sm:$0xff]   ;;  %v3231_v0 = vld [vmem:[%s3759_s2 + $0x540] ss:$16 sps:$4 sm:$0xff]  }
 0x104   : > { %2042 = vmatpush1.bf16.msra.mxu0 %v3147_v1  ;;  %2206 = vmatpush1.bf16.msra.mxu1 %v3150_v2  ;;  %v3234_v1 = vld [vmem:[%s3759_s2 + $0x548] ss:$16 sps:$4 sm:$0xff]   ;;  %v3239_v2 = vld [vmem:[%s3759_s2 + $0x564] ss:$16 sps:$4 sm:$0xff]  }
 0x105   : > { %2043 = vmatprep.subr.bf16.mxu0 %v3155_v3  ;;  %2207 = vmatprep.subr.bf16.mxu1 %v3158_v4  ;;  %v3242_v3 = vld [vmem:[%s3759_s2 + $0x56c] ss:$16 sps:$4 sm:$0xff]   ;;  %v3237_v4 = vld [vmem:[%s3759_s2 + $0x560] ss:$16 sps:$4 sm:$0xff]  }
 0x108   : > { %2044 = vmatpush1.bf16.msra.mxu0 %v3153_v5  ;;  %2208 = vmatpush1.bf16.msra.mxu1 %v3156_v6  ;;  %v3240_v5 = vld [vmem:[%s3759_s2 + $0x568] ss:$16 sps:$4 sm:$0xff]   ;;  %v3245_v6 = vld [vmem:[%s3759_s2 + $0x584] ss:$16 sps:$4 sm:$0xff]  }
 0x109   : > { %2045 = vmatprep.subr.bf16.mxu0 %v3161_v7  ;;  %2209 = vmatprep.subr.bf16.mxu1 %v3164_v8  ;;  %v3248_v7 = vld [vmem:[%s3759_s2 + $0x58c] ss:$16 sps:$4 sm:$0xff]   ;;  %v3243_v8 = vld [vmem:[%s3759_s2 + $0x580] ss:$16 sps:$4 sm:$0xff]  }
 0x10c   : > { %2046 = vmatpush1.bf16.msra.mxu0 %v3159_v10  ;;  %2210 = vmatpush1.bf16.msra.mxu1 %v3162_v11  ;;  %v3251_v10 = vld [vmem:[%s3759_s2 + $0x5a4] ss:$16 sps:$4 sm:$0xff]   ;;  %v3254_v11 = vld [vmem:[%s3759_s2 + $0x5ac] ss:$16 sps:$4 sm:$0xff]  }
 0x10d   : > { %2047 = vmatprep.subr.bf16.mxu0 %v3167_v12  ;;  %2211 = vmatprep.subr.bf16.mxu1 %v3170_v14  ;;  %v3249_v12 = vld [vmem:[%s3759_s2 + $0x5a0] ss:$16 sps:$4 sm:$0xff]   ;;  %v3252_v14 = vld [vmem:[%s3759_s2 + $0x5a8] ss:$16 sps:$4 sm:$0xff]  }
 0x110   : > { %2048 = vmatpush1.bf16.msra.mxu0 %v3165_v16  ;;  %2212 = vmatpush1.bf16.msra.mxu1 %v3168_v52  ;;  %v3257_v16 = vld [vmem:[%s3759_s2 + $0x5c4] ss:$16 sps:$4 sm:$0xff]   ;;  %v3260_v52 = vld [vmem:[%s3759_s2 + $0x5cc] ss:$16 sps:$4 sm:$0xff]  }
 0x111   : > { %2058 = vmatprep.subr.bf16.mxu0 %v3173_v17  ;;  %2222 = vmatprep.subr.bf16.mxu1 %v3176_v18  ;;  %v3255_v17 = vld [vmem:[%s3759_s2 + $0x5c0] ss:$16 sps:$4 sm:$0xff]   ;;  %v3258_v18 = vld [vmem:[%s3759_s2 + $0x5c8] ss:$16 sps:$4 sm:$0xff]  }
 0x113   : > { %2050 = vmatmul.mubr.bf16.vlgmr.msra.gmra.mrb[0].mxu0 %v684_v21  ;;  %2214 = vmatmul.mubr.bf16.vlgmr.msra.gmra.mrb[0].mxu1 %v684_v21  ;;  %v3261_v21 = vld [vmem:[%s3759_s2 + $0x5e0] ss:$16 sps:$4 sm:$0xff]  }
 0x114   : > { %2059 = vmatpush1.bf16.msra.mxu0 %v3171_v20  ;;  %2223 = vmatpush1.bf16.msra.mxu1 %v3174_v22  ;;  %v3266_v20 = vld [vmem:[%s3759_s2 + $0x5ec] ss:$16 sps:$4 sm:$0xff]   ;;  %v3264_v22 = vld [vmem:[%s3759_s2 + $0x5e8] ss:$16 sps:$4 sm:$0xff]  }
 0x115   : > { %2060 = vmatprep.subr.bf16.mxu0 %v3179_v23  ;;  %2224 = vmatprep.subr.bf16.mxu1 %v3182_v24  ;;  %v3270_v23 = vld [vmem:[%s3759_s2 + $0x604] ss:$16 sps:$4 sm:$0xff]   ;;  %v3273_v24 = vld [vmem:[%s3759_s2 + $0x60c] ss:$16 sps:$4 sm:$0xff]  }
 0x116   : > { %2090 = vmatprep.mubr.bf16.mxu0 %v3941_v25  ;;  %2254 = vmatprep.mubr.bf16.mxu1 %v3941_v25 }
 0x118   : > { %2061 = vmatpush1.bf16.msra.mxu0 %v3177_v26  ;;  %2225 = vmatpush1.bf16.msra.mxu1 %v3180_v13  ;;  %v4007_v26 = vrot.slane %v3926_v15, %v3826_v49  ;;  %v3268_v13 = vld [vmem:[%s3759_s2 + $0x600] ss:$16 sps:$4 sm:$0xff]  }
 0x119   : > { %2062 = vmatprep.subr.bf16.mxu0 %v3185_v27  ;;  %2226 = vmatprep.subr.bf16.mxu1 %v3188_v28  ;;  %v3271_v27 = vld [vmem:[%s3759_s2 + $0x608] ss:$16 sps:$4 sm:$0xff]   ;;  %v3276_v28 = vld [vmem:[%s3759_s2 + $0x624] ss:$16 sps:$4 sm:$0xff]   ;;  %v3274_v15 = vld [vmem:[%s3759_s2 + $0x620] ss:$16 sps:$4 sm:$0xff]  }
 0x11c   : > { %2063 = vmatpush1.bf16.msra.mxu0 %v3183_v29  ;;  %2227 = vmatpush1.bf16.msra.mxu1 %v3186_v30  ;;  %v3279_v29 = vld [vmem:[%s3759_s2 + $0x62c] ss:$16 sps:$4 sm:$0xff]   ;;  %v687_v30 = vcombine.high %v3941_v25, %v3941_v25  ;;  %v3280_v25 = vld [vmem:[%s3759_s2 + $0x640] ss:$16 sps:$4 sm:$0xff]  }
 0x11d   : > { %2064 = vmatprep.subr.bf16.mxu0 %v3191_v31  ;;  %2228 = vmatprep.subr.bf16.mxu1 %v3194_v32  ;;  %v3277_v31 = vld [vmem:[%s3759_s2 + $0x628] ss:$16 sps:$4 sm:$0xff]   ;;  %v3282_v32 = vld [vmem:[%s3759_s2 + $0x644] ss:$16 sps:$4 sm:$0xff]  }
 0x120   : > { %2065 = vmatpush1.bf16.msra.mxu0 %v3189_v33  ;;  %2229 = vmatpush1.bf16.msra.mxu1 %v3192_v34  ;;  %v3285_v33 = vld [vmem:[%s3759_s2 + $0x64c] ss:$16 sps:$4 sm:$0xff]   ;;  %v3283_v34 = vld [vmem:[%s3759_s2 + $0x648] ss:$16 sps:$4 sm:$0xff]  }
 0x121   : > { %2066 = vmatprep.subr.bf16.mxu0 %v3197_v35  ;;  %2230 = vmatprep.subr.bf16.mxu1 %v3200_v36  ;;  %v3288_v35 = vld [vmem:[%s3759_s2 + $0x664] ss:$16 sps:$4 sm:$0xff]   ;;  %v3291_v36 = vld [vmem:[%s3759_s2 + $0x66c] ss:$16 sps:$4 sm:$0xff]  }
 0x124   : > { %2067 = vmatpush1.bf16.msra.mxu0 %v3195_v37  ;;  %2231 = vmatpush1.bf16.msra.mxu1 %v3198_v38  ;;  %v3286_v37 = vld [vmem:[%s3759_s2 + $0x660] ss:$16 sps:$4 sm:$0xff]   ;;  %v3289_v38 = vld [vmem:[%s3759_s2 + $0x668] ss:$16 sps:$4 sm:$0xff]  }
 0x125   : > { %2068 = vmatprep.subr.bf16.mxu0 %v3203_v39  ;;  %2232 = vmatprep.subr.bf16.mxu1 %v3206_v40  ;;  %v3294_v39 = vld [vmem:[%s3759_s2 + $0x684] ss:$16 sps:$4 sm:$0xff]   ;;  %v3297_v40 = vld [vmem:[%s3759_s2 + $0x68c] ss:$16 sps:$4 sm:$0xff]  }
 0x128   : > { %2069 = vmatpush1.bf16.msra.mxu0 %v3201_v41  ;;  %2233 = vmatpush1.bf16.msra.mxu1 %v3204_v43  ;;  %v3292_v41 = vld [vmem:[%s3759_s2 + $0x680] ss:$16 sps:$4 sm:$0xff]   ;;  %v3295_v43 = vld [vmem:[%s3759_s2 + $0x688] ss:$16 sps:$4 sm:$0xff]  }
 0x129   : > { %2070 = vmatprep.subr.bf16.mxu0 %v3209_v44  ;;  %2234 = vmatprep.subr.bf16.mxu1 %v3212_v45  ;;  %v3300_v44 = vld [vmem:[%s3759_s2 + $0x6a4] ss:$16 sps:$4 sm:$0xff]   ;;  %v3303_v45 = vld [vmem:[%s3759_s2 + $0x6ac] ss:$16 sps:$4 sm:$0xff]  }
 0x12c   : > { %2071 = vmatpush1.bf16.msra.mxu0 %v3207_v46  ;;  %2235 = vmatpush1.bf16.msra.mxu1 %v3210_v47  ;;  %v3298_v46 = vld [vmem:[%s3759_s2 + $0x6a0] ss:$16 sps:$4 sm:$0xff]   ;;  %v3301_v47 = vld [vmem:[%s3759_s2 + $0x6a8] ss:$16 sps:$4 sm:$0xff]  }
 0x12d   : > { %2072 = vmatprep.subr.bf16.mxu0 %v3215_v48  ;;  %2236 = vmatprep.subr.bf16.mxu1 %v3218_v50  ;;  %v3306_v48 = vld [vmem:[%s3759_s2 + $0x6c4] ss:$16 sps:$4 sm:$0xff]   ;;  %v3309_v50 = vld [vmem:[%s3759_s2 + $0x6cc] ss:$16 sps:$4 sm:$0xff]  }
 0x130   : > { %2073 = vmatpush1.bf16.msra.mxu0 %v3213_v51  ;;  %2237 = vmatpush1.bf16.msra.mxu1 %v3216_v53  ;;  %v3304_v51 = vld [vmem:[%s3759_s2 + $0x6c0] ss:$16 sps:$4 sm:$0xff]   ;;  %v3307_v53 = vld [vmem:[%s3759_s2 + $0x6c8] ss:$16 sps:$4 sm:$0xff]  }
 0x131   : > { %2074 = vmatprep.subr.bf16.mxu0 %v3221_v54  ;;  %2238 = vmatprep.subr.bf16.mxu1 %v3224_v55  ;;  %v3312_v54 = vld [vmem:[%s3759_s2 + $0x6e4] ss:$16 sps:$4 sm:$0xff]   ;;  %v3315_v55 = vld [vmem:[%s3759_s2 + $0x6ec] ss:$16 sps:$4 sm:$0xff]  }
 0x134   : > { %2075 = vmatpush1.bf16.msra.mxu0 %v3219_v56  ;;  %2239 = vmatpush1.bf16.msra.mxu1 %v3222_v57  ;;  %v3310_v56 = vld [vmem:[%s3759_s2 + $0x6e0] ss:$16 sps:$4 sm:$0xff]   ;;  %v3313_v57 = vld [vmem:[%s3759_s2 + $0x6e8] ss:$16 sps:$4 sm:$0xff]  }
 0x135   : > { %2076 = vmatprep.subr.bf16.mxu0 %v3227_v58  ;;  %2240 = vmatprep.subr.bf16.mxu1 %v3230_v59  ;;  %v3318_v58 = vld [vmem:[%s3759_s2 + $0x704] ss:$16 sps:$4 sm:$0xff]   ;;  %v3321_v59 = vld [vmem:[%s3759_s2 + $0x70c] ss:$16 sps:$4 sm:$0xff]  }
 0x138   : > { %2077 = vmatpush1.bf16.msra.mxu0 %v3225_v60  ;;  %2241 = vmatpush1.bf16.msra.mxu1 %v3228_v61  ;;  %v3316_v60 = vld [vmem:[%s3759_s2 + $0x700] ss:$16 sps:$4 sm:$0xff]   ;;  %v3319_v61 = vld [vmem:[%s3759_s2 + $0x708] ss:$16 sps:$4 sm:$0xff]  }
 0x139   : > { %2078 = vmatprep.subr.bf16.mxu0 %v3233_v62  ;;  %2242 = vmatprep.subr.bf16.mxu1 %v3236_v63  ;;  %v3324_v62 = vld [vmem:[%s3759_s2 + $0x724] ss:$16 sps:$4 sm:$0xff]   ;;  %v3327_v63 = vld [vmem:[%s3759_s2 + $0x72c] ss:$16 sps:$4 sm:$0xff]  }
 0x13c   : > { %2079 = vmatpush1.bf16.msra.mxu0 %v3231_v0  ;;  %2243 = vmatpush1.bf16.msra.mxu1 %v3234_v1  ;;  %v3322_v0 = vld [vmem:[%s3759_s2 + $0x720] ss:$16 sps:$4 sm:$0xff]   ;;  %v3325_v1 = vld [vmem:[%s3759_s2 + $0x728] ss:$16 sps:$4 sm:$0xff]  }
 0x13d   : > { %2080 = vmatprep.subr.bf16.mxu0 %v3239_v2  ;;  %2244 = vmatprep.subr.bf16.mxu1 %v3242_v3  ;;  %v3330_v2 = vld [vmem:[%s3759_s2 + $0x744] ss:$16 sps:$4 sm:$0xff]   ;;  %v3333_v3 = vld [vmem:[%s3759_s2 + $0x74c] ss:$16 sps:$4 sm:$0xff]  }
 0x140   : > { %2081 = vmatpush1.bf16.msra.mxu0 %v3237_v4  ;;  %2245 = vmatpush1.bf16.msra.mxu1 %v3240_v5  ;;  %v3328_v4 = vld [vmem:[%s3759_s2 + $0x740] ss:$16 sps:$4 sm:$0xff]   ;;  %v3331_v5 = vld [vmem:[%s3759_s2 + $0x748] ss:$16 sps:$4 sm:$0xff]  }
 0x141   : > { %2082 = vmatprep.subr.bf16.mxu0 %v3245_v6  ;;  %2246 = vmatprep.subr.bf16.mxu1 %v3248_v7  ;;  %v3336_v6 = vld [vmem:[%s3759_s2 + $0x764] ss:$16 sps:$4 sm:$0xff]   ;;  %v3339_v7 = vld [vmem:[%s3759_s2 + $0x76c] ss:$16 sps:$4 sm:$0xff]  }
 0x144   : > { %2083 = vmatpush1.bf16.msra.mxu0 %v3243_v8  ;;  %2247 = vmatpush1.bf16.msra.mxu1 %v3246_v9  ;;  %v3334_v8 = vld [vmem:[%s3759_s2 + $0x760] ss:$16 sps:$4 sm:$0xff]   ;;  %v3337_v9 = vld [vmem:[%s3759_s2 + $0x768] ss:$16 sps:$4 sm:$0xff]  }
 0x145   : > { %2084 = vmatprep.subr.bf16.mxu0 %v3251_v10  ;;  %2248 = vmatprep.subr.bf16.mxu1 %v3254_v11  ;;  %v3342_v10 = vld [vmem:[%s3759_s2 + $0x784] ss:$16 sps:$4 sm:$0xff]   ;;  %v3345_v11 = vld [vmem:[%s3759_s2 + $0x78c] ss:$16 sps:$4 sm:$0xff]  }
 0x148   : > { %2085 = vmatpush1.bf16.msra.mxu0 %v3249_v12  ;;  %2249 = vmatpush1.bf16.msra.mxu1 %v3252_v14  ;;  %v3340_v12 = vld [vmem:[%s3759_s2 + $0x780] ss:$16 sps:$4 sm:$0xff]   ;;  %v3343_v14 = vld [vmem:[%s3759_s2 + $0x788] ss:$16 sps:$4 sm:$0xff]  }
 0x149   : > { %2086 = vmatprep.subr.bf16.mxu0 %v3257_v16  ;;  %2250 = vmatprep.subr.bf16.mxu1 %v3260_v52  ;;  %v3348_v16 = vld [vmem:[%s3759_s2 + $0x7a4] ss:$16 sps:$4 sm:$0xff]   ;;  %v3351_v52 = vld [vmem:[%s3759_s2 + $0x7ac] ss:$16 sps:$4 sm:$0xff]  }
 0x14c   : > { %2087 = vmatpush1.bf16.msra.mxu0 %v3255_v17  ;;  %2251 = vmatpush1.bf16.msra.mxu1 %v3258_v18  ;;  %v3346_v17 = vld [vmem:[%s3759_s2 + $0x7a0] ss:$16 sps:$4 sm:$0xff]   ;;  %v3349_v18 = vld [vmem:[%s3759_s2 + $0x7a8] ss:$16 sps:$4 sm:$0xff]  }
 0x14d   : > { %2088 = vmatprep.subr.bf16.mxu0 %v3263_v19  ;;  %2252 = vmatprep.subr.bf16.mxu1 %v3266_v20  ;;  %v3354_v19 = vld [vmem:[%s3759_s2 + $0x7c4] ss:$16 sps:$4 sm:$0xff]   ;;  %v3357_v20 = vld [vmem:[%s3759_s2 + $0x7cc] ss:$16 sps:$4 sm:$0xff]  }
 0x150   : > { %2089 = vmatpush1.bf16.msra.mxu0 %v3261_v21  ;;  %2253 = vmatpush1.bf16.msra.mxu1 %v3264_v22  ;;  %v3352_v21 = vld [vmem:[%s3759_s2 + $0x7c0] ss:$16 sps:$4 sm:$0xff]   ;;  %v3355_v22 = vld [vmem:[%s3759_s2 + $0x7c8] ss:$16 sps:$4 sm:$0xff]  }
 0x151   : > { %2099 = vmatprep.subr.bf16.mxu0 %v3270_v23  ;;  %2263 = vmatprep.subr.bf16.mxu1 %v3273_v24  ;;  %v3360_v23 = vld [vmem:[%s3759_s2 + $0x7e4] ss:$16 sps:$4 sm:$0xff]   ;;  %v3363_v24 = vld [vmem:[%s3759_s2 + $0x7ec] ss:$16 sps:$4 sm:$0xff]  }
 0x153   : > { %2091 = vmatmul.mubr.bf16.vlgmr.msra.gmra.mrb[0].mxu0 %v4007_v26  ;;  %2255 = vmatmul.mubr.bf16.vlgmr.msra.gmra.mrb[0].mxu1 %v4007_v26 }
 0x154   : > { %2100 = vmatpush1.bf16.msra.mxu0 %v3268_v13  ;;  %2264 = vmatpush1.bf16.msra.mxu1 %v3271_v27  ;;  %v3358_v13 = vld [vmem:[%s3759_s2 + $0x7e0] ss:$16 sps:$4 sm:$0xff]   ;;  %v3361_v27 = vld [vmem:[%s3759_s2 + $0x7e8] ss:$16 sps:$4 sm:$0xff]  }
 0x155   : > { %2101 = vmatprep.subr.bf16.mxu0 %v3276_v28  ;;  %2265 = vmatprep.subr.bf16.mxu1 %v3279_v29  ;;  %v685_v28 = vcombine.high %v4007_v26, %v4007_v26  ;;  %v4078_v29 = vsub.s32 0, %v3818_v42 }
 0x156   : > { %2131 = vmatprep.mubr.bf16.mxu0 %v687_v30  ;;  %2295 = vmatprep.mubr.bf16.mxu1 %v687_v30  ;;  %v4081_v30 = vsub.s32 2, %v3818_v42 }
 0x158   : > { %2102 = vmatpush1.bf16.msra.mxu0 %v3274_v15  ;;  %2266 = vmatpush1.bf16.msra.mxu1 %v3277_v31  ;;  %v616_v15 = vld [vmem:[%s291_s18] sm:$0xf]  ;;  %v4086_v31 = vsub.s32 1, %v3818_v42 }
 0x159   : > { %2103 = vmatprep.subr.bf16.mxu0 %v3282_v32  ;;  %2267 = vmatprep.subr.bf16.mxu1 %v3285_v33  ;;  %v4089_v32 = vsub.s32 3, %v3818_v42  ;;  %v621_v26 = vrot.slane %v616_v15, %v4078_v29  ;;  %v629_v33 = vrot.slane %v616_v15, %v4081_v30 }
 0x15c   : > { %2104 = vmatpush1.bf16.msra.mxu0 %v3280_v25  ;;  %2268 = vmatpush1.bf16.msra.mxu1 %v3283_v34  ;;  %v625_v25 = vrot.slane %v616_v15, %v4086_v31  ;;  %v633_v34 = vrot.slane %v616_v15, %v4089_v32 }
 0x15d   : > { %2105 = vmatprep.subr.bf16.mxu0 %v3288_v35  ;;  %2269 = vmatprep.subr.bf16.mxu1 %v3291_v36 }
 0x160   : > { %2106 = vmatpush1.bf16.msra.mxu0 %v3286_v37  ;;  %2270 = vmatpush1.bf16.msra.mxu1 %v3289_v38 }
 0x161   : > { %2107 = vmatprep.subr.bf16.mxu0 %v3294_v39  ;;  %2271 = vmatprep.subr.bf16.mxu1 %v3297_v40 }
 0x164   : > { %2108 = vmatpush1.bf16.msra.mxu0 %v3292_v41  ;;  %2272 = vmatpush1.bf16.msra.mxu1 %v3295_v43 }
 0x165   : > { %2109 = vmatprep.subr.bf16.mxu0 %v3300_v44  ;;  %2273 = vmatprep.subr.bf16.mxu1 %v3303_v45 }
 0x168   : > { %2110 = vmatpush1.bf16.msra.mxu0 %v3298_v46  ;;  %2274 = vmatpush1.bf16.msra.mxu1 %v3301_v47 }
 0x169   : > { %2111 = vmatprep.subr.bf16.mxu0 %v3306_v48  ;;  %2275 = vmatprep.subr.bf16.mxu1 %v3309_v50 }
 0x16c   : > { %2112 = vmatpush1.bf16.msra.mxu0 %v3304_v51  ;;  %2276 = vmatpush1.bf16.msra.mxu1 %v3307_v53 }
 0x16d   : > { %2113 = vmatprep.subr.bf16.mxu0 %v3312_v54  ;;  %2277 = vmatprep.subr.bf16.mxu1 %v3315_v55 }
 0x170   : > { %2114 = vmatpush1.bf16.msra.mxu0 %v3310_v56  ;;  %2278 = vmatpush1.bf16.msra.mxu1 %v3313_v57 }
 0x171   : > { %2115 = vmatprep.subr.bf16.mxu0 %v3318_v58  ;;  %2279 = vmatprep.subr.bf16.mxu1 %v3321_v59 }
 0x174   : > { %2116 = vmatpush1.bf16.msra.mxu0 %v3316_v60  ;;  %2280 = vmatpush1.bf16.msra.mxu1 %v3319_v61 }
 0x175   : > { %2117 = vmatprep.subr.bf16.mxu0 %v3324_v62  ;;  %2281 = vmatprep.subr.bf16.mxu1 %v3327_v63 }
 0x178   : > { %2118 = vmatpush1.bf16.msra.mxu0 %v3322_v0  ;;  %2282 = vmatpush1.bf16.msra.mxu1 %v3325_v1 }
 0x179   : > { %2119 = vmatprep.subr.bf16.mxu0 %v3330_v2  ;;  %2283 = vmatprep.subr.bf16.mxu1 %v3333_v3 }
 0x17c   : > { %2120 = vmatpush1.bf16.msra.mxu0 %v3328_v4  ;;  %2284 = vmatpush1.bf16.msra.mxu1 %v3331_v5 }
 0x17d   : > { %2121 = vmatprep.subr.bf16.mxu0 %v3336_v6  ;;  %2285 = vmatprep.subr.bf16.mxu1 %v3339_v7 }
 0x180   : > { %2122 = vmatpush1.bf16.msra.mxu0 %v3334_v8  ;;  %2286 = vmatpush1.bf16.msra.mxu1 %v3337_v9 }
 0x181   : > { %2123 = vmatprep.subr.bf16.mxu0 %v3342_v10  ;;  %2287 = vmatprep.subr.bf16.mxu1 %v3345_v11 }
 0x184   : > { %2124 = vmatpush1.bf16.msra.mxu0 %v3340_v12  ;;  %2288 = vmatpush1.bf16.msra.mxu1 %v3343_v14 }
 0x185   : > { %2125 = vmatprep.subr.bf16.mxu0 %v3348_v16  ;;  %2289 = vmatprep.subr.bf16.mxu1 %v3351_v52 }
 0x188   : > { %2126 = vmatpush1.bf16.msra.mxu0 %v3346_v17  ;;  %2290 = vmatpush1.bf16.msra.mxu1 %v3349_v18 }
 0x189   : > { %2127 = vmatprep.subr.bf16.mxu0 %v3354_v19  ;;  %2291 = vmatprep.subr.bf16.mxu1 %v3357_v20 }
 0x18c   : > { %2128 = vmatpush1.bf16.msra.mxu0 %v3352_v21  ;;  %2292 = vmatpush1.bf16.msra.mxu1 %v3355_v22 }
 0x18d   : > { %2129 = vmatprep.subr.bf16.mxu0 %v3360_v23  ;;  %2293 = vmatprep.subr.bf16.mxu1 %v3363_v24 }
 0x190   : > { %2130 = vmatpush1.bf16.msra.mxu0 %v3358_v13  ;;  %2294 = vmatpush1.bf16.msra.mxu1 %v3361_v27 }
 0x193   : > { %2132 = vmatmul.mubr.bf16.vlgmr.msra.gmra.mrb[0].mxu0 %v685_v28  ;;  %2296 = vmatmul.mubr.bf16.vlgmr.msra.gmra.mrb[0].mxu1 %v685_v28 }
 0x266   : > { %v2133_v35 = vpop.f32.mrb[0].mxu0  ;;  %v2297_v36 = vpop.f32.mrb[0].mxu1 }
 0x267   : > { %v2893_v37 = vadd.f32 %v2133_v35, %v621_v26  ;;  %v2895_v38 = vadd.f32 %v2297_v36, %v629_v33  ;;  %v2135_v39 = vpop.f32.mrb[1].mxu0  ;;  %v2299_v40 = vpop.f32.mrb[1].mxu1 }
 0x268   : > { %v2894_v41 = vadd.f32 %v2135_v39, %v625_v25  ;;  %v2896_v43 = vadd.f32 %v2299_v40, %v633_v34  ;;  %v2137_v44 = vpop.f32.mrb[2].mxu0  ;;  %v2301_v42 = vpop.f32.mrb[2].mxu1 }
 0x269   : > { %v2305_v45 = vsel %vm2304_vm0, %v2893_v37, 0.0  ;;  %v2319_v46 = vsel %vm2304_vm0, %v2895_v38, 0.0  ;;  %v2138_v47 = vpop.f32.mrb[3].mxu0  ;;  %v2302_v48 = vpop.f32.mrb[3].mxu1 }
 0x26a   : > { %v2306_v50 = vrot.slane %v2305_v45, 4  ;;  %v2320_v51 = vrot.slane %v2319_v46, 4  ;;  %v2312_v53 = vsel %vm2304_vm0, %v2894_v41, 0.0  ;;  %v2326_v54 = vsel %vm2304_vm0, %v2896_v43, 0.0 }
 0x26b   : > { %v2313_v55 = vrot.slane %v2312_v53, 4  ;;  %v2327_v56 = vrot.slane %v2326_v54, 4 }
 0x26c   : > { %v2307_v57 = vadd.f32 %v2306_v50, %v2305_v45  ;;  %v2321_v58 = vadd.f32 %v2320_v51, %v2319_v46 }
 0x26d   : > { %v2314_v59 = vadd.f32 %v2313_v55, %v2312_v53  ;;  %v2328_v60 = vadd.f32 %v2327_v56, %v2326_v54 }
 0x26e   : > { %v2308_v61 = vrot.slane %v2307_v57, 2  ;;  %v2322_v62 = vrot.slane %v2321_v58, 2 }
 0x26f   : > { %v2315_v63 = vrot.slane %v2314_v59, 2  ;;  %v2329_v0 = vrot.slane %v2328_v60, 2 }
 0x270   : > { %v2309_v1 = vadd.f32 %v2308_v61, %v2307_v57  ;;  %v2323_v2 = vadd.f32 %v2322_v62, %v2321_v58 }
 0x271   : > { %v2316_v3 = vadd.f32 %v2315_v63, %v2314_v59  ;;  %v2330_v4 = vadd.f32 %v2329_v0, %v2328_v60 }
 0x272   : > { %v2310_v5 = vrot.slane %v2309_v1, 1  ;;  %v2324_v6 = vrot.slane %v2323_v2, 1 }
 0x273   : > { %v2317_v7 = vrot.slane %v2316_v3, 1  ;;  %v2331_v8 = vrot.slane %v2330_v4, 1 }
 0x274   : > { %v2311_v9 = vadd.f32 %v2310_v5, %v2309_v1  ;;  %v2325_v10 = vadd.f32 %v2324_v6, %v2323_v2  ;;  %v2377_v2 = vld [vmem:[%s300_s25] sm:$0xf] }
 0x275   : > { %v2318_v11 = vadd.f32 %v2317_v7, %v2316_v3  ;;  %v2332_v12 = vadd.f32 %v2331_v8, %v2330_v4  ;;  %v2382_v3 = vrot.slane %v2377_v2, %v4078_v29  ;;  %v2415_v4 = vld [vmem:[%s309_s24] sm:$0xf]  ;;  %v2390_v5 = vrot.slane %v2377_v2, %v4081_v30 }
 0x276   : > { %v2333_v14 = vmul.f32 0.5, %v2311_v9  ;;  %v2335_v16 = vmul.f32 0.5, %v2325_v10  ;;  %v2386_v6 = vrot.slane %v2377_v2, %v4086_v31  ;;  %v2394_v7 = vrot.slane %v2377_v2, %v4089_v32 }
 0x277   : > { %v2334_v52 = vmul.f32 0.5, %v2318_v11  ;;  %v2336_v17 = vmul.f32 0.5, %v2332_v12  ;;  %v2420_v9 = vrot.slane %v2415_v4, %v4078_v29  ;;  %v2428_v12 = vrot.slane %v2415_v4, %v4081_v30 }
 0x278   : > { %v2337_v18 = vsub.f32 %v2893_v37, %v2333_v14  ;;  %v2339_v19 = vsub.f32 %v2895_v38, %v2335_v16 }
 0x279   : > { %v2338_v20 = vsub.f32 %v2894_v41, %v2334_v52  ;;  %v4099_v21 = vsub.f32 %v2896_v43, %v2336_v17  ;;  %v2424_v17 = vrot.slane %v2415_v4, %v4086_v31 }
 0x27a   : > { %v2341_v22 = vmul.f32 %v2337_v18, %v2337_v18  ;;  %v2343_v23 = vmul.f32 %v2339_v19, %v2339_v19  ;;  %v2399_v8 = vmul.f32 %v2382_v3, %v2337_v18  ;;  %v2401_v11 = vmul.f32 %v2390_v5, %v2339_v19 }
 0x27b   : > { %v2342_v24 = vmul.f32 %v2338_v20, %v2338_v20  ;;  %v2344_v13 = vmul.f32 %v4099_v21, %v4099_v21  ;;  %v2400_v52 = vmul.f32 %v2386_v6, %v2338_v20 }
 0x27c   : > { %v2345_v27 = vsel %vm2304_vm0, %v2341_v22, 0.0  ;;  %v2359_v28 = vsel %vm2304_vm0, %v2343_v23, 0.0 }
 0x27d   : > { %v2346_v15 = vrot.slane %v2345_v27, 4  ;;  %v2360_v26 = vrot.slane %v2359_v28, 4  ;;  %v2352_v33 = vsel %vm2304_vm0, %v2342_v24, 0.0  ;;  %v2366_v25 = vsel %vm2304_vm0, %v2344_v13, 0.0 }
 0x27e   : > { %v2353_v34 = vrot.slane %v2352_v33, 4  ;;  %v2367_v35 = vrot.slane %v2366_v25, 4  ;;  %v2402_v24 = vmul.f32 %v2394_v7, %v4099_v21  ;;  %v2432_v13 = vrot.slane %v2415_v4, %v4089_v32 }
 0x27f   : > { %v2347_v36 = vadd.f32 %v2346_v15, %v2345_v27  ;;  %v2361_v37 = vadd.f32 %v2360_v26, %v2359_v28 }
 0x280   : > { %v2354_v38 = vadd.f32 %v2353_v34, %v2352_v33  ;;  %v2368_v39 = vadd.f32 %v2367_v35, %v2366_v25 }
 0x281   : > { %v2348_v40 = vrot.slane %v2347_v36, 2  ;;  %v2362_v41 = vrot.slane %v2361_v37, 2 }
 0x282   : > { %v2355_v43 = vrot.slane %v2354_v38, 2  ;;  %v2369_v44 = vrot.slane %v2368_v39, 2 }
 0x283   : > { %v2349_v42 = vadd.f32 %v2348_v40, %v2347_v36  ;;  %v2363_v45 = vadd.f32 %v2362_v41, %v2361_v37 }
 0x284   : > { %v2356_v46 = vadd.f32 %v2355_v43, %v2354_v38  ;;  %v2370_v47 = vadd.f32 %v2369_v44, %v2368_v39 }
 0x285   : > { %v2350_v48 = vrot.slane %v2349_v42, 1  ;;  %v2364_v50 = vrot.slane %v2363_v45, 1 }
 0x286   : > { %v2357_v51 = vrot.slane %v2356_v46, 1  ;;  %v2371_v53 = vrot.slane %v2370_v47, 1 }
 0x287   : > { %v2351_v54 = vadd.f32 %v2350_v48, %v2349_v42  ;;  %v2365_v55 = vadd.f32 %v2364_v50, %v2363_v45 }
 0x288   : > { %v2358_v56 = vadd.f32 %v2357_v51, %v2356_v46  ;;  %v2372_v57 = vadd.f32 %v2371_v53, %v2370_v47 }
 0x289   : > { %v2373_v58 = vmul.f32 0.5, %v2351_v54  ;;  %v2375_v59 = vmul.f32 0.5, %v2365_v55 }
 0x28a   : > { %v2374_v60 = vmul.f32 0.5, %v2358_v56  ;;  %v2376_v61 = vmul.f32 0.5, %v2372_v57 }
 0x28b   : > { %v2403_v62 = vadd.f32 1e-05, %v2373_v58  ;;  %v2405_v63 = vadd.f32 1e-05, %v2375_v59 }
 0x28c   : > { %v2404_v0 = vadd.f32 1e-05, %v2374_v60  ;;  %v2406_v1 = vadd.f32 1e-05, %v2376_v61 }
 0x28d   : > { %3364 = vrsqrt.f32 %v2403_v62 }
 0x28e   : > { %3366 = vrsqrt.f32 %v2405_v63 }
 0x28f   : > { %3368 = vrsqrt.f32 %v2404_v0 }
 0x290   : > { %3370 = vrsqrt.f32 %v2406_v1 }
 0x297   : > { %v3365_v10 = vpop.eup %3364 }
 0x298   : > { %v3367_v14 = vpop.eup %3366  ;;  %v2411_v16 = vmul.f32 %v3365_v10, %v2399_v8 }
 0x299   : > { %v3369_v22 = vpop.eup %3368  ;;  %v2413_v23 = vmul.f32 %v3367_v14, %v2401_v11 }
 0x29a   : > { %v3371_v27 = vpop.eup %3370  ;;  %v2437_v18 = vadd.f32 %v2420_v9, %v2411_v16  ;;  %v2412_v28 = vmul.f32 %v3369_v22, %v2400_v52 }
 0x29b   : > { %v2439_v29 = vadd.f32 %v2428_v12, %v2413_v23  ;;  %v2414_v15 = vmul.f32 %v3371_v27, %v2402_v24 }
 0x29c   : > { %v2441_v19 = vmax.f32 %v2437_v18, 0.0  ;;  %v2438_v26 = vadd.f32 %v2424_v17, %v2412_v28 }
 0x29d   : > { %v2443_v30 = vmax.f32 %v2439_v29, 0.0  ;;  %v2440_v33 = vadd.f32 %v2432_v13, %v2414_v15 }
 0x29e   : > { %v2442_v20 = vmax.f32 %v2438_v26, 0.0 }
 0x29f   : > { %v2444_v25 = vmax.f32 %v2440_v33, 0.0 }
 0x2a0   : > { %v2884_v31 = vpack.c.bf16 %v2442_v20, %v2441_v19 }
 0x2a1   : > { %v2885_v34 = vpack.c.bf16 %v2444_v25, %v2443_v30 }
 0x2a2   : > { %v2461_v35 = vrot.slane %v2884_v31, %v3826_v49 }
 0x2a3   : > { %v2468_v21 = vrot.slane %v2885_v34, %v3826_v49 }
 0x2a5   : > { %v2469_v32 = vcombine.low %v2461_v35, %v2468_v21 }
 0x2a7   : > { %2886 = vst.sshfl [vmem:[%s357_s17] sm:$0x55 pattern:$0x73625140] %v2469_v32 }
 0x2a8 PF: > { %p21_p7 = scmp.ge.s32.totalorder %s3596_s23, 4   ;;  %s4160_s18 = smov %s3526_s19 }
 0x2a9   : > { %s4161_s19 = smov %s3530_s20  ;;  %s4162_s20 = smov %s3606_s26 }
 0x2aa   : > { %s4163_s21 = smov %s3596_s23  ;;  %23 = sbr.rel (!%p21_p7) target bundleno = 10 (0xa), region = 117 }
 0x2b1   :  { %2499 = vsyncpa [#allocation3], 1 }
 0x2b2   :  { %2501 = vsyncpa [#allocation3 + $0x1], 1 }
 0x2b3   :  { %2502 = vsyncpa [#allocation5], 1 }
 0x2b4   :  { %2504 = vsyncpa [#allocation5 + $0x1], 1 }
 0x2b5   :  { %2505 = vsyncpa [#allocation8], 1 }
 0x2b6   :  { %2507 = vsyncpa [#allocation8 + $0x1], 1 }

// kernel: generator_mwm_forward.13
= control target key start
LH: loop header
LB: loop body
LE: loop exit
PB: predicated region body
PF: predicated region fallthrough
CT: control target
= control target key end

     0   :  { %s1177_s12 = smov 0   ;;  %s1179_s13 = smov 0   ;;  %s1312_s0 = inlined_call_operand.vmem [shape: bf16[4,64,512], index: 0, kind: input, shape index: {}]   ;;  %s1313_s1 = inlined_call_operand.vmem [shape: bf16[4,512,8], index: 1, kind: input, shape index: {}]   ;;  %s1314_s2 = inlined_call_operand.vmem [shape: f32[64,1], index: 2, kind: input, shape index: {}]   ;;  %s1315_s3 = inlined_call_operand.vmem [shape: bf16[4,64,8], index: 3, kind: output, shape index: {}]  }
   0x1   :  { %s1181_s14 = smov 0  }
   0x2 LB: > { %s25_s15 = sadd.s32 1, %s1150_s13  ;;  %p893_p0 = scmp.ge.s32.totalorder %s1154_s14, 1  ;;  %s1154_s14 = sphi %s1181_s14, %s13_s14   ;;  %s1150_s13 = sphi %s1179_s13, %s1317_s13   ;;  %s1146_s12 = sphi %s1177_s12, %s1316_s12  }
   0x3   : > { %p27_p1 = scmp.ge.s32.totalorder %s25_s15, 4  ;;  %p166_p2 = scmp.lt.s32.totalorder %s1154_s14, 5 }
   0x5   : > { %s1319_s15 = smov (%p27_p1, %s25_s15), 0  ;;  %p167_p3 = pnand %p893_p0, %p166_p2 }
   0x6   : > { %p201_p4 = scmp.lt.s32.totalorder (!%p167_p3), %s1146_s12, 3  ;;  %v303_v0 = vld [vmem:[%s1314_s2] sm:$0xff] (!%p167_p3)  ;;  %v305_v1 = vld [vmem:[%s1314_s2 + $0x10] sm:$0xff] (!%p167_p3)  ;;  %v1156_v2 = vmov (!%p167_p3), 0   ;;  %v304_v3 = vld [vmem:[%s1314_s2 + $0x8] sm:$0xff] (!%p167_p3)  ;;  %vm785_vm0 = vcmask (!%p167_p3), 60416  }
   0x7   : > { %170 = sbr.rel (%p167_p3) target bundleno = 299 (0x12b), region = 32  ;;  %1074 = vset.pattern.permute.xlu0 (!%p167_p3), %v1156_v2  ;;  %1075 = vset.pattern.permute.xlu1 (!%p167_p3), %v1156_v2  ;;  %v306_v4 = vld [vmem:[%s1314_s2 + $0x18] sm:$0xff] (!%p167_p3)  ;;  %v308_v5 = vld [vmem:[%s1314_s2 + $0x28] sm:$0xff] (!%p167_p3)  ;;  %v307_v7 = vld [vmem:[%s1314_s2 + $0x20] sm:$0xff] (!%p167_p3) }
   0x8   : > { %313 = vperm.xlu0 (!%p167_p3), %1074, %v303_v0   ;;  %323 = vperm.xlu1 (!%p167_p3), %1075, %v305_v1   ;;  %v310_v11 = vld [vmem:[%s1314_s2 + $0x38] sm:$0xff] (!%p167_p3)  ;;  %v309_v13 = vld [vmem:[%s1314_s2 + $0x30] sm:$0xff] (!%p167_p3) }
   0xc   : > { %318 = vperm.xlu0 (!%p167_p3), %1074, %v304_v3   ;;  %328 = vperm.xlu1 (!%p167_p3), %1075, %v306_v4  }
   0xe   : > { %s1321_s12 = smov (!%p201_p4, %s1146_s12), 3 }
   0xf   : > { %s959_s24 = sshll.u32 %s1321_s12, 8  ;;  %s958_s9 = sshll.u32 %s1321_s12, 7 }
  0x10   : > { %s1213_s27 = scalar_lea.vmem %s1313_s1, %s959_s24  ;;  %338 = vperm.xlu1 %1075, %v308_v5   ;;  %333 = vperm.xlu0 %1074, %v307_v7   ;;  %s1261_s16 = scalar_lea.vmem %s1312_s0, %s958_s9 }
  0x11   : > { %v1076_v6 = vld [vmem:[%s1213_s27 + $0x40] sm:$0xff]   ;;  %v1080_v12 = vld [vmem:[%s1213_s27 + $0x48] sm:$0xff]   ;;  %v1084_v17 = vld [vmem:[%s1213_s27 + $0x50] sm:$0xff]   ;;  %s960_s17 = sshll.u32 %s1321_s12, 5 }
  0x12   : > { %v1077_v8 = vld [vmem:[%s1213_s27 + $0xc0] sm:$0xff]   ;;  %969 = vmatprep.subr.bf16.mxu0 %v1076_v6  ;;  %v1081_v14 = vld [vmem:[%s1213_s27 + $0xc8] sm:$0xff]   ;;  %v1085_v18 = vld [vmem:[%s1213_s27 + $0xd0] sm:$0xff]   ;;  %s1285_s20 = scalar_lea.vmem %s1315_s3, %s960_s17 }
  0x13   : > { %v1078_v9 = vld [vmem:[%s1213_s27] sm:$0xff]   ;;  %1009 = vmatprep.subr.bf16.mxu1 %v1077_v8  ;;  %v1082_v15 = vld [vmem:[%s1213_s27 + $0x8] sm:$0xff]   ;;  %v1086_v19 = vld [vmem:[%s1213_s27 + $0x10] sm:$0xff]  }
  0x14   : > { %v1079_v10 = vld [vmem:[%s1213_s27 + $0x80] sm:$0xff]   ;;  %970 = vmatpush3.bf16.msra.mxu0 %v1078_v9  ;;  %v1083_v16 = vld [vmem:[%s1213_s27 + $0x88] sm:$0xff]   ;;  %348 = vperm.xlu1 %1075, %v310_v11   ;;  %v1087_v20 = vld [vmem:[%s1213_s27 + $0x90] sm:$0xff]  }
  0x15   : > { %1010 = vmatpush3.bf16.msra.mxu1 %v1079_v10  ;;  %971 = vmatprep.subr.bf16.mxu0 %v1080_v12  ;;  %v1088_v21 = vld [vmem:[%s1213_s27 + $0x58] sm:$0xff]   ;;  %v1092_v25 = vld [vmem:[%s1213_s27 + $0x60] sm:$0xff]   ;;  %v1096_v29 = vld [vmem:[%s1213_s27 + $0x68] sm:$0xff]  }
  0x16   : > { %1011 = vmatprep.subr.bf16.mxu1 %v1081_v14  ;;  %343 = vperm.xlu0 %1074, %v309_v13   ;;  %v1089_v22 = vld [vmem:[%s1213_s27 + $0xd8] sm:$0xff]   ;;  %v1093_v26 = vld [vmem:[%s1213_s27 + $0xe0] sm:$0xff]   ;;  %v1097_v30 = vld [vmem:[%s1213_s27 + $0xe8] sm:$0xff]  }
  0x17   : > { %v1090_v23 = vld [vmem:[%s1213_s27 + $0x18] sm:$0xff]   ;;  %v1094_v27 = vld [vmem:[%s1213_s27 + $0x20] sm:$0xff]   ;;  %v1098_v31 = vld [vmem:[%s1213_s27 + $0x28] sm:$0xff]  }
  0x18   : > { %972 = vmatpush3.bf16.msra.mxu0 %v1082_v15  ;;  %v1091_v24 = vld [vmem:[%s1213_s27 + $0x98] sm:$0xff]   ;;  %v1095_v28 = vld [vmem:[%s1213_s27 + $0xa0] sm:$0xff]   ;;  %v1099_v32 = vld [vmem:[%s1213_s27 + $0xa8] sm:$0xff]  }
  0x19   : > { %1012 = vmatpush3.bf16.msra.mxu1 %v1083_v16  ;;  %973 = vmatprep.subr.bf16.mxu0 %v1084_v17  ;;  %v1100_v33 = vld [vmem:[%s1213_s27 + $0x70] sm:$0xff]   ;;  %v1104_v37 = vld [vmem:[%s1213_s27 + $0x78] sm:$0xff]  }
  0x1a   : > { %1013 = vmatprep.subr.bf16.mxu1 %v1085_v18  ;;  %v1101_v34 = vld [vmem:[%s1213_s27 + $0xf0] sm:$0xff]   ;;  %v1105_v38 = vld [vmem:[%s1213_s27 + $0xf8] sm:$0xff]  }
  0x1b   : > { %v1102_v35 = vld [vmem:[%s1213_s27 + $0x30] sm:$0xff]   ;;  %v1106_v39 = vld [vmem:[%s1213_s27 + $0x38] sm:$0xff]  }
  0x1c   : > { %974 = vmatpush3.bf16.msra.mxu0 %v1086_v19  ;;  %v1103_v36 = vld [vmem:[%s1213_s27 + $0xb0] sm:$0xff]   ;;  %v1107_v40 = vld [vmem:[%s1213_s27 + $0xb8] sm:$0xff]  }
  0x1d   : > { %1014 = vmatpush3.bf16.msra.mxu1 %v1087_v20  ;;  %975 = vmatprep.subr.bf16.mxu0 %v1088_v21  ;;  %v1108_v41 = vld [vmem:[%s1261_s16] ss:$16 sps:$4 sm:$0xff]   ;;  %v1110_v42 = vld [vmem:[%s1261_s16 + $0x4] ss:$16 sps:$4 sm:$0xff]   ;;  %v1111_v43 = vld [vmem:[%s1261_s16 + $0x8] ss:$16 sps:$4 sm:$0xff]  }
  0x1e   : > { %1015 = vmatprep.subr.bf16.mxu1 %v1089_v22  ;;  %v1113_v44 = vld [vmem:[%s1261_s16 + $0xc] ss:$16 sps:$4 sm:$0xff]   ;;  %655 = vmatprep.mubr.bf16.mxu0 %v1110_v42  ;;  %v1114_v45 = vld [vmem:[%s1261_s16 + $0x24] ss:$16 sps:$4 sm:$0xff]   ;;  %v1118_v47 = vld [vmem:[%s1261_s16 + $0x20] ss:$16 sps:$4 sm:$0xff]  }
  0x1f   : > { %720 = vmatprep.mubr.bf16.mxu1 %v1113_v44  ;;  %v1116_v46 = vld [vmem:[%s1261_s16 + $0x2c] ss:$16 sps:$4 sm:$0xff]   ;;  %v1119_v48 = vld [vmem:[%s1261_s16 + $0x28] ss:$16 sps:$4 sm:$0xff]   ;;  %v1120_v49 = vld [vmem:[%s1261_s16 + $0x44] ss:$16 sps:$4 sm:$0xff]  }
  0x20   : > { %976 = vmatpush3.bf16.msra.mxu0 %v1090_v23  ;;  %v1122_v50 = vld [vmem:[%s1261_s16 + $0x4c] ss:$16 sps:$4 sm:$0xff]   ;;  %v1124_v51 = vld [vmem:[%s1261_s16 + $0x40] ss:$16 sps:$4 sm:$0xff]   ;;  %v1125_v52 = vld [vmem:[%s1261_s16 + $0x48] ss:$16 sps:$4 sm:$0xff]  }
  0x21   : > { %1016 = vmatpush3.bf16.msra.mxu1 %v1091_v24  ;;  %977 = vmatprep.subr.bf16.mxu0 %v1092_v25  ;;  %v1126_v53 = vld [vmem:[%s1261_s16 + $0x64] ss:$16 sps:$4 sm:$0xff]   ;;  %v1128_v54 = vld [vmem:[%s1261_s16 + $0x6c] ss:$16 sps:$4 sm:$0xff]   ;;  %v1130_v55 = vld [vmem:[%s1261_s16 + $0x60] ss:$16 sps:$4 sm:$0xff]  }
  0x22   : > { %1017 = vmatprep.subr.bf16.mxu1 %v1093_v26  ;;  %v1131_v56 = vld [vmem:[%s1261_s16 + $0x68] ss:$16 sps:$4 sm:$0xff]  }
  0x24   : > { %978 = vmatpush3.bf16.msra.mxu0 %v1094_v27 }
  0x25   : > { %1018 = vmatpush3.bf16.msra.mxu1 %v1095_v28  ;;  %979 = vmatprep.subr.bf16.mxu0 %v1096_v29 }
  0x26   : > { %1019 = vmatprep.subr.bf16.mxu1 %v1097_v30 }
  0x28   : > { %980 = vmatpush3.bf16.msra.mxu0 %v1098_v31 }
  0x29   : > { %1020 = vmatpush3.bf16.msra.mxu1 %v1099_v32  ;;  %981 = vmatprep.subr.bf16.mxu0 %v1100_v33 }
  0x2a   : > { %1021 = vmatprep.subr.bf16.mxu1 %v1101_v34 }
  0x2c   : > { %982 = vmatpush3.bf16.msra.mxu0 %v1102_v35 }
  0x2d   : > { %1022 = vmatpush3.bf16.msra.mxu1 %v1103_v36  ;;  %983 = vmatprep.subr.bf16.mxu0 %v1104_v37 }
  0x2e   : > { %1023 = vmatprep.subr.bf16.mxu1 %v1105_v38 }
  0x30   : > { %984 = vmatpush3.bf16.msra.mxu0 %v1106_v39 }
  0x31   : > { %1024 = vmatpush3.bf16.msra.mxu1 %v1107_v40 }
  0x33   : > { %656 = vmatmul.mubr.bf16.vlgmr.msra.gmra.mrb[0].mxu0 %v1108_v41 }
  0x34   : > { %721 = vmatmul.mubr.bf16.vlgmr.msra.gmra.mrb[0].mxu1 %v1111_v43  ;;  %663 = vmatprep.mubr.bf16.mxu0 %v1114_v45 }
  0x35   : > { %728 = vmatprep.mubr.bf16.mxu1 %v1116_v46 }
  0x3b   : > { %664 = vmatmul.mubr.bf16.gmra.mrb[4].mxu0 %v1118_v47 }
  0x3c   : > { %729 = vmatmul.mubr.bf16.gmra.mrb[4].mxu1 %v1119_v48  ;;  %671 = vmatprep.mubr.bf16.mxu0 %v1120_v49 }
  0x3d   : > { %736 = vmatprep.mubr.bf16.mxu1 %v1122_v50 }
  0x43   : > { %672 = vmatmul.mubr.bf16.gmra.mrb[8].mxu0 %v1124_v51 }
  0x44   : > { %737 = vmatmul.mubr.bf16.gmra.mrb[8].mxu1 %v1125_v52  ;;  %679 = vmatprep.mubr.bf16.mxu0 %v1126_v53 }
  0x45   : > { %744 = vmatprep.mubr.bf16.mxu1 %v1128_v54 }
  0x4b   : > { %680 = vmatmul.mubr.bf16.gmra.mrb[12].mxu0 %v1130_v55 }
  0x4c   : > { %745 = vmatmul.mubr.bf16.gmra.mrb[12].mxu1 %v1131_v56 }
  0x87   : > { %v314_v57 = vpop.permute.xlu0 %313  ;;  %v324_v10 = vpop.permute.xlu1 %323 }
  0x8b   : > { %v319_v59 = vpop.permute.xlu0 %318  ;;  %v329_v26 = vpop.permute.xlu1 %328 }
  0x8f   : > { %v334_v32 = vpop.permute.xlu0 %333  ;;  %v339_v46 = vpop.permute.xlu1 %338 }
  0x95   : > { %v344_v50 = vpop.permute.xlu0 %343 }
 0x106   : > { %v985_v58 = vpop.f32.mrb[0].mxu0 }
 0x107   : > { %v1025_v60 = vpop.f32.mrb[0].mxu1  ;;  %v986_v61 = vpop.f32.mrb[1].mxu0 }
 0x108   : > { %v987_v62 = vadd.f32 %v986_v61, %v985_v58  ;;  %v1026_v63 = vpop.f32.mrb[1].mxu1  ;;  %v988_v0 = vpop.f32.mrb[2].mxu0 }
 0x109   : > { %v1027_v1 = vadd.f32 %v1026_v63, %v1025_v60  ;;  %v1028_v2 = vpop.f32.mrb[2].mxu1  ;;  %v989_v3 = vpop.f32.mrb[3].mxu0 }
 0x10a   : > { %v658_v4 = vadd.f32 %v987_v62, %v314_v57  ;;  %v990_v5 = vadd.f32 %v989_v3, %v988_v0  ;;  %v1029_v6 = vpop.f32.mrb[3].mxu1 }
 0x10b   : > { %v1030_v7 = vadd.f32 %v1029_v6, %v1028_v2  ;;  %v349_v2 = vpop.permute.xlu1 %348 }
 0x10c   : > { %v723_v8 = vadd.f32 %v1027_v1, %v658_v4  ;;  %v661_v9 = vadd.f32 %v990_v5, %v319_v59 }
 0x10e   : > { %v961_v11 = vpack.c.bf16 %v723_v8, %v723_v8  ;;  %v726_v12 = vadd.f32 %v1030_v7, %v661_v9  ;;  %v991_v13 = vpop.f32.mrb[4].mxu0 }
 0x10f   : > { %v1031_v14 = vpop.f32.mrb[4].mxu1  ;;  %v992_v15 = vpop.f32.mrb[5].mxu0 }
 0x110   : > { %786 = vst.msk [vmem:[%s1285_s20] sm:$0xf] %vm785_vm0, %v961_v11  ;;  %v962_v16 = vpack.c.bf16 %v726_v12, %v726_v12  ;;  %v993_v17 = vadd.f32 %v992_v15, %v991_v13  ;;  %v1032_v18 = vpop.f32.mrb[5].mxu1  ;;  %v994_v19 = vpop.f32.mrb[6].mxu0 }
 0x111   : > { %v1033_v20 = vadd.f32 %v1032_v18, %v1031_v14  ;;  %v1034_v21 = vpop.f32.mrb[6].mxu1  ;;  %v995_v22 = vpop.f32.mrb[7].mxu0 }
 0x112   : > { %787 = vst.msk [vmem:[%s1285_s20 + $0x4] sm:$0xf] %vm785_vm0, %v962_v16  ;;  %v666_v23 = vadd.f32 %v993_v17, %v324_v10  ;;  %v996_v24 = vadd.f32 %v995_v22, %v994_v19  ;;  %v1035_v25 = vpop.f32.mrb[7].mxu1 }
 0x113   : > { %v1036_v27 = vadd.f32 %v1035_v25, %v1034_v21 }
 0x114   : > { %v731_v28 = vadd.f32 %v1033_v20, %v666_v23  ;;  %v669_v29 = vadd.f32 %v996_v24, %v329_v26 }
 0x116   : > { %v963_v30 = vpack.c.bf16 %v731_v28, %v731_v28  ;;  %v734_v31 = vadd.f32 %v1036_v27, %v669_v29  ;;  %v997_v33 = vpop.f32.mrb[8].mxu0 }
 0x117   : > { %v1037_v34 = vpop.f32.mrb[8].mxu1  ;;  %v998_v35 = vpop.f32.mrb[9].mxu0 }
 0x118   : > { %788 = vst.msk [vmem:[%s1285_s20 + $0x8] sm:$0xf] %vm785_vm0, %v963_v30  ;;  %v964_v36 = vpack.c.bf16 %v734_v31, %v734_v31  ;;  %v999_v37 = vadd.f32 %v998_v35, %v997_v33  ;;  %v1038_v38 = vpop.f32.mrb[9].mxu1  ;;  %v1000_v39 = vpop.f32.mrb[10].mxu0 }
 0x119   : > { %v1039_v40 = vadd.f32 %v1038_v38, %v1037_v34  ;;  %v1040_v41 = vpop.f32.mrb[10].mxu1  ;;  %v1001_v42 = vpop.f32.mrb[11].mxu0 }
 0x11a   : > { %789 = vst.msk [vmem:[%s1285_s20 + $0xc] sm:$0xf] %vm785_vm0, %v964_v36  ;;  %v674_v43 = vadd.f32 %v999_v37, %v334_v32  ;;  %v1002_v44 = vadd.f32 %v1001_v42, %v1000_v39  ;;  %v1041_v45 = vpop.f32.mrb[11].mxu1 }
 0x11b   : > { %v1042_v47 = vadd.f32 %v1041_v45, %v1040_v41 }
 0x11c   : > { %v739_v48 = vadd.f32 %v1039_v40, %v674_v43  ;;  %v677_v49 = vadd.f32 %v1002_v44, %v339_v46 }
 0x11e   : > { %v965_v51 = vpack.c.bf16 %v739_v48, %v739_v48  ;;  %v742_v52 = vadd.f32 %v1042_v47, %v677_v49  ;;  %v1003_v53 = vpop.f32.mrb[12].mxu0 }
 0x11f   : > { %v1043_v54 = vpop.f32.mrb[12].mxu1  ;;  %v1004_v55 = vpop.f32.mrb[13].mxu0 }
 0x120   : > { %790 = vst.msk [vmem:[%s1285_s20 + $0x10] sm:$0xf] %vm785_vm0, %v965_v51  ;;  %v966_v56 = vpack.c.bf16 %v742_v52, %v742_v52  ;;  %v1005_v57 = vadd.f32 %v1004_v55, %v1003_v53  ;;  %v1044_v58 = vpop.f32.mrb[13].mxu1  ;;  %v1006_v59 = vpop.f32.mrb[14].mxu0 }
 0x121   : > { %v1045_v60 = vadd.f32 %v1044_v58, %v1043_v54  ;;  %v1046_v61 = vpop.f32.mrb[14].mxu1  ;;  %v1007_v62 = vpop.f32.mrb[15].mxu0 }
 0x122   : > { %791 = vst.msk [vmem:[%s1285_s20 + $0x14] sm:$0xf] %vm785_vm0, %v966_v56  ;;  %v682_v63 = vadd.f32 %v1005_v57, %v344_v50  ;;  %v1008_v0 = vadd.f32 %v1007_v62, %v1006_v59  ;;  %v1047_v1 = vpop.f32.mrb[15].mxu1 }
 0x123   : > { %v1048_v3 = vadd.f32 %v1047_v1, %v1046_v61 }
 0x124   : > { %v747_v4 = vadd.f32 %v1045_v60, %v682_v63  ;;  %v685_v5 = vadd.f32 %v1008_v0, %v349_v2 }
 0x126   : > { %v967_v6 = vpack.c.bf16 %v747_v4, %v747_v4  ;;  %v750_v7 = vadd.f32 %v1048_v3, %v685_v5 }
 0x128   : > { %792 = vst.msk [vmem:[%s1285_s20 + $0x18] sm:$0xf] %vm785_vm0, %v967_v6  ;;  %v968_v8 = vpack.c.bf16 %v750_v7, %v750_v7 }
 0x12a   : > { %793 = vst.msk [vmem:[%s1285_s20 + $0x1c] sm:$0xf] %vm785_vm0, %v968_v8 }
 0x12b PF: > { %s13_s14 = sadd.s32 1, %s1154_s14   ;;  %s1316_s12 = smov %s1150_s13 }
 0x12c   : > { %p10_p5 = scmp.ge.s32.totalorder %s13_s14, 6   ;;  %s1317_s13 = smov %s1319_s15 }
 0x12e   :  { %12 = sbr.rel (!%p10_p5) target bundleno = 2 (0x2), region = 65 }

// kernel: generator_mwm_forward.14
= control target key start
LH: loop header
LB: loop body
LE: loop exit
PB: predicated region body
PF: predicated region fallthrough
CT: control target
= control target key end

     0   :  { %s645_s15 = smov 0   ;;  %s647_s16 = smov 0   ;;  %s889_s0 = inlined_call_operand.vmem [shape: bf16[4,64,8], index: 0, kind: input, shape index: {}]   ;;  %s890_s1 = inlined_call_operand.vmem [shape: f32[64,1], index: 1, kind: input, shape index: {}]   ;;  %s891_s2 = inlined_call_operand.vmem [shape: f32[64,1], index: 2, kind: input, shape index: {}]   ;;  %s892_s3 = inlined_call_operand.vmem [shape: f32[64,1], index: 3, kind: output, shape index: {0}]   ;;  %s893_s4 = inlined_call_operand.vmem [shape: f32[64,1], index: 4, kind: output, shape index: {1}]  }
   0x1   :  { %s649_s17 = smov 0  }
   0x2 LB: > { %s27_s18 = sadd.s32 1, %s613_s16  ;;  %p525_p0 = scmp.ge.s32.totalorder %s617_s17, 1  ;;  %s617_s17 = sphi %s649_s17, %s15_s17   ;;  %s613_s16 = sphi %s647_s16, %s895_s16   ;;  %s609_s15 = sphi %s645_s15, %s894_s15  }
   0x3   : > { %p29_p1 = scmp.ge.s32.totalorder %s27_s18, 4  ;;  %p172_p2 = scmp.lt.s32.totalorder %s617_s17, 5 }
   0x5   : > { %s897_s18 = smov (%p29_p1, %s27_s18), 0  ;;  %p173_p3 = pnand %p525_p0, %p172_p2 }
   0x6   : > { %p196_p4 = scmp.lt.s32.totalorder (!%p173_p3), %s609_s15, 3  ;;  %p204_p5 = scmp.eq.s32.totalorder (!%p173_p3), %s609_s15, 0 }
   0x7   : > { %176 = sbr.rel (%p173_p3) target bundleno = 233 (0xe9), region = 32 }
   0xe   : > { %s197_s19 = scalar_select %p196_p4, %s609_s15, 3 }
   0xf   : > { %209 = sbr.rel (!%p204_p5) target bundleno = 24 (0x18), region = 36  ;;  %vm210_vm0 = vcmask (%p204_p5), 7168   ;;  %v619_v0 = vmov (%p204_p5), 0.0  }
  0x10   : > { %s532_s20 = sshll.u32 %s197_s19, 5  ;;  %211 = vst.msk [vmem:[#allocation2] sm:$0xff] (%p204_p5), %vm210_vm0, %v619_v0  ;;  %212 = vst.msk [vmem:[#allocation2 + $0x8] sm:$0xff] (%p204_p5), %vm210_vm0, %v619_v0 }
  0x11   : > { %s671_s23 = scalar_lea.vmem %s889_s0, %s532_s20  ;;  %213 = vst.msk [vmem:[#allocation2 + $0x10] sm:$0xff] (%p204_p5), %vm210_vm0, %v619_v0  ;;  %214 = vst.msk [vmem:[#allocation2 + $0x18] sm:$0xff] (%p204_p5), %vm210_vm0, %v619_v0 }
  0x12   : > { %215 = vst.msk [vmem:[#allocation2 + $0x20] sm:$0xff] (%p204_p5), %vm210_vm0, %v619_v0  ;;  %216 = vst.msk [vmem:[#allocation2 + $0x28] sm:$0xff] (%p204_p5), %vm210_vm0, %v619_v0 }
  0x13   : > { %217 = vst.msk [vmem:[#allocation2 + $0x30] sm:$0xff] (%p204_p5), %vm210_vm0, %v619_v0  ;;  %218 = vst.msk [vmem:[#allocation2 + $0x38] sm:$0xff] (%p204_p5), %vm210_vm0, %v619_v0 }
  0x14   : > { %219 = vst.msk [vmem:[#allocation3] sm:$0xff] (%p204_p5), %vm210_vm0, %v619_v0  ;;  %220 = vst.msk [vmem:[#allocation3 + $0x8] sm:$0xff] (%p204_p5), %vm210_vm0, %v619_v0 }
  0x15   : > { %221 = vst.msk [vmem:[#allocation3 + $0x10] sm:$0xff] (%p204_p5), %vm210_vm0, %v619_v0  ;;  %222 = vst.msk [vmem:[#allocation3 + $0x18] sm:$0xff] (%p204_p5), %vm210_vm0, %v619_v0 }
  0x16   : > { %223 = vst.msk [vmem:[#allocation3 + $0x20] sm:$0xff] %vm210_vm0, %v619_v0  ;;  %224 = vst.msk [vmem:[#allocation3 + $0x28] sm:$0xff] %vm210_vm0, %v619_v0 }
  0x17   : > { %225 = vst.msk [vmem:[#allocation3 + $0x30] sm:$0xff] %vm210_vm0, %v619_v0  ;;  %226 = vst.msk [vmem:[#allocation3 + $0x38] sm:$0xff] %vm210_vm0, %v619_v0 }
  0x18 PF: > { %v551_v1 = vld [vmem:[%s671_s23 + $0x8] sm:$0xff]   ;;  %vm251_vm1 = vcmask 64512   ;;  %v536_v2 = vld [vmem:[%s671_s23] sm:$0xff]   ;;  %v552_v7 = vld [vmem:[%s671_s23 + $0x10] sm:$0xff]   ;;  %p349_p6 = scmp.eq.s32.totalorder %s609_s15, 3  ;;  %vm284_vm2 = vcmask 7168  }
  0x19   : > { %v541_v3 = vunpack.c.l.bf16 %v551_v1  ;;  %v537_v4 = vunpack.c.l.bf16 %v536_v2  ;;  %v542_v5 = vunpack.c.h.bf16 %v551_v1  ;;  %v538_v6 = vunpack.c.h.bf16 %v536_v2  ;;  %v553_v14 = vld [vmem:[%s671_s23 + $0x18] sm:$0xff]   ;;  %v243_v38 = vld [vmem:[#allocation2] sm:$0xff]  ;;  %v244_v44 = vld [vmem:[#allocation2 + $0x8] sm:$0xff] }
  0x1a   : > { %v546_v12 = vunpack.c.h.bf16 %v552_v7  ;;  %v545_v13 = vunpack.c.l.bf16 %v552_v7  ;;  %v550_v17 = vunpack.c.h.bf16 %v553_v14  ;;  %v549_v18 = vunpack.c.l.bf16 %v553_v14  ;;  %v245_v37 = vld [vmem:[#allocation2 + $0x10] sm:$0xff]  ;;  %v246_v43 = vld [vmem:[#allocation2 + $0x18] sm:$0xff] }
  0x1b   : > { %v258_v8 = vsel %vm251_vm1, %v541_v3, 0.0  ;;  %v252_v9 = vsel %vm251_vm1, %v537_v4, 0.0  ;;  %v261_v10 = vsel %vm251_vm1, %v542_v5, 0.0  ;;  %v255_v11 = vsel %vm251_vm1, %v538_v6, 0.0  ;;  %v248_v49 = vld [vmem:[#allocation2 + $0x28] sm:$0xff]  ;;  %v247_v50 = vld [vmem:[#allocation2 + $0x20] sm:$0xff] }
  0x1c   : > { %259 = vadd.xlane.f32.xlu1 %v258_v8  ;;  %253 = vadd.xlane.f32.xlu0 %v252_v9  ;;  %v267_v15 = vsel %vm251_vm1, %v546_v12, 0.0  ;;  %v264_v16 = vsel %vm251_vm1, %v545_v13, 0.0  ;;  %v273_v19 = vsel %vm251_vm1, %v550_v17, 0.0  ;;  %v270_v20 = vsel %vm251_vm1, %v549_v18, 0.0  ;;  %v250_v55 = vld [vmem:[#allocation2 + $0x38] sm:$0xff]  ;;  %v249_v56 = vld [vmem:[#allocation2 + $0x30] sm:$0xff] }
  0x1d   : > { %v302_v21 = vmul.f32 %v538_v6, %v538_v6  ;;  %v301_v22 = vmul.f32 %v537_v4, %v537_v4  ;;  %v304_v25 = vmul.f32 %v542_v5, %v542_v5  ;;  %v303_v26 = vmul.f32 %v541_v3, %v541_v3  ;;  %v294_v61 = vld [vmem:[#allocation3 + $0x8] sm:$0xff]  ;;  %v293_v62 = vld [vmem:[#allocation3] sm:$0xff] }
  0x1e   : > { %v306_v29 = vmul.f32 %v546_v12, %v546_v12  ;;  %v305_v30 = vmul.f32 %v545_v13, %v545_v13  ;;  %v308_v33 = vmul.f32 %v550_v17, %v550_v17  ;;  %v307_v34 = vmul.f32 %v549_v18, %v549_v18  ;;  %v296_v3 = vld [vmem:[#allocation3 + $0x18] sm:$0xff]  ;;  %v295_v4 = vld [vmem:[#allocation3 + $0x10] sm:$0xff]  ;;  %v298_v9 = vld [vmem:[#allocation3 + $0x28] sm:$0xff] }
  0x1f   : > { %v312_v23 = vsel %vm251_vm1, %v302_v21, 0.0  ;;  %v309_v24 = vsel %vm251_vm1, %v301_v22, 0.0  ;;  %v318_v27 = vsel %vm251_vm1, %v304_v25, 0.0  ;;  %v315_v28 = vsel %vm251_vm1, %v303_v26, 0.0 }
  0x20   : > { %262 = vadd.xlane.f32.xlu1 %v261_v10  ;;  %256 = vadd.xlane.f32.xlu0 %v255_v11  ;;  %v324_v31 = vsel %vm251_vm1, %v306_v29, 0.0  ;;  %v321_v32 = vsel %vm251_vm1, %v305_v30, 0.0  ;;  %v330_v35 = vsel %vm251_vm1, %v308_v33, 0.0  ;;  %v327_v36 = vsel %vm251_vm1, %v307_v34, 0.0  ;;  %v297_v10 = vld [vmem:[#allocation3 + $0x20] sm:$0xff] }
  0x24   : > { %268 = vadd.xlane.f32.xlu1 %v267_v15  ;;  %265 = vadd.xlane.f32.xlu0 %v264_v16  ;;  %v300_v15 = vld [vmem:[#allocation3 + $0x38] sm:$0xff]  ;;  %v299_v16 = vld [vmem:[#allocation3 + $0x30] sm:$0xff] }
  0x28   : > { %274 = vadd.xlane.f32.xlu1 %v273_v19  ;;  %271 = vadd.xlane.f32.xlu0 %v270_v20 }
  0x2c   : > { %313 = vadd.xlane.f32.xlu1 %v312_v23  ;;  %310 = vadd.xlane.f32.xlu0 %v309_v24 }
  0x30   : > { %319 = vadd.xlane.f32.xlu1 %v318_v27  ;;  %316 = vadd.xlane.f32.xlu0 %v315_v28 }
  0x34   : > { %325 = vadd.xlane.f32.xlu1 %v324_v31  ;;  %322 = vadd.xlane.f32.xlu0 %v321_v32 }
  0x38   : > { %331 = vadd.xlane.f32.xlu1 %v330_v35  ;;  %328 = vadd.xlane.f32.xlu0 %v327_v36 }
  0xa9   : > { %v260_v39 = vpop.xlane.xlu1 %259  ;;  %v254_v40 = vpop.xlane.xlu0 %253 }
  0xaa   : > { %v278_v41 = vadd.f32 %v260_v39, %v245_v37  ;;  %v276_v42 = vadd.f32 %v254_v40, %v243_v38 }
  0xac   : > { %287 = vst.msk [vmem:[#allocation2 + $0x10] sm:$0xff] %vm284_vm2, %v278_v41  ;;  %285 = vst.msk [vmem:[#allocation2] sm:$0xff] %vm284_vm2, %v276_v42 }
  0xad   : > { %v263_v45 = vpop.xlane.xlu1 %262  ;;  %v257_v46 = vpop.xlane.xlu0 %256 }
  0xae   : > { %v279_v47 = vadd.f32 %v263_v45, %v246_v43  ;;  %v277_v48 = vadd.f32 %v257_v46, %v244_v44 }
  0xb0   : > { %288 = vst.msk [vmem:[#allocation2 + $0x18] sm:$0xff] %vm284_vm2, %v279_v47  ;;  %286 = vst.msk [vmem:[#allocation2 + $0x8] sm:$0xff] %vm284_vm2, %v277_v48 }
  0xb1   : > { %v269_v51 = vpop.xlane.xlu1 %268  ;;  %v266_v52 = vpop.xlane.xlu0 %265 }
  0xb2   : > { %v281_v53 = vadd.f32 %v269_v51, %v248_v49  ;;  %v280_v54 = vadd.f32 %v266_v52, %v247_v50 }
  0xb3   : > { %v354_v21 = vld [vmem:[#allocation2] sm:$0xff] (%p349_p6)  ;;  %v356_v29 = vld [vmem:[#allocation2 + $0x10] sm:$0xff] (%p349_p6) }
  0xb4   : > { %290 = vst.msk [vmem:[#allocation2 + $0x28] sm:$0xff] %vm284_vm2, %v281_v53  ;;  %289 = vst.msk [vmem:[#allocation2 + $0x20] sm:$0xff] %vm284_vm2, %v280_v54  ;;  %v728_v23 = vmul.f32 (%p349_p6), 0.03125, %v354_v21  ;;  %v734_v32 = vmul.f32 (%p349_p6), 0.03125, %v356_v29 }
  0xb5   : > { %v275_v57 = vpop.xlane.xlu1 %274  ;;  %v272_v58 = vpop.xlane.xlu0 %271 }
  0xb6   : > { %v283_v59 = vadd.f32 %v275_v57, %v250_v55  ;;  %v282_v60 = vadd.f32 %v272_v58, %v249_v56  ;;  %v386_v31 = vmul.f32 (%p349_p6), %v728_v23, %v728_v23  ;;  %v388_v42 = vmul.f32 (%p349_p6), %v734_v32, %v734_v32 }
  0xb7   : > { %v355_v25 = vld [vmem:[#allocation2 + $0x8] sm:$0xff] (%p349_p6)  ;;  %v357_v34 = vld [vmem:[#allocation2 + $0x18] sm:$0xff] (%p349_p6) }
  0xb8   : > { %292 = vst.msk [vmem:[#allocation2 + $0x38] sm:$0xff] %vm284_vm2, %v283_v59  ;;  %291 = vst.msk [vmem:[#allocation2 + $0x30] sm:$0xff] %vm284_vm2, %v282_v60  ;;  %v730_v27 = vmul.f32 (%p349_p6), 0.03125, %v355_v25  ;;  %v738_v37 = vmul.f32 (%p349_p6), 0.03125, %v357_v34  ;;  %v408_v34 = vld [vmem:[%s890_s1 + $0x30] sm:$0xff] (%p349_p6) }
  0xb9   : > { %v314_v63 = vpop.xlane.xlu1 %313  ;;  %v311_v0 = vpop.xlane.xlu0 %310 }
  0xba   : > { %v334_v1 = vadd.f32 %v314_v63, %v294_v61  ;;  %v333_v2 = vadd.f32 %v311_v0, %v293_v62  ;;  %v387_v36 = vmul.f32 (%p349_p6), %v730_v27, %v730_v27  ;;  %v389_v48 = vmul.f32 (%p349_p6), %v738_v37, %v738_v37 }
  0xbb   : > { %v358_v39 = vld [vmem:[#allocation2 + $0x20] sm:$0xff] (%p349_p6)  ;;  %v359_v45 = vld [vmem:[#allocation2 + $0x28] sm:$0xff] (%p349_p6) }
  0xbc   : > { %342 = vst.msk [vmem:[#allocation3 + $0x8] sm:$0xff] %vm284_vm2, %v334_v1  ;;  %341 = vst.msk [vmem:[#allocation3] sm:$0xff] %vm284_vm2, %v333_v2  ;;  %v742_v43 = vmul.f32 (%p349_p6), 0.03125, %v358_v39  ;;  %v746_v49 = vmul.f32 (%p349_p6), 0.03125, %v359_v45 }
  0xbd   : > { %v320_v5 = vpop.xlane.xlu1 %319  ;;  %v317_v6 = vpop.xlane.xlu0 %316 }
  0xbe   : > { %v336_v7 = vadd.f32 %v320_v5, %v296_v3  ;;  %v335_v8 = vadd.f32 %v317_v6, %v295_v4  ;;  %v390_v55 = vmul.f32 (%p349_p6), %v742_v43, %v742_v43  ;;  %v391_v60 = vmul.f32 (%p349_p6), %v746_v49, %v746_v49 }
  0xbf   : > { %v360_v51 = vld [vmem:[#allocation2 + $0x30] sm:$0xff] (%p349_p6)  ;;  %v361_v57 = vld [vmem:[#allocation2 + $0x38] sm:$0xff] (%p349_p6) }
  0xc0   : > { %344 = vst.msk [vmem:[#allocation3 + $0x18] sm:$0xff] %vm284_vm2, %v336_v7  ;;  %343 = vst.msk [vmem:[#allocation3 + $0x10] sm:$0xff] %vm284_vm2, %v335_v8  ;;  %v750_v56 = vmul.f32 (%p349_p6), 0.03125, %v360_v51  ;;  %v756_v4 = vmul.f32 (%p349_p6), 0.03125, %v361_v57 }
  0xc1   : > { %v326_v11 = vpop.xlane.xlu1 %325  ;;  %v323_v12 = vpop.xlane.xlu0 %322 }
  0xc2   : > { %v338_v13 = vadd.f32 %v326_v11, %v298_v9  ;;  %v337_v14 = vadd.f32 %v323_v12, %v297_v10  ;;  %353 = sbr.rel (!%p349_p6) target bundleno = 233 (0xe9), region = 40  ;;  %v392_v1 = vmul.f32 (%p349_p6), %v750_v56, %v750_v56  ;;  %v393_v9 = vmul.f32 (%p349_p6), %v756_v4, %v756_v4 }
  0xc3   : > { %v370_v22 = vld [vmem:[#allocation3] sm:$0xff] (%p349_p6)  ;;  %v371_v26 = vld [vmem:[#allocation3 + $0x8] sm:$0xff] (%p349_p6) }
  0xc4   : > { %346 = vst.msk [vmem:[#allocation3 + $0x28] sm:$0xff] %vm284_vm2, %v338_v13  ;;  %345 = vst.msk [vmem:[#allocation3 + $0x20] sm:$0xff] %vm284_vm2, %v337_v14  ;;  %v378_v24 = vmul.f32 (%p349_p6), 0.03125, %v370_v22  ;;  %v379_v28 = vmul.f32 (%p349_p6), 0.03125, %v371_v26  ;;  %v402_v13 = vld [vmem:[%s890_s1] sm:$0xff] (%p349_p6)  ;;  %v403_v14 = vld [vmem:[%s890_s1 + $0x8] sm:$0xff] (%p349_p6) }
  0xc5   : > { %v332_v17 = vpop.xlane.xlu1 %331  ;;  %v329_v18 = vpop.xlane.xlu0 %328  ;;  %v406_v22 = vld [vmem:[%s890_s1 + $0x20] sm:$0xff] (%p349_p6) }
  0xc6   : > { %v340_v19 = vadd.f32 %v332_v17, %v300_v15  ;;  %v339_v20 = vadd.f32 %v329_v18, %v299_v16  ;;  %v394_v41 = vsub.f32 (%p349_p6), %v378_v24, %v386_v31  ;;  %v395_v47 = vsub.f32 (%p349_p6), %v379_v28, %v387_v36  ;;  %v404_v16 = vld [vmem:[%s890_s1 + $0x10] sm:$0xff] (%p349_p6)  ;;  %v442_v24 = vld [vmem:[%s891_s2] sm:$0xff] (%p349_p6)  ;;  %v407_v28 = vld [vmem:[%s890_s1 + $0x28] sm:$0xff] (%p349_p6) }
  0xc7   : > { %v372_v30 = vld [vmem:[#allocation3 + $0x10] sm:$0xff] (%p349_p6)  ;;  %v373_v35 = vld [vmem:[#allocation3 + $0x18] sm:$0xff] (%p349_p6) }
  0xc8   : > { %348 = vst.msk [vmem:[#allocation3 + $0x38] sm:$0xff] %vm284_vm2, %v340_v19  ;;  %347 = vst.msk [vmem:[#allocation3 + $0x30] sm:$0xff] %vm284_vm2, %v339_v20  ;;  %v380_v33 = vmul.f32 (%p349_p6), 0.03125, %v372_v30  ;;  %v381_v38 = vmul.f32 (%p349_p6), 0.03125, %v373_v35  ;;  %v410_v53 = vadd.f32 (%p349_p6), 1e-05, %v394_v41 }
  0xc9   : > { %v411_v58 = vadd.f32 1e-05, %v395_v47  ;;  %v405_v19 = vld [vmem:[%s890_s1 + $0x18] sm:$0xff]  ;;  %v443_v30 = vld [vmem:[%s891_s2 + $0x8] sm:$0xff] }
  0xca   : > { %v396_v54 = vsub.f32 %v380_v33, %v388_v42  ;;  %v397_v59 = vsub.f32 %v381_v38, %v389_v48  ;;  %579 = vrsqrt.f32 %v410_v53  ;;  %v445_v41 = vld [vmem:[%s891_s2 + $0x18] sm:$0xff] }
  0xcb   : > { %v374_v40 = vld [vmem:[#allocation3 + $0x20] sm:$0xff]  ;;  %v375_v46 = vld [vmem:[#allocation3 + $0x28] sm:$0xff]  ;;  %581 = vrsqrt.f32 %v411_v58  ;;  %v409_v47 = vld [vmem:[%s890_s1 + $0x38] sm:$0xff] }
  0xcc   : > { %v382_v44 = vmul.f32 0.03125, %v374_v40  ;;  %v383_v50 = vmul.f32 0.03125, %v375_v46  ;;  %v412_v63 = vadd.f32 1e-05, %v396_v54  ;;  %v413_v2 = vadd.f32 1e-05, %v397_v59 }
  0xcd   : > { %v446_v46 = vld [vmem:[%s891_s2 + $0x20] sm:$0xff]  ;;  %v449_v59 = vld [vmem:[%s891_s2 + $0x38] sm:$0xff] }
  0xce   : > { %v398_v0 = vsub.f32 %v382_v44, %v390_v55  ;;  %v399_v3 = vsub.f32 %v383_v50, %v391_v60  ;;  %583 = vrsqrt.f32 %v412_v63  ;;  %v447_v50 = vld [vmem:[%s891_s2 + $0x28] sm:$0xff] }
  0xcf   : > { %v376_v52 = vld [vmem:[#allocation3 + $0x30] sm:$0xff]  ;;  %v377_v62 = vld [vmem:[#allocation3 + $0x38] sm:$0xff]  ;;  %585 = vrsqrt.f32 %v413_v2 }
  0xd0   : > { %v384_v61 = vmul.f32 0.03125, %v376_v52  ;;  %v414_v5 = vadd.f32 1e-05, %v398_v0  ;;  %v385_v7 = vmul.f32 0.03125, %v377_v62  ;;  %v415_v8 = vadd.f32 1e-05, %v399_v3 }
  0xd2   : > { %v400_v6 = vsub.f32 %v384_v61, %v392_v1  ;;  %587 = vrsqrt.f32 %v414_v5  ;;  %v401_v11 = vsub.f32 %v385_v7, %v393_v9 }
  0xd3   : > { %589 = vrsqrt.f32 %v415_v8 }
  0xd4   : > { %v416_v10 = vadd.f32 1e-05, %v400_v6  ;;  %v417_v12 = vadd.f32 1e-05, %v401_v11  ;;  %v580_v15 = vpop.eup %579 }
  0xd5   : > { %v582_v17 = vpop.eup %581  ;;  %v426_v18 = vmul.f32 %v580_v15, %v402_v13 }
  0xd6   : > { %591 = vrsqrt.f32 %v416_v10  ;;  %v427_v21 = vmul.f32 %v582_v17, %v403_v14 }
  0xd7   : > { %593 = vrsqrt.f32 %v417_v12  ;;  %434 = vst.msk [vmem:[%s892_s3] sm:$0xff] %vm284_vm2, %v426_v18  ;;  %v450_v29 = vmul.f32 %v426_v18, %v728_v23  ;;  %v444_v23 = vld [vmem:[%s891_s2 + $0x10] sm:$0xff] }
  0xd8   : > { %v584_v20 = vpop.eup %583  ;;  %435 = vst.msk [vmem:[%s892_s3 + $0x8] sm:$0xff] %vm284_vm2, %v427_v21  ;;  %v451_v35 = vmul.f32 %v427_v21, %v730_v27 }
  0xd9   : > { %v586_v25 = vpop.eup %585  ;;  %v428_v26 = vmul.f32 %v584_v20, %v404_v16  ;;  %v458_v39 = vsub.f32 %v442_v24, %v450_v29 }
  0xda   : > { %v429_v33 = vmul.f32 %v586_v25, %v405_v19  ;;  %v459_v44 = vsub.f32 %v443_v30, %v451_v35 }
  0xdb   : > { %436 = vst.msk [vmem:[%s892_s3 + $0x10] sm:$0xff] %vm284_vm2, %v428_v26  ;;  %v452_v40 = vmul.f32 %v428_v26, %v734_v32  ;;  %466 = vst.msk [vmem:[%s893_s4] sm:$0xff] %vm284_vm2, %v458_v39 }
  0xdc   : > { %v588_v31 = vpop.eup %587  ;;  %437 = vst.msk [vmem:[%s892_s3 + $0x18] sm:$0xff] %vm284_vm2, %v429_v33  ;;  %v453_v45 = vmul.f32 %v429_v33, %v738_v37  ;;  %467 = vst.msk [vmem:[%s893_s4 + $0x8] sm:$0xff] %vm284_vm2, %v459_v44 }
  0xdd   : > { %v590_v36 = vpop.eup %589  ;;  %v430_v38 = vmul.f32 %v588_v31, %v406_v22  ;;  %v460_v37 = vsub.f32 %v444_v23, %v452_v40 }
  0xde   : > { %v431_v27 = vmul.f32 %v590_v36, %v407_v28  ;;  %v461_v51 = vsub.f32 %v445_v41, %v453_v45 }
  0xdf   : > { %438 = vst.msk [vmem:[%s892_s3 + $0x20] sm:$0xff] %vm284_vm2, %v430_v38  ;;  %v454_v48 = vmul.f32 %v430_v38, %v742_v43  ;;  %v448_v43 = vld [vmem:[%s891_s2 + $0x30] sm:$0xff]  ;;  %468 = vst.msk [vmem:[%s893_s4 + $0x10] sm:$0xff] %vm284_vm2, %v460_v37 }
  0xe0   : > { %v592_v42 = vpop.eup %591  ;;  %439 = vst.msk [vmem:[%s892_s3 + $0x28] sm:$0xff] %vm284_vm2, %v431_v27  ;;  %v455_v52 = vmul.f32 %v431_v27, %v746_v49  ;;  %469 = vst.msk [vmem:[%s893_s4 + $0x18] sm:$0xff] %vm284_vm2, %v461_v51 }
  0xe1   : > { %v432_v32 = vmul.f32 %v592_v42, %v408_v34  ;;  %v594_v53 = vpop.eup %593  ;;  %v462_v54 = vsub.f32 %v446_v46, %v454_v48 }
  0xe2   : > { %v433_v57 = vmul.f32 %v594_v53, %v409_v47  ;;  %v463_v49 = vsub.f32 %v447_v50, %v455_v52 }
  0xe3   : > { %440 = vst.msk [vmem:[%s892_s3 + $0x30] sm:$0xff] %vm284_vm2, %v432_v32  ;;  %v456_v55 = vmul.f32 %v432_v32, %v750_v56  ;;  %470 = vst.msk [vmem:[%s893_s4 + $0x20] sm:$0xff] %vm284_vm2, %v462_v54 }
  0xe4   : > { %441 = vst.msk [vmem:[%s892_s3 + $0x38] sm:$0xff] %vm284_vm2, %v433_v57  ;;  %471 = vst.msk [vmem:[%s893_s4 + $0x28] sm:$0xff] %vm284_vm2, %v463_v49  ;;  %v457_v56 = vmul.f32 %v433_v57, %v756_v4 }
  0xe5   : > { %v464_v58 = vsub.f32 %v448_v43, %v456_v55 }
  0xe6   : > { %v465_v60 = vsub.f32 %v449_v59, %v457_v56 }
  0xe7   : > { %472 = vst.msk [vmem:[%s893_s4 + $0x30] sm:$0xff] %vm284_vm2, %v464_v58 }
  0xe8   : > { %473 = vst.msk [vmem:[%s893_s4 + $0x38] sm:$0xff] %vm284_vm2, %v465_v60 }
  0xe9 PF: > { %s15_s17 = sadd.s32 1, %s617_s17   ;;  %s894_s15 = smov %s613_s16 }
  0xea   : > { %p12_p7 = scmp.ge.s32.totalorder %s15_s17, 6   ;;  %s895_s16 = smov %s897_s18 }
  0xec   :  { %14 = sbr.rel (!%p12_p7) target bundleno = 2 (0x2), region = 74 }

// kernel: generator_mwm_forward.15
= control target key start
LH: loop header
LB: loop body
LE: loop exit
PB: predicated region body
PF: predicated region fallthrough
CT: control target
= control target key end

     0   :  { %s582_s12 = smov 0   ;;  %s584_s13 = smov 0   ;;  %s688_s0 = inlined_call_operand.vmem [shape: bf16[4,64,8], index: 0, kind: input, shape index: {}]   ;;  %s689_s1 = inlined_call_operand.vmem [shape: f32[64,1], index: 1, kind: input, shape index: {}]   ;;  %s690_s2 = inlined_call_operand.vmem [shape: f32[64,1], index: 2, kind: input, shape index: {}]   ;;  %s691_s3 = inlined_call_operand.vmem [shape: bf16[4,64,8], index: 3, kind: output, shape index: {}]  }
   0x1   :  { %s586_s14 = smov 0  }
   0x2 LB: > { %s25_s15 = sadd.s32 1, %s555_s13  ;;  %p466_p0 = scmp.ge.s32.totalorder %s559_s14, 1  ;;  %s559_s14 = sphi %s586_s14, %s13_s14   ;;  %s555_s13 = sphi %s584_s13, %s693_s13   ;;  %s551_s12 = sphi %s582_s12, %s692_s12  }
   0x3   : > { %p27_p1 = scmp.ge.s32.totalorder %s25_s15, 4  ;;  %p156_p2 = scmp.lt.s32.totalorder %s559_s14, 5 }
   0x5   : > { %s695_s15 = smov (%p27_p1, %s25_s15), 0  ;;  %p157_p3 = pnand %p466_p0, %p156_p2 }
   0x6   : > { %v220_v0 = vld [vmem:[%s689_s1 + $0x10] sm:$0xff] (!%p157_p3)  ;;  %v218_v1 = vld [vmem:[%s689_s1] sm:$0xff] (!%p157_p3)  ;;  %v561_v2 = vmov (!%p157_p3), 0   ;;  %v221_v3 = vld [vmem:[%s689_s1 + $0x18] sm:$0xff] (!%p157_p3)  ;;  %p186_p4 = scmp.lt.s32.totalorder (!%p157_p3), %s551_s12, 3  ;;  %vm370_vm0 = vcmask (!%p157_p3), 60416  }
   0x7   : > { %160 = sbr.rel (%p157_p3) target bundleno = 171 (0xab), region = 32  ;;  %536 = vset.pattern.permute.xlu1 (!%p157_p3), %v561_v2  ;;  %535 = vset.pattern.permute.xlu0 (!%p157_p3), %v561_v2  ;;  %v219_v4 = vld [vmem:[%s689_s1 + $0x8] sm:$0xff] (!%p157_p3)  ;;  %v222_v6 = vld [vmem:[%s689_s1 + $0x20] sm:$0xff] (!%p157_p3)  ;;  %v225_v7 = vld [vmem:[%s689_s1 + $0x38] sm:$0xff] (!%p157_p3) }
   0x8   : > { %238 = vperm.xlu1 (!%p157_p3), %536, %v220_v0   ;;  %228 = vperm.xlu0 (!%p157_p3), %535, %v218_v1   ;;  %v223_v5 = vld [vmem:[%s689_s1 + $0x28] sm:$0xff] (!%p157_p3)  ;;  %v224_v8 = vld [vmem:[%s689_s1 + $0x30] sm:$0xff] (!%p157_p3)  ;;  %v274_v10 = vld [vmem:[%s690_s2] sm:$0xff] (!%p157_p3) }
   0x9   : > { %v275_v9 = vld [vmem:[%s690_s2 + $0x8] sm:$0xff] (!%p157_p3)  ;;  %v277_v11 = vld [vmem:[%s690_s2 + $0x18] sm:$0xff] (!%p157_p3)  ;;  %v276_v12 = vld [vmem:[%s690_s2 + $0x10] sm:$0xff] (!%p157_p3) }
   0xa   : > { %v279_v13 = vld [vmem:[%s690_s2 + $0x28] sm:$0xff] (!%p157_p3)  ;;  %v278_v14 = vld [vmem:[%s690_s2 + $0x20] sm:$0xff] (!%p157_p3)  ;;  %v281_v15 = vld [vmem:[%s690_s2 + $0x38] sm:$0xff] (!%p157_p3) }
   0xb   : > { %v280_v16 = vld [vmem:[%s690_s2 + $0x30] sm:$0xff] (!%p157_p3) }
   0xc   : > { %243 = vperm.xlu1 (!%p157_p3), %536, %v221_v3   ;;  %233 = vperm.xlu0 (!%p157_p3), %535, %v219_v4  }
   0xe   : > { %s697_s12 = smov (!%p186_p4, %s551_s12), 3 }
   0xf   : > { %s481_s25 = sshll.u32 %s697_s12, 5 }
  0x10   : > { %253 = vperm.xlu1 %536, %v223_v5   ;;  %248 = vperm.xlu0 %535, %v222_v6   ;;  %s193_s28 = scalar_lea.vmem %s688_s0, %s481_s25  ;;  %s661_s30 = scalar_lea.vmem %s691_s3, %s481_s25 }
  0x11   : > { %v492_v21 = vld [vmem:[%s193_s28] sm:$0xff]   ;;  %v507_v26 = vld [vmem:[%s193_s28 + $0x8] sm:$0xff]   ;;  %v508_v33 = vld [vmem:[%s193_s28 + $0x10] sm:$0xff]  }
  0x12   : > { %v493_v24 = vunpack.c.l.bf16 %v492_v21  ;;  %v494_v25 = vunpack.c.h.bf16 %v492_v21  ;;  %v497_v29 = vunpack.c.l.bf16 %v507_v26  ;;  %v498_v31 = vunpack.c.h.bf16 %v507_v26  ;;  %v509_v42 = vld [vmem:[%s193_s28 + $0x18] sm:$0xff]  }
  0x13   : > { %v502_v38 = vunpack.c.h.bf16 %v508_v33  ;;  %v501_v39 = vunpack.c.l.bf16 %v508_v33  ;;  %v506_v51 = vunpack.c.h.bf16 %v509_v42  ;;  %v505_v52 = vunpack.c.l.bf16 %v509_v42 }
  0x14   : > { %263 = vperm.xlu1 %536, %v225_v7   ;;  %258 = vperm.xlu0 %535, %v224_v8  }
  0x18   : > { %289 = vperm.xlu1 %536, %v275_v9   ;;  %284 = vperm.xlu0 %535, %v274_v10  }
  0x1c   : > { %299 = vperm.xlu1 %536, %v277_v11   ;;  %294 = vperm.xlu0 %535, %v276_v12  }
  0x20   : > { %309 = vperm.xlu1 %536, %v279_v13   ;;  %304 = vperm.xlu0 %535, %v278_v14  }
  0x24   : > { %319 = vperm.xlu1 %536, %v281_v15   ;;  %314 = vperm.xlu0 %535, %v280_v16  }
  0x87   : > { %v239_v17 = vpop.permute.xlu1 %238  ;;  %v229_v18 = vpop.permute.xlu0 %228 }
  0x88   : > { %v266_v30 = vmul.f32 %v493_v24, %v229_v18  ;;  %v268_v40 = vmul.f32 %v497_v29, %v239_v17 }
  0x8b   : > { %v244_v19 = vpop.permute.xlu1 %243  ;;  %v234_v20 = vpop.permute.xlu0 %233 }
  0x8c   : > { %v267_v32 = vmul.f32 %v494_v25, %v234_v20  ;;  %v269_v41 = vmul.f32 %v498_v31, %v244_v19 }
  0x8f   : > { %v254_v22 = vpop.permute.xlu1 %253  ;;  %v249_v23 = vpop.permute.xlu0 %248 }
  0x90   : > { %v271_v53 = vmul.f32 %v502_v38, %v254_v22  ;;  %v270_v54 = vmul.f32 %v501_v39, %v249_v23 }
  0x93   : > { %v264_v27 = vpop.permute.xlu1 %263  ;;  %v259_v28 = vpop.permute.xlu0 %258 }
  0x94   : > { %v273_v63 = vmul.f32 %v506_v51, %v264_v27  ;;  %v272_v0 = vmul.f32 %v505_v52, %v259_v28 }
  0x97   : > { %v290_v34 = vpop.permute.xlu1 %289  ;;  %v285_v35 = vpop.permute.xlu0 %284 }
  0x98   : > { %v323_v36 = vadd.f32 %v290_v34, %v267_v32  ;;  %v322_v37 = vadd.f32 %v285_v35, %v266_v30 }
  0x9a   : > { %v331_v43 = vmax.f32 %v323_v36, 0.0  ;;  %v330_v44 = vmax.f32 %v322_v37, 0.0 }
  0x9b   : > { %v300_v45 = vpop.permute.xlu1 %299  ;;  %v295_v46 = vpop.permute.xlu0 %294 }
  0x9c   : > { %v484_v47 = vpack.c.bf16 %v331_v43, %v331_v43  ;;  %v483_v48 = vpack.c.bf16 %v330_v44, %v330_v44  ;;  %v325_v49 = vadd.f32 %v300_v45, %v269_v41  ;;  %v324_v50 = vadd.f32 %v295_v46, %v268_v40 }
  0x9e   : > { %372 = vst.msk [vmem:[%s661_s30 + $0x4] sm:$0xf] %vm370_vm0, %v484_v47  ;;  %371 = vst.msk [vmem:[%s661_s30] sm:$0xf] %vm370_vm0, %v483_v48  ;;  %v333_v55 = vmax.f32 %v325_v49, 0.0  ;;  %v332_v56 = vmax.f32 %v324_v50, 0.0 }
  0x9f   : > { %v310_v57 = vpop.permute.xlu1 %309  ;;  %v305_v58 = vpop.permute.xlu0 %304 }
  0xa0   : > { %v486_v59 = vpack.c.bf16 %v333_v55, %v333_v55  ;;  %v485_v60 = vpack.c.bf16 %v332_v56, %v332_v56  ;;  %v327_v61 = vadd.f32 %v310_v57, %v271_v53  ;;  %v326_v62 = vadd.f32 %v305_v58, %v270_v54 }
  0xa2   : > { %374 = vst.msk [vmem:[%s661_s30 + $0xc] sm:$0xf] %vm370_vm0, %v486_v59  ;;  %373 = vst.msk [vmem:[%s661_s30 + $0x8] sm:$0xf] %vm370_vm0, %v485_v60  ;;  %v335_v1 = vmax.f32 %v327_v61, 0.0  ;;  %v334_v2 = vmax.f32 %v326_v62, 0.0 }
  0xa3   : > { %v320_v3 = vpop.permute.xlu1 %319  ;;  %v315_v4 = vpop.permute.xlu0 %314 }
  0xa4   : > { %v488_v5 = vpack.c.bf16 %v335_v1, %v335_v1  ;;  %v487_v6 = vpack.c.bf16 %v334_v2, %v334_v2  ;;  %v329_v7 = vadd.f32 %v320_v3, %v273_v63  ;;  %v328_v8 = vadd.f32 %v315_v4, %v272_v0 }
  0xa6   : > { %376 = vst.msk [vmem:[%s661_s30 + $0x14] sm:$0xf] %vm370_vm0, %v488_v5  ;;  %375 = vst.msk [vmem:[%s661_s30 + $0x10] sm:$0xf] %vm370_vm0, %v487_v6  ;;  %v337_v9 = vmax.f32 %v329_v7, 0.0  ;;  %v336_v10 = vmax.f32 %v328_v8, 0.0 }
  0xa8   : > { %v490_v11 = vpack.c.bf16 %v337_v9, %v337_v9  ;;  %v489_v12 = vpack.c.bf16 %v336_v10, %v336_v10 }
  0xaa   : > { %378 = vst.msk [vmem:[%s661_s30 + $0x1c] sm:$0xf] %vm370_vm0, %v490_v11  ;;  %377 = vst.msk [vmem:[%s661_s30 + $0x18] sm:$0xf] %vm370_vm0, %v489_v12 }
  0xab PF: > { %s13_s14 = sadd.s32 1, %s559_s14   ;;  %s692_s12 = smov %s555_s13 }
  0xac   : > { %p10_p5 = scmp.ge.s32.totalorder %s13_s14, 6   ;;  %s693_s13 = smov %s695_s15 }
  0xae   :  { %12 = sbr.rel (!%p10_p5) target bundleno = 2 (0x2), region = 62 }

// kernel: generator_mwm_forward.16
= control target key start
LH: loop header
LB: loop body
LE: loop exit
PB: predicated region body
PF: predicated region fallthrough
CT: control target
= control target key end

     0   :  { %s746_s12 = smov 0   ;;  %s748_s13 = smov 0   ;;  %s817_s0 = inlined_call_operand.vmem [shape: bf16[4,32,256], index: 0, kind: input, shape index: {}]   ;;  %s818_s1 = inlined_call_operand.vmem [shape: bf16[4,256,32], index: 1, kind: input, shape index: {}]   ;;  %s819_s2 = inlined_call_operand.vmem [shape: f32[32,1], index: 2, kind: input, shape index: {}]   ;;  %s820_s3 = inlined_call_operand.vmem [shape: bf16[4,32,32], index: 3, kind: output, shape index: {}]  }
   0x1   :  { %s750_s14 = smov 0  }
   0x2 LB: > { %s25_s15 = sadd.s32 1, %s719_s13  ;;  %p568_p0 = scmp.ge.s32.totalorder %s723_s14, 1  ;;  %s723_s14 = sphi %s750_s14, %s13_s14   ;;  %s719_s13 = sphi %s748_s13, %s822_s13   ;;  %s715_s12 = sphi %s746_s12, %s821_s12  }
   0x3   : > { %p27_p1 = scmp.ge.s32.totalorder %s25_s15, 4  ;;  %p166_p2 = scmp.lt.s32.totalorder %s723_s14, 5 }
   0x5   : > { %s824_s15 = smov (%p27_p1, %s25_s15), 0  ;;  %p167_p3 = pnand %p568_p0, %p166_p2 }
   0x6   : > { %p201_p4 = scmp.lt.s32.totalorder (!%p167_p3), %s715_s12, 3  ;;  %v261_v0 = vld [vmem:[%s819_s2 + $0x10] sm:$0xff] (!%p167_p3)  ;;  %v259_v1 = vld [vmem:[%s819_s2] sm:$0xff] (!%p167_p3)  ;;  %v725_v2 = vmov (!%p167_p3), 0   ;;  %v262_v3 = vld [vmem:[%s819_s2 + $0x18] sm:$0xff] (!%p167_p3)  ;;  %vm464_vm0 = vcmask (!%p167_p3), 257024  }
   0x7   : > { %170 = sbr.rel (%p167_p3) target bundleno = 272 (0x110), region = 32  ;;  %678 = vset.pattern.permute.xlu1 (!%p167_p3), %v725_v2  ;;  %677 = vset.pattern.permute.xlu0 (!%p167_p3), %v725_v2  ;;  %v260_v4 = vld [vmem:[%s819_s2 + $0x8] sm:$0xff] (!%p167_p3) }
   0x8   : > { %275 = vperm.xlu1 (!%p167_p3), %678, %v261_v0   ;;  %265 = vperm.xlu0 (!%p167_p3), %677, %v259_v1  }
   0xc   : > { %280 = vperm.xlu1 (!%p167_p3), %678, %v262_v3   ;;  %270 = vperm.xlu0 (!%p167_p3), %677, %v260_v4  }
   0xe   : > { %s826_s12 = smov (!%p201_p4, %s715_s12), 3 }
   0xf   : > { %s602_s24 = sshll.u32 %s826_s12, 7  ;;  %s601_s28 = sshll.u32 %s826_s12, 5 }
  0x10   : > { %s782_s27 = scalar_lea.vmem %s818_s1, %s602_s24  ;;  %s205_s4 = scalar_lea.vmem %s817_s0, %s601_s28 }
  0x11   : > { %v679_v5 = vld [vmem:[%s782_s27 + $0x40] sm:$0xff]   ;;  %v681_v7 = vld [vmem:[%s782_s27 + $0x48] sm:$0xff]   ;;  %v683_v9 = vld [vmem:[%s782_s27 + $0x50] sm:$0xff]   ;;  %s603_s5 = sshll.u32 %s826_s12, 4 }
  0x12   : > { %v680_v6 = vld [vmem:[%s782_s27] sm:$0xff]   ;;  %608 = vmatprep.subr.bf16.mxu0 %v679_v5  ;;  %636 = vmatprep.subr.bf16.mxu1 %v679_v5  ;;  %v682_v8 = vld [vmem:[%s782_s27 + $0x8] sm:$0xff]   ;;  %v684_v10 = vld [vmem:[%s782_s27 + $0x10] sm:$0xff]   ;;  %s221_s8 = scalar_lea.vmem %s820_s3, %s603_s5 }
  0x13   : > { %609 = vmatpush3.bf16.msra.mxu0 %v680_v6  ;;  %644 = vmatpush3.bf16.msra.mxu1 %v680_v6  ;;  %v685_v11 = vld [vmem:[%s782_s27 + $0x58] sm:$0xff]   ;;  %v687_v13 = vld [vmem:[%s782_s27 + $0x60] sm:$0xff]   ;;  %v689_v15 = vld [vmem:[%s782_s27 + $0x68] sm:$0xff]  }
  0x14   : > { %610 = vmatprep.subr.bf16.mxu0 %v681_v7  ;;  %637 = vmatprep.subr.bf16.mxu1 %v681_v7  ;;  %v686_v12 = vld [vmem:[%s782_s27 + $0x18] sm:$0xff]   ;;  %v688_v14 = vld [vmem:[%s782_s27 + $0x20] sm:$0xff]   ;;  %v690_v18 = vld [vmem:[%s782_s27 + $0x28] sm:$0xff]  }
  0x15   : > { %v697_v16 = vld [vmem:[%s205_s4 + $0x4] ss:$8 sps:$4 sm:$0xff]   ;;  %v700_v17 = vld [vmem:[%s205_s4 + $0x14] ss:$8 sps:$4 sm:$0xff]   ;;  %v695_v23 = vld [vmem:[%s205_s4] ss:$8 sps:$4 sm:$0xff]  }
  0x16   : > { %v691_v19 = vld [vmem:[%s782_s27 + $0x70] sm:$0xff]   ;;  %431 = vmatprep.mubr.bf16.mxu0 %v697_v16  ;;  %439 = vmatprep.mubr.bf16.mxu1 %v700_v17  ;;  %v693_v21 = vld [vmem:[%s782_s27 + $0x78] sm:$0xff]  }
  0x17   : > { %611 = vmatpush3.bf16.msra.mxu0 %v682_v8  ;;  %645 = vmatpush3.bf16.msra.mxu1 %v682_v8  ;;  %v692_v20 = vld [vmem:[%s782_s27 + $0x30] sm:$0xff]   ;;  %v694_v22 = vld [vmem:[%s782_s27 + $0x38] sm:$0xff]  }
  0x18   : > { %612 = vmatprep.subr.bf16.mxu0 %v683_v9  ;;  %638 = vmatprep.subr.bf16.mxu1 %v683_v9  ;;  %v698_v24 = vld [vmem:[%s205_s4 + $0x10] ss:$8 sps:$4 sm:$0xff]  }
  0x1b   : > { %613 = vmatpush3.bf16.msra.mxu0 %v684_v10  ;;  %646 = vmatpush3.bf16.msra.mxu1 %v684_v10 }
  0x1c   : > { %614 = vmatprep.subr.bf16.mxu0 %v685_v11  ;;  %639 = vmatprep.subr.bf16.mxu1 %v685_v11 }
  0x1f   : > { %615 = vmatpush3.bf16.msra.mxu0 %v686_v12  ;;  %647 = vmatpush3.bf16.msra.mxu1 %v686_v12 }
  0x20   : > { %616 = vmatprep.subr.bf16.mxu0 %v687_v13  ;;  %640 = vmatprep.subr.bf16.mxu1 %v687_v13 }
  0x23   : > { %617 = vmatpush3.bf16.msra.mxu0 %v688_v14  ;;  %648 = vmatpush3.bf16.msra.mxu1 %v688_v14 }
  0x24   : > { %618 = vmatprep.subr.bf16.mxu0 %v689_v15  ;;  %641 = vmatprep.subr.bf16.mxu1 %v689_v15 }
  0x27   : > { %619 = vmatpush3.bf16.msra.mxu0 %v690_v18  ;;  %649 = vmatpush3.bf16.msra.mxu1 %v690_v18 }
  0x28   : > { %620 = vmatprep.subr.bf16.mxu0 %v691_v19  ;;  %642 = vmatprep.subr.bf16.mxu1 %v691_v19 }
  0x2b   : > { %621 = vmatpush3.bf16.msra.mxu0 %v692_v20  ;;  %650 = vmatpush3.bf16.msra.mxu1 %v692_v20 }
  0x2c   : > { %622 = vmatprep.subr.bf16.mxu0 %v693_v21  ;;  %643 = vmatprep.subr.bf16.mxu1 %v693_v21 }
  0x2f   : > { %623 = vmatpush3.bf16.msra.mxu0 %v694_v22  ;;  %651 = vmatpush3.bf16.msra.mxu1 %v694_v22 }
  0x32   : > { %432 = vmatmul.mubr.bf16.vlgmr.msra.gmra.mrb[0].mxu0 %v695_v23  ;;  %440 = vmatmul.mubr.bf16.vlgmr.msra.gmra.mrb[0].mxu1 %v698_v24 }
  0x87   : > { %v276_v25 = vpop.permute.xlu1 %275  ;;  %v266_v26 = vpop.permute.xlu0 %265 }
  0x8b   : > { %v281_v41 = vpop.permute.xlu1 %280  ;;  %v271_v42 = vpop.permute.xlu0 %270 }
 0x105   : > { %v624_v27 = vpop.f32.mrb[0].mxu0  ;;  %v630_v28 = vpop.f32.mrb[0].mxu1 }
 0x106   : > { %v625_v29 = vpop.f32.mrb[1].mxu0  ;;  %v631_v30 = vpop.f32.mrb[1].mxu1 }
 0x107   : > { %v626_v31 = vadd.f32 %v625_v29, %v624_v27  ;;  %v632_v32 = vadd.f32 %v631_v30, %v630_v28  ;;  %v627_v33 = vpop.f32.mrb[2].mxu0  ;;  %v633_v34 = vpop.f32.mrb[2].mxu1 }
 0x108   : > { %v628_v35 = vpop.f32.mrb[3].mxu0  ;;  %v634_v36 = vpop.f32.mrb[3].mxu1 }
 0x109   : > { %v434_v37 = vadd.f32 %v626_v31, %v266_v26  ;;  %v442_v38 = vadd.f32 %v632_v32, %v276_v25  ;;  %v629_v39 = vadd.f32 %v628_v35, %v627_v33  ;;  %v635_v40 = vadd.f32 %v634_v36, %v633_v34 }
 0x10b   : > { %v604_v43 = vpack.c.bf16 %v434_v37, %v434_v37  ;;  %v606_v44 = vpack.c.bf16 %v442_v38, %v442_v38  ;;  %v437_v45 = vadd.f32 %v629_v39, %v271_v42  ;;  %v445_v46 = vadd.f32 %v635_v40, %v281_v41 }
 0x10d   : > { %465 = vst.msk [vmem:[%s221_s8] sm:$0xf] %vm464_vm0, %v604_v43  ;;  %467 = vst.msk [vmem:[%s221_s8 + $0x8] sm:$0xf] %vm464_vm0, %v606_v44  ;;  %v605_v47 = vpack.c.bf16 %v437_v45, %v437_v45  ;;  %v607_v48 = vpack.c.bf16 %v445_v46, %v445_v46 }
 0x10f   : > { %466 = vst.msk [vmem:[%s221_s8 + $0x4] sm:$0xf] %vm464_vm0, %v605_v47  ;;  %468 = vst.msk [vmem:[%s221_s8 + $0xc] sm:$0xf] %vm464_vm0, %v607_v48 }
 0x110 PF: > { %s13_s14 = sadd.s32 1, %s723_s14   ;;  %s821_s12 = smov %s719_s13 }
 0x111   : > { %p10_p5 = scmp.ge.s32.totalorder %s13_s14, 6   ;;  %s822_s13 = smov %s824_s15 }
 0x113   :  { %12 = sbr.rel (!%p10_p5) target bundleno = 2 (0x2), region = 65 }

// kernel: generator_mwm_forward.17
= control target key start
LH: loop header
LB: loop body
LE: loop exit
PB: predicated region body
PF: predicated region fallthrough
CT: control target
= control target key end

     0   :  { %s499_s15 = smov 0   ;;  %s501_s16 = smov 0   ;;  %s609_s0 = inlined_call_operand.vmem [shape: bf16[4,32,32], index: 0, kind: input, shape index: {}]   ;;  %s610_s1 = inlined_call_operand.vmem [shape: f32[32,1], index: 1, kind: input, shape index: {}]   ;;  %s611_s2 = inlined_call_operand.vmem [shape: f32[32,1], index: 2, kind: input, shape index: {}]   ;;  %s612_s3 = inlined_call_operand.vmem [shape: f32[32,1], index: 3, kind: output, shape index: {0}]   ;;  %s613_s4 = inlined_call_operand.vmem [shape: f32[32,1], index: 4, kind: output, shape index: {1}]  }
   0x1   :  { %s503_s17 = smov 0  }
   0x2 LB: > { %s27_s18 = sadd.s32 1, %s467_s16  ;;  %p397_p0 = scmp.ge.s32.totalorder %s471_s17, 1  ;;  %s471_s17 = sphi %s503_s17, %s15_s17   ;;  %s467_s16 = sphi %s501_s16, %s615_s16   ;;  %s463_s15 = sphi %s499_s15, %s614_s15  }
   0x3   : > { %p29_p1 = scmp.ge.s32.totalorder %s27_s18, 4  ;;  %p172_p2 = scmp.lt.s32.totalorder %s471_s17, 5 }
   0x5   : > { %s617_s18 = smov (%p29_p1, %s27_s18), 0  ;;  %p173_p3 = pnand %p397_p0, %p172_p2 }
   0x6   : > { %p196_p4 = scmp.lt.s32.totalorder (!%p173_p3), %s463_s15, 3  ;;  %p204_p5 = scmp.eq.s32.totalorder (!%p173_p3), %s463_s15, 0 }
   0x7   : > { %176 = sbr.rel (%p173_p3) target bundleno = 215 (0xd7), region = 32 }
   0xe   : > { %s197_s19 = scalar_select %p196_p4, %s463_s15, 3 }
   0xf   : > { %209 = sbr.rel (!%p204_p5) target bundleno = 22 (0x16), region = 36  ;;  %vm210_vm0 = vcmask (%p204_p5), 7168   ;;  %v473_v0 = vmov (%p204_p5), 0.0  }
  0x10   : > { %s404_s20 = sshll.u32 %s197_s19, 4  ;;  %211 = vst.msk [vmem:[#allocation2] sm:$0xff] (%p204_p5), %vm210_vm0, %v473_v0  ;;  %212 = vst.msk [vmem:[#allocation2 + $0x8] sm:$0xff] (%p204_p5), %vm210_vm0, %v473_v0 }
  0x11   : > { %s203_s23 = scalar_lea.vmem %s609_s0, %s404_s20  ;;  %213 = vst.msk [vmem:[#allocation2 + $0x10] sm:$0xff] (%p204_p5), %vm210_vm0, %v473_v0  ;;  %214 = vst.msk [vmem:[#allocation2 + $0x18] sm:$0xff] (%p204_p5), %vm210_vm0, %v473_v0 }
  0x12   : > { %215 = vst.msk [vmem:[#allocation3] sm:$0xff] (%p204_p5), %vm210_vm0, %v473_v0  ;;  %216 = vst.msk [vmem:[#allocation3 + $0x8] sm:$0xff] (%p204_p5), %vm210_vm0, %v473_v0 }
  0x13   : > { %217 = vst.msk [vmem:[#allocation3 + $0x10] sm:$0xff] (%p204_p5), %vm210_vm0, %v473_v0  ;;  %218 = vst.msk [vmem:[#allocation3 + $0x18] sm:$0xff] (%p204_p5), %vm210_vm0, %v473_v0 }
  0x16 PF: > { %v415_v1 = vld [vmem:[%s203_s23 + $0x8] sm:$0xff]   ;;  %vm231_vm1 = vcmask 261120   ;;  %v408_v2 = vld [vmem:[%s203_s23] sm:$0xff]   ;;  %p281_p6 = scmp.eq.s32.totalorder %s463_s15, 3  ;;  %vm248_vm2 = vcmask 7168  }
  0x17   : > { %v413_v3 = vunpack.c.l.bf16 %v415_v1  ;;  %v409_v4 = vunpack.c.l.bf16 %v408_v2  ;;  %v414_v5 = vunpack.c.h.bf16 %v415_v1  ;;  %v410_v6 = vunpack.c.h.bf16 %v408_v2  ;;  %v227_v20 = vld [vmem:[#allocation2] sm:$0xff]  ;;  %v228_v26 = vld [vmem:[#allocation2 + $0x8] sm:$0xff] }
  0x18   : > { %v229_v19 = vld [vmem:[#allocation2 + $0x10] sm:$0xff]  ;;  %v230_v25 = vld [vmem:[#allocation2 + $0x18] sm:$0xff] }
  0x19   : > { %v238_v7 = vsel %vm231_vm1, %v413_v3, 0.0  ;;  %v232_v8 = vsel %vm231_vm1, %v409_v4, 0.0  ;;  %v241_v9 = vsel %vm231_vm1, %v414_v5, 0.0  ;;  %v235_v10 = vsel %vm231_vm1, %v410_v6, 0.0  ;;  %v254_v31 = vld [vmem:[#allocation3 + $0x8] sm:$0xff]  ;;  %v253_v32 = vld [vmem:[#allocation3] sm:$0xff] }
  0x1a   : > { %239 = vadd.xlane.f32.xlu1 %v238_v7  ;;  %233 = vadd.xlane.f32.xlu0 %v232_v8  ;;  %v258_v11 = vmul.f32 %v410_v6, %v410_v6  ;;  %v257_v12 = vmul.f32 %v409_v4, %v409_v4  ;;  %v260_v15 = vmul.f32 %v414_v5, %v414_v5  ;;  %v256_v37 = vld [vmem:[#allocation3 + $0x18] sm:$0xff]  ;;  %v255_v38 = vld [vmem:[#allocation3 + $0x10] sm:$0xff]  ;;  %v310_v7 = vld [vmem:[%s610_s1] sm:$0xff] (%p281_p6) }
  0x1b   : > { %v259_v16 = vmul.f32 %v413_v3, %v413_v3  ;;  %v311_v8 = vld [vmem:[%s610_s1 + $0x8] sm:$0xff] (%p281_p6) }
  0x1c   : > { %v264_v13 = vsel %vm231_vm1, %v258_v11, 0.0  ;;  %v261_v14 = vsel %vm231_vm1, %v257_v12, 0.0  ;;  %v270_v17 = vsel %vm231_vm1, %v260_v15, 0.0 }
  0x1d   : > { %v267_v18 = vsel %vm231_vm1, %v259_v16, 0.0  ;;  %v330_v16 = vld [vmem:[%s611_s2] sm:$0xff] (%p281_p6) }
  0x1e   : > { %242 = vadd.xlane.f32.xlu1 %v241_v9  ;;  %236 = vadd.xlane.f32.xlu0 %v235_v10  ;;  %v312_v10 = vld [vmem:[%s610_s1 + $0x10] sm:$0xff] (%p281_p6) }
  0x22   : > { %265 = vadd.xlane.f32.xlu1 %v264_v13  ;;  %262 = vadd.xlane.f32.xlu0 %v261_v14  ;;  %v313_v13 = vld [vmem:[%s610_s1 + $0x18] sm:$0xff] (%p281_p6) }
  0x26   : > { %271 = vadd.xlane.f32.xlu1 %v270_v17  ;;  %268 = vadd.xlane.f32.xlu0 %v267_v18 }
  0xa7   : > { %v240_v21 = vpop.xlane.xlu1 %239  ;;  %v234_v22 = vpop.xlane.xlu0 %233 }
  0xa8   : > { %v246_v23 = vadd.f32 %v240_v21, %v229_v19  ;;  %v244_v24 = vadd.f32 %v234_v22, %v227_v20  ;;  %v331_v20 = vld [vmem:[%s611_s2 + $0x8] sm:$0xff] (%p281_p6) }
  0xaa   : > { %251 = vst.msk [vmem:[#allocation2 + $0x10] sm:$0xff] %vm248_vm2, %v246_v23  ;;  %249 = vst.msk [vmem:[#allocation2] sm:$0xff] %vm248_vm2, %v244_v24  ;;  %v332_v23 = vld [vmem:[%s611_s2 + $0x10] sm:$0xff] (%p281_p6) }
  0xab   : > { %v243_v27 = vpop.xlane.xlu1 %242  ;;  %v237_v28 = vpop.xlane.xlu0 %236 }
  0xac   : > { %v247_v29 = vadd.f32 %v243_v27, %v230_v25  ;;  %v245_v30 = vadd.f32 %v237_v28, %v228_v26  ;;  %v333_v26 = vld [vmem:[%s611_s2 + $0x18] sm:$0xff] (%p281_p6) }
  0xae   : > { %252 = vst.msk [vmem:[#allocation2 + $0x18] sm:$0xff] %vm248_vm2, %v247_v29  ;;  %250 = vst.msk [vmem:[#allocation2 + $0x8] sm:$0xff] %vm248_vm2, %v245_v30 }
  0xaf   : > { %v266_v33 = vpop.xlane.xlu1 %265  ;;  %v263_v34 = vpop.xlane.xlu0 %262 }
  0xb0   : > { %v274_v35 = vadd.f32 %v266_v33, %v254_v31  ;;  %v273_v36 = vadd.f32 %v263_v34, %v253_v32  ;;  %285 = sbr.rel (!%p281_p6) target bundleno = 215 (0xd7), region = 40 }
  0xb1   : > { %v286_v43 = vld [vmem:[#allocation2] sm:$0xff] (%p281_p6)  ;;  %v288_v51 = vld [vmem:[#allocation2 + $0x10] sm:$0xff] (%p281_p6) }
  0xb2   : > { %278 = vst.msk [vmem:[#allocation3 + $0x8] sm:$0xff] %vm248_vm2, %v274_v35  ;;  %277 = vst.msk [vmem:[#allocation3] sm:$0xff] %vm248_vm2, %v273_v36  ;;  %v290_v45 = vmul.f32 (%p281_p6), 0.0078125, %v286_v43  ;;  %v292_v54 = vmul.f32 (%p281_p6), 0.0078125, %v288_v51 }
  0xb3   : > { %v272_v39 = vpop.xlane.xlu1 %271  ;;  %v269_v40 = vpop.xlane.xlu0 %268 }
  0xb4   : > { %v276_v41 = vadd.f32 %v272_v39, %v256_v37  ;;  %v275_v42 = vadd.f32 %v269_v40, %v255_v38  ;;  %v302_v53 = vmul.f32 (%p281_p6), %v290_v45, %v290_v45  ;;  %v304_v62 = vmul.f32 (%p281_p6), %v292_v54, %v292_v54 }
  0xb5   : > { %v287_v47 = vld [vmem:[#allocation2 + $0x8] sm:$0xff] (%p281_p6)  ;;  %v289_v56 = vld [vmem:[#allocation2 + $0x18] sm:$0xff] (%p281_p6) }
  0xb6   : > { %280 = vst.msk [vmem:[#allocation3 + $0x18] sm:$0xff] %vm248_vm2, %v276_v41  ;;  %279 = vst.msk [vmem:[#allocation3 + $0x10] sm:$0xff] %vm248_vm2, %v275_v42  ;;  %v291_v49 = vmul.f32 (%p281_p6), 0.0078125, %v287_v47  ;;  %v293_v59 = vmul.f32 (%p281_p6), 0.0078125, %v289_v56 }
  0xb8   : > { %v303_v58 = vmul.f32 %v291_v49, %v291_v49  ;;  %v305_v0 = vmul.f32 %v293_v59, %v293_v59 }
  0xb9   : > { %v294_v44 = vld [vmem:[#allocation3] sm:$0xff]  ;;  %v295_v48 = vld [vmem:[#allocation3 + $0x8] sm:$0xff] }
  0xba   : > { %v298_v46 = vmul.f32 0.0078125, %v294_v44  ;;  %v299_v50 = vmul.f32 0.0078125, %v295_v48 }
  0xbc   : > { %v306_v61 = vsub.f32 %v298_v46, %v302_v53  ;;  %v307_v63 = vsub.f32 %v299_v50, %v303_v58 }
  0xbd   : > { %v296_v52 = vld [vmem:[#allocation3 + $0x10] sm:$0xff]  ;;  %v297_v57 = vld [vmem:[#allocation3 + $0x18] sm:$0xff] }
  0xbe   : > { %v300_v55 = vmul.f32 0.0078125, %v296_v52  ;;  %v301_v60 = vmul.f32 0.0078125, %v297_v57  ;;  %v314_v1 = vadd.f32 1e-05, %v306_v61  ;;  %v315_v3 = vadd.f32 1e-05, %v307_v63 }
  0xc0   : > { %v308_v2 = vsub.f32 %v300_v55, %v304_v62  ;;  %v309_v4 = vsub.f32 %v301_v60, %v305_v0  ;;  %441 = vrsqrt.f32 %v314_v1 }
  0xc1   : > { %443 = vrsqrt.f32 %v315_v3 }
  0xc2   : > { %v316_v5 = vadd.f32 1e-05, %v308_v2  ;;  %v317_v6 = vadd.f32 1e-05, %v309_v4 }
  0xc4   : > { %445 = vrsqrt.f32 %v316_v5 }
  0xc5   : > { %447 = vrsqrt.f32 %v317_v6 }
  0xca   : > { %v442_v9 = vpop.eup %441 }
  0xcb   : > { %v444_v11 = vpop.eup %443  ;;  %v322_v12 = vmul.f32 %v442_v9, %v310_v7 }
  0xcc   : > { %v323_v15 = vmul.f32 %v444_v11, %v311_v8 }
  0xcd   : > { %326 = vst.msk [vmem:[%s612_s3] sm:$0xff] %vm248_vm2, %v322_v12  ;;  %v334_v19 = vmul.f32 %v322_v12, %v290_v45 }
  0xce   : > { %v446_v14 = vpop.eup %445  ;;  %327 = vst.msk [vmem:[%s612_s3 + $0x8] sm:$0xff] %vm248_vm2, %v323_v15  ;;  %v335_v22 = vmul.f32 %v323_v15, %v291_v49 }
  0xcf   : > { %v448_v17 = vpop.eup %447  ;;  %v324_v18 = vmul.f32 %v446_v14, %v312_v10  ;;  %v338_v24 = vsub.f32 %v330_v16, %v334_v19 }
  0xd0   : > { %v325_v21 = vmul.f32 %v448_v17, %v313_v13  ;;  %v339_v27 = vsub.f32 %v331_v20, %v335_v22 }
  0xd1   : > { %328 = vst.msk [vmem:[%s612_s3 + $0x10] sm:$0xff] %vm248_vm2, %v324_v18  ;;  %v336_v25 = vmul.f32 %v324_v18, %v292_v54  ;;  %342 = vst.msk [vmem:[%s613_s4] sm:$0xff] %vm248_vm2, %v338_v24 }
  0xd2   : > { %329 = vst.msk [vmem:[%s612_s3 + $0x18] sm:$0xff] %vm248_vm2, %v325_v21  ;;  %v337_v28 = vmul.f32 %v325_v21, %v293_v59  ;;  %343 = vst.msk [vmem:[%s613_s4 + $0x8] sm:$0xff] %vm248_vm2, %v339_v27 }
  0xd3   : > { %v340_v29 = vsub.f32 %v332_v23, %v336_v25 }
  0xd4   : > { %v341_v30 = vsub.f32 %v333_v26, %v337_v28 }
  0xd5   : > { %344 = vst.msk [vmem:[%s613_s4 + $0x10] sm:$0xff] %vm248_vm2, %v340_v29 }
  0xd6   : > { %345 = vst.msk [vmem:[%s613_s4 + $0x18] sm:$0xff] %vm248_vm2, %v341_v30 }
  0xd7 PF: > { %s15_s17 = sadd.s32 1, %s471_s17   ;;  %s614_s15 = smov %s467_s16 }
  0xd8   : > { %p12_p7 = scmp.ge.s32.totalorder %s15_s17, 6   ;;  %s615_s16 = smov %s617_s18 }
  0xda   :  { %14 = sbr.rel (!%p12_p7) target bundleno = 2 (0x2), region = 74 }

// kernel: generator_mwm_forward.18
= control target key start
LH: loop header
LB: loop body
LE: loop exit
PB: predicated region body
PF: predicated region fallthrough
CT: control target
= control target key end

     0   :  { %s476_s12 = smov 0   ;;  %s478_s13 = smov 0   ;;  %s537_s0 = inlined_call_operand.vmem [shape: bf16[4,32,32], index: 0, kind: input, shape index: {}]   ;;  %s538_s1 = inlined_call_operand.vmem [shape: f32[32,1], index: 1, kind: input, shape index: {}]   ;;  %s539_s2 = inlined_call_operand.vmem [shape: f32[32,1], index: 2, kind: input, shape index: {}]   ;;  %s540_s3 = inlined_call_operand.vmem [shape: bf16[4,32,32], index: 3, kind: output, shape index: {}]  }
   0x1   :  { %s480_s14 = smov 0  }
   0x2 LB: > { %s25_s15 = sadd.s32 1, %s449_s13  ;;  %p378_p0 = scmp.ge.s32.totalorder %s453_s14, 1  ;;  %s453_s14 = sphi %s480_s14, %s13_s14   ;;  %s449_s13 = sphi %s478_s13, %s542_s13   ;;  %s445_s12 = sphi %s476_s12, %s541_s12  }
   0x3   : > { %p27_p1 = scmp.ge.s32.totalorder %s25_s15, 4  ;;  %p156_p2 = scmp.lt.s32.totalorder %s453_s14, 5 }
   0x5   : > { %s544_s15 = smov (%p27_p1, %s25_s15), 0  ;;  %p157_p3 = pnand %p378_p0, %p156_p2 }
   0x6   : > { %v212_v0 = vld [vmem:[%s538_s1 + $0x10] sm:$0xff] (!%p157_p3)  ;;  %v210_v1 = vld [vmem:[%s538_s1] sm:$0xff] (!%p157_p3)  ;;  %v455_v2 = vmov (!%p157_p3), 0   ;;  %v213_v3 = vld [vmem:[%s538_s1 + $0x18] sm:$0xff] (!%p157_p3)  ;;  %p186_p4 = scmp.lt.s32.totalorder (!%p157_p3), %s445_s12, 3  ;;  %vm286_vm0 = vcmask (!%p157_p3), 257024  }
   0x7   : > { %160 = sbr.rel (%p157_p3) target bundleno = 155 (0x9b), region = 32  ;;  %430 = vset.pattern.permute.xlu1 (!%p157_p3), %v455_v2  ;;  %429 = vset.pattern.permute.xlu0 (!%p157_p3), %v455_v2  ;;  %v211_v4 = vld [vmem:[%s538_s1 + $0x8] sm:$0xff] (!%p157_p3)  ;;  %v238_v6 = vld [vmem:[%s539_s2] sm:$0xff] (!%p157_p3)  ;;  %v241_v7 = vld [vmem:[%s539_s2 + $0x18] sm:$0xff] (!%p157_p3) }
   0x8   : > { %226 = vperm.xlu1 (!%p157_p3), %430, %v212_v0   ;;  %216 = vperm.xlu0 (!%p157_p3), %429, %v210_v1   ;;  %v239_v5 = vld [vmem:[%s539_s2 + $0x8] sm:$0xff] (!%p157_p3)  ;;  %v240_v8 = vld [vmem:[%s539_s2 + $0x10] sm:$0xff] (!%p157_p3) }
   0xc   : > { %231 = vperm.xlu1 (!%p157_p3), %430, %v213_v3   ;;  %221 = vperm.xlu0 (!%p157_p3), %429, %v211_v4  }
   0xe   : > { %s546_s12 = smov (!%p186_p4, %s445_s12), 3 }
   0xf   : > { %s389_s5 = sshll.u32 %s546_s12, 4 }
  0x10   : > { %249 = vperm.xlu1 %430, %v239_v5   ;;  %244 = vperm.xlu0 %429, %v238_v6   ;;  %s193_s8 = scalar_lea.vmem %s537_s0, %s389_s5  ;;  %s201_s11 = scalar_lea.vmem %s540_s3, %s389_s5 }
  0x11   : > { %v396_v11 = vld [vmem:[%s193_s8] sm:$0xff]   ;;  %v403_v14 = vld [vmem:[%s193_s8 + $0x8] sm:$0xff]  }
  0x12   : > { %v397_v12 = vunpack.c.l.bf16 %v396_v11  ;;  %v398_v13 = vunpack.c.h.bf16 %v396_v11  ;;  %v401_v17 = vunpack.c.l.bf16 %v403_v14  ;;  %v402_v19 = vunpack.c.h.bf16 %v403_v14 }
  0x14   : > { %259 = vperm.xlu1 %430, %v241_v7   ;;  %254 = vperm.xlu0 %429, %v240_v8  }
  0x87   : > { %v227_v9 = vpop.permute.xlu1 %226  ;;  %v217_v10 = vpop.permute.xlu0 %216 }
  0x88   : > { %v234_v18 = vmul.f32 %v397_v12, %v217_v10  ;;  %v236_v25 = vmul.f32 %v401_v17, %v227_v9 }
  0x8b   : > { %v232_v15 = vpop.permute.xlu1 %231  ;;  %v222_v16 = vpop.permute.xlu0 %221 }
  0x8c   : > { %v235_v20 = vmul.f32 %v398_v13, %v222_v16  ;;  %v237_v26 = vmul.f32 %v402_v19, %v232_v15 }
  0x8f   : > { %v250_v21 = vpop.permute.xlu1 %249  ;;  %v245_v22 = vpop.permute.xlu0 %244 }
  0x90   : > { %v263_v23 = vadd.f32 %v250_v21, %v235_v20  ;;  %v262_v24 = vadd.f32 %v245_v22, %v234_v18 }
  0x92   : > { %v267_v27 = vmax.f32 %v263_v23, 0.0  ;;  %v266_v28 = vmax.f32 %v262_v24, 0.0 }
  0x93   : > { %v260_v29 = vpop.permute.xlu1 %259  ;;  %v255_v30 = vpop.permute.xlu0 %254 }
  0x94   : > { %v392_v31 = vpack.c.bf16 %v267_v27, %v267_v27  ;;  %v391_v32 = vpack.c.bf16 %v266_v28, %v266_v28  ;;  %v265_v33 = vadd.f32 %v260_v29, %v237_v26  ;;  %v264_v34 = vadd.f32 %v255_v30, %v236_v25 }
  0x96   : > { %288 = vst.msk [vmem:[%s201_s11 + $0x4] sm:$0xf] %vm286_vm0, %v392_v31  ;;  %287 = vst.msk [vmem:[%s201_s11] sm:$0xf] %vm286_vm0, %v391_v32  ;;  %v269_v35 = vmax.f32 %v265_v33, 0.0  ;;  %v268_v36 = vmax.f32 %v264_v34, 0.0 }
  0x98   : > { %v394_v37 = vpack.c.bf16 %v269_v35, %v269_v35  ;;  %v393_v38 = vpack.c.bf16 %v268_v36, %v268_v36 }
  0x9a   : > { %290 = vst.msk [vmem:[%s201_s11 + $0xc] sm:$0xf] %vm286_vm0, %v394_v37  ;;  %289 = vst.msk [vmem:[%s201_s11 + $0x8] sm:$0xf] %vm286_vm0, %v393_v38 }
  0x9b PF: > { %s13_s14 = sadd.s32 1, %s453_s14   ;;  %s541_s12 = smov %s449_s13 }
  0x9c   : > { %p10_p5 = scmp.ge.s32.totalorder %s13_s14, 6   ;;  %s542_s13 = smov %s544_s15 }
  0x9e   :  { %12 = sbr.rel (!%p10_p5) target bundleno = 2 (0x2), region = 62 }

// kernel: generator_mwm_forward.19
= control target key start
LH: loop header
LB: loop body
LE: loop exit
PB: predicated region body
PF: predicated region fallthrough
CT: control target
= control target key end

     0   :  { %s547_s14 = smov 0   ;;  %s549_s15 = smov 0   ;;  %s588_s0 = inlined_call_operand.vmem [shape: bf16[4,1,128], index: 0, kind: input, shape index: {}]   ;;  %s589_s1 = inlined_call_operand.vmem [shape: bf16[4,128,128], index: 1, kind: input, shape index: {}]   ;;  %s590_s2 = inlined_call_operand.<no memory space> [shape: f32[1,1], index: 2, kind: input, shape index: {}]   ;;  %s591_s3 = inlined_call_operand.vmem [shape: f32[4,1,128], index: 3, kind: output, shape index: {}]  }
   0x1   :  { %v8_v0 = vstv %s590_s2  ;;  %s551_s16 = smov 0  }
   0x2   :  { %9 = vst [vmem:[#allocation2] sm:$0x1] %v8_v0 }
   0x3 LB: > { %s27_s2 = sadd.s32 1, %s515_s15  ;;  %p416_p0 = scmp.ge.s32.totalorder %s519_s16, 1  ;;  %s519_s16 = sphi %s551_s16, %s15_s16   ;;  %s515_s15 = sphi %s549_s15, %s593_s15   ;;  %s511_s14 = sphi %s547_s14, %s592_s14  }
   0x4   : > { %p29_p1 = scmp.ge.s32.totalorder %s27_s2, 4  ;;  %p166_p2 = scmp.lt.s32.totalorder %s519_s16, 5 }
   0x6   : > { %s595_s2 = smov (%p29_p1, %s27_s2), 0  ;;  %p167_p3 = pnand %p416_p0, %p166_p2 }
   0x7   : > { %p197_p4 = scmp.lt.s32.totalorder (!%p167_p3), %s511_s14, 3  ;;  %v521_v2 = vmov (!%p167_p3), 0.0   ;;  %vm522_vm0 = vmmov (!%p167_p3), 0   ;;  %v523_v3 = vmov (!%p167_p3), 0   ;;  %v238_v13 = vlaneseq (!%p167_p3) }
   0x8   : > { %170 = sbr.rel (%p167_p3) target bundleno = 276 (0x114), region = 32  ;;  %439 = vmatprep.subr.bf16.mxu0 (!%p167_p3), %v521_v2  ;;  %455 = vmatprep.mubr.msk.bf16.mxu0 (!%p167_p3), %vm522_vm0, %v521_v2 }
   0x9   : > { %v232_v1 = vld [vmem:[#allocation2] sm:$0x1] (!%p167_p3)  ;;  %486 = vset.pattern.permute.xlu0 (!%p167_p3), %v523_v3  ;;  %v239_v14 = vshrl.u32 (!%p167_p3), %v238_v13, 7 }
   0xa   : > { %235 = vperm.xlu0 (!%p167_p3), %486, %v232_v1  }
   0xb   : > { %v240_v15 = vsub.s32 (!%p167_p3), 0, %v239_v14 }
   0xf   : > { %s597_s14 = smov (!%p197_p4, %s511_s14), 3 }
  0x10   : > { %s429_s17 = sshll.u32 %s597_s14, 6  ;;  %s199_s23 = scalar_lea.vmem %s588_s0, %s597_s14 }
  0x11   : > { %s207_s20 = scalar_lea.vmem %s589_s1, %s429_s17  ;;  %v215_v12 = vld [vmem:[%s199_s23] sm:$0x1]  ;;  %s213_s26 = scalar_lea.vmem %s591_s3, %s597_s14 }
  0x12   : > { %v487_v4 = vld [vmem:[%s207_s20] sm:$0xff]   ;;  %v488_v5 = vld [vmem:[%s207_s20 + $0x8] sm:$0xff]   ;;  %v489_v6 = vld [vmem:[%s207_s20 + $0x10] sm:$0xff]  }
  0x13   : > { %440 = vmatpush3.bf16.msra.mxu0 %v487_v4  ;;  %v490_v7 = vld [vmem:[%s207_s20 + $0x18] sm:$0xff]   ;;  %v491_v8 = vld [vmem:[%s207_s20 + $0x20] sm:$0xff]   ;;  %v492_v9 = vld [vmem:[%s207_s20 + $0x28] sm:$0xff]  }
  0x14   : > { %441 = vmatprep.subr.bf16.mxu0 %v521_v2  ;;  %v493_v10 = vld [vmem:[%s207_s20 + $0x30] sm:$0xff]   ;;  %v494_v11 = vld [vmem:[%s207_s20 + $0x38] sm:$0xff]  }
  0x17   : > { %442 = vmatpush3.bf16.msra.mxu0 %v488_v5 }
  0x18   : > { %443 = vmatprep.subr.bf16.mxu0 %v521_v2 }
  0x1b   : > { %444 = vmatpush3.bf16.msra.mxu0 %v489_v6 }
  0x1c   : > { %445 = vmatprep.subr.bf16.mxu0 %v521_v2 }
  0x1f   : > { %446 = vmatpush3.bf16.msra.mxu0 %v490_v7 }
  0x20   : > { %447 = vmatprep.subr.bf16.mxu0 %v521_v2 }
  0x23   : > { %448 = vmatpush3.bf16.msra.mxu0 %v491_v8 }
  0x24   : > { %449 = vmatprep.subr.bf16.mxu0 %v521_v2 }
  0x27   : > { %450 = vmatpush3.bf16.msra.mxu0 %v492_v9 }
  0x28   : > { %451 = vmatprep.subr.bf16.mxu0 %v521_v2 }
  0x2b   : > { %452 = vmatpush3.bf16.msra.mxu0 %v493_v10 }
  0x2c   : > { %453 = vmatprep.subr.bf16.mxu0 %v521_v2 }
  0x2f   : > { %454 = vmatpush3.bf16.msra.mxu0 %v494_v11 }
  0x32   : > { %456 = vmatmul.mubr.bf16.vlgmr.msra.gmra.mrb[0].mxu0 %v215_v12 }
  0x89   : > { %v236_v16 = vpop.permute.xlu0 %235 }
  0x8a   : > { %v241_v17 = vrot.slane %v236_v16, %v240_v15 }
 0x105   : > { %v324_v18 = vpop.f32.mrb[0].mxu0 }
 0x106   : > { %v325_v19 = vadd.f32 %v324_v18, %v241_v17  ;;  %v457_v20 = vpop.f32.mrb[1].mxu0 }
 0x107   : > { %v327_v21 = vpop.f32.mrb[2].mxu0 }
 0x108   : > { %495 = vtanh.f32 %v325_v19  ;;  %v458_v22 = vpop.f32.mrb[3].mxu0 }
 0x112   : > { %v496_v23 = vpop.eup %495 }
 0x113   : > { %331 = vst [vmem:[%s213_s26] sm:$0x1] %v496_v23 }
 0x114 PF: > { %s15_s16 = sadd.s32 1, %s519_s16   ;;  %s592_s14 = smov %s515_s15 }
 0x115   : > { %p12_p5 = scmp.ge.s32.totalorder %s15_s16, 6   ;;  %s593_s15 = smov %s595_s2 }
 0x117   :  { %14 = sbr.rel (!%p12_p5) target bundleno = 3 (0x3), region = 65 }

</bundles_post_ra>
